<compile_context>
chip_gen: v7x
topology: tpu7x:2x2x1
jax: 0.10.0
libtpu: 0.0.40
codegen_flags: <defaults>
</compile_context>

<pallas_src>
import functools

import jax
import jax.numpy as jnp
from jax.experimental import pallas as pl
from jax.experimental.pallas import tpu as pltpu

EPS = 1e-5
LANE = 128
VMEM_LIMIT = 32 * 1024 * 1024


# ---------------------------------------------------------------------------
# small helpers
# ---------------------------------------------------------------------------
def _round_up(v, m):
    return (v + m - 1) // m * m


def _pad_to(a, shape):
    return jnp.pad(a, [(0, s - d) for d, s in zip(a.shape, shape)])


def _pick_row_tile(m):
    for t in (512, 256, 128, 64, 32, 16, 8):
        if m % t == 0:
            return t, m
    return 256, _round_up(m, 256)


def _phase_decompose(x, stride, pad):
    """(N,H,W,C) f32 -> (N*S*S, Hs, Ws, C) bf16 space-to-depth phases of the
    spatially zero-padded input, so every conv tap is a contiguous window."""
    n, h, w, c = x.shape
    s = stride
    xp = jnp.pad(x, ((0, 0), (pad, pad), (pad, pad), (0, 0)))
    hp, wp = h + 2 * pad, w + 2 * pad
    hs, ws = _round_up(hp, s) // s, _round_up(wp, s) // s
    xp = jnp.pad(xp, ((0, 0), (0, hs * s - hp), (0, ws * s - wp), (0, 0)))
    xp = xp.reshape(n, hs, s, ws, s, c).transpose(0, 2, 4, 1, 3, 5)  # (N,py,px,Hs,Ws,C)
    return xp.reshape(n * s * s, hs, ws, c).astype(jnp.bfloat16), hs, ws


# ---------------------------------------------------------------------------
# Pallas kernels
# ---------------------------------------------------------------------------
def _accumulate_3x3(get_tap, w_ref, acc_ref):
    """acc = sum_{ky,kx} tap(ky,kx) @ W[ky*3+kx]   (bf16 MXU, f32 accumulate)."""
    acc_ref[...] = jnp.zeros_like(acc_ref)
    for ky in range(3):
        for kx in range(3):
            xs = get_tap(ky, kx)                           # (Ho, Wo, Cp) bf16
            rows = xs.shape[0] * xs.shape[1]
            acc_ref[...] += jnp.dot(xs.reshape(rows, xs.shape[2]),
                                    w_ref[ky * 3 + kx],
                                    preferred_element_type=jnp.float32)


def _conv1_stats_kernel(x_ref, w_ref, y_ref, ssum_ref, ssq_ref, acc_ref,
                        *, S, Ho, Wo):
    """conv1 (3x3, stride S via phases) for one image + per-channel sum/sumsq."""
    n = pl.program_id(0)

    @pl.when(n == 0)
    def _init():
        ssum_ref[...] = jnp.zeros_like(ssum_ref)
        ssq_ref[...] = jnp.zeros_like(ssq_ref)

    def tap(ky, kx):
        p = (ky % S) * S + (kx % S)
        iy, jx = ky // S, kx // S
        return x_ref[p, iy:iy + Ho, jx:jx + Wo, :]

    _accumulate_3x3(tap, w_ref, acc_ref)
    y = acc_ref[...]                                       # (Ho*Wo, Cpo) f32
    y_ref[...] = y.reshape(1, Ho, Wo, y.shape[-1])
    ssum_ref[...] += jnp.sum(y, axis=0, keepdims=True)
    ssq_ref[...] += jnp.sum(y * y, axis=0, keepdims=True)


def _bn1_relu_conv2_stats_kernel(y1_ref, s1_ref, q1_ref, g1_ref, beta1_ref,
                                 w2_ref, y2_ref, ssum_ref, ssq_ref,
                                 pad_ref, acc_ref, *, Ho, Wo, inv_m):
    """BN1 (batch stats) + ReLU applied in VMEM, then conv2 (3x3, stride 1)
    via a padded VMEM scratch, plus per-channel sum/sumsq of conv2 output."""
    n = pl.program_id(0)

    @pl.when(n == 0)
    def _init():
        ssum_ref[...] = jnp.zeros_like(ssum_ref)
        ssq_ref[...] = jnp.zeros_like(ssq_ref)
        pad_ref[...] = jnp.zeros_like(pad_ref)             # border stays zero

    cpo = acc_ref.shape[-1]
    mean = s1_ref[...] * inv_m                             # (1, Cpo)
    var = q1_ref[...] * inv_m - mean * mean
    scale = (g1_ref[...] * jax.lax.rsqrt(var + EPS)).reshape(1, 1, cpo)
    shift = beta1_ref[...].reshape(1, 1, cpo) - mean.reshape(1, 1, cpo) * scale

    y1n = jnp.maximum(y1_ref[0] * scale + shift, 0.0)      # (Ho, Wo, Cpo) f32
    pad_ref[1:Ho + 1, 1:Wo + 1, :] = y1n.astype(pad_ref.dtype)

    def tap(ky, kx):
        return pad_ref[ky:ky + Ho, kx:kx + Wo, :]

    _accumulate_3x3(tap, w2_ref, acc_ref)
    y2 = acc_ref[...]
    y2_ref[...] = y2.reshape(1, Ho, Wo, cpo)
    ssum_ref[...] += jnp.sum(y2, axis=0, keepdims=True)
    ssq_ref[...] += jnp.sum(y2 * y2, axis=0, keepdims=True)


def _bn2_add_relu_kernel(y2_ref, s2_ref, q2_ref, g2_ref, beta2_ref,
                         res_ref, out_ref, *, inv_m):
    """BN2 + identity residual add + ReLU (row tile)."""
    mean = s2_ref[...] * inv_m
    var = q2_ref[...] * inv_m - mean * mean
    scale = g2_ref[...] * jax.lax.rsqrt(var + EPS)
    shift = beta2_ref[...] - mean * scale
    y = y2_ref[...] * scale + shift
    out_ref[...] = jnp.maximum(y + res_ref[...].astype(jnp.float32), 0.0)


def _bn2_down_add_relu_kernel(y2_ref, s2_ref, q2_ref, g2_ref, beta2_ref,
                              xres_ref, wd_ref, bd_ref, out_ref, *, inv_m):
    """BN2 + fused 1x1 downsample residual (bf16 GEMM + bias) + ReLU (row tile)."""
    mean = s2_ref[...] * inv_m
    var = q2_ref[...] * inv_m - mean * mean
    scale = g2_ref[...] * jax.lax.rsqrt(var + EPS)
    shift = beta2_ref[...] - mean * scale
    y = y2_ref[...] * scale + shift
    res = jnp.dot(xres_ref[...], wd_ref[...],
                  preferred_element_type=jnp.float32) + bd_ref[...]
    out_ref[...] = jnp.maximum(y + res, 0.0)


# ---------------------------------------------------------------------------
# ResBlock forward
# ---------------------------------------------------------------------------
@functools.partial(jax.jit, static_argnums=(2,))
def resblock_forward(x_nchw, params, stride):
    N, Cin, H, W = x_nchw.shape
    Cout = params["w1"].shape[0]
    Cpi, Cpo = _round_up(Cin, LANE), _round_up(Cout, LANE)
    S = stride
    Ho = (H + 2 - 3) // S + 1
    Wo = (W + 2 - 3) // S + 1
    M = N * Ho * Wo
    inv_m = 1.0 / float(M)

    x = jnp.transpose(x_nchw, (0, 2, 3, 1))                # NHWC f32
    x = _pad_to(x, (N, H, W, Cpi))                         # lane-pad channels
    x_ph, Hs, Ws = _phase_decompose(x, S, 1)               # (N*S*S, Hs, Ws, Cpi) bf16

    # weights reorganized to (tap, Cin_p, Cout_p) bf16; conv biases b1/b2 dropped
    # (a constant per-channel bias before train-mode BN cancels exactly).
    w1m = _pad_to(jnp.transpose(params["w1"], (2, 3, 1, 0)).reshape(9, Cin, Cout),
                  (9, Cpi, Cpo)).astype(jnp.bfloat16)
    w2m = _pad_to(jnp.transpose(params["w2"], (2, 3, 1, 0)).reshape(9, Cout, Cout),
                  (9, Cpo, Cpo)).astype(jnp.bfloat16)
    g1 = _pad_to(params["g1"], (Cpo,)).reshape(1, Cpo)
    be1 = _pad_to(params["beta1"], (Cpo,)).reshape(1, Cpo)
    g2 = _pad_to(params["g2"], (Cpo,)).reshape(1, Cpo)
    be2 = _pad_to(params["beta2"], (Cpo,)).reshape(1, Cpo)

    # ---- kernel A: conv1 (shifted windows, bf16 MXU) + BN1 sum/sumsq -------
    y1_raw, s1, q1 = pl.pallas_call(
        functools.partial(_conv1_stats_kernel, S=S, Ho=Ho, Wo=Wo),
        grid=(N,),
        in_specs=[
            pl.BlockSpec((S * S, Hs, Ws, Cpi), lambda n: (n, 0, 0, 0)),
            pl.BlockSpec((9, Cpi, Cpo), lambda n: (0, 0, 0)),
        ],
        out_specs=(
            pl.BlockSpec((1, Ho, Wo, Cpo), lambda n: (n, 0, 0, 0)),
            pl.BlockSpec((1, Cpo), lambda n: (0, 0)),      # grid-resident accumulators
            pl.BlockSpec((1, Cpo), lambda n: (0, 0)),
        ),
        out_shape=(
            jax.ShapeDtypeStruct((N, Ho, Wo, Cpo), jnp.float32),
            jax.ShapeDtypeStruct((1, Cpo), jnp.float32),
            jax.ShapeDtypeStruct((1, Cpo), jnp.float32),
        ),
        scratch_shapes=[pltpu.VMEM((Ho * Wo, Cpo), jnp.float32)],
        compiler_params=pltpu.CompilerParams(
            dimension_semantics=("arbitrary",),            # stats reduce across grid
            vmem_limit_bytes=VMEM_LIMIT),
    )(x_ph, w1m)

    # ---- kernel B: BN1+ReLU in VMEM, conv2 (stride 1) + BN2 sum/sumsq ------
    y2_raw, s2, q2 = pl.pallas_call(
        functools.partial(_bn1_relu_conv2_stats_kernel, Ho=Ho, Wo=Wo, inv_m=inv_m),
        grid=(N,),
        in_specs=[
            pl.BlockSpec((1, Ho, Wo, Cpo), lambda n: (n, 0, 0, 0)),
            pl.BlockSpec((1, Cpo), lambda n: (0, 0)),
            pl.BlockSpec((1, Cpo), lambda n: (0, 0)),
            pl.BlockSpec((1, Cpo), lambda n: (0, 0)),
            pl.BlockSpec((1, Cpo), lambda n: (0, 0)),
            pl.BlockSpec((9, Cpo, Cpo), lambda n: (0, 0, 0)),
        ],
        out_specs=(
            pl.BlockSpec((1, Ho, Wo, Cpo), lambda n: (n, 0, 0, 0)),
            pl.BlockSpec((1, Cpo), lambda n: (0, 0)),
            pl.BlockSpec((1, Cpo), lambda n: (0, 0)),
        ),
        out_shape=(
            jax.ShapeDtypeStruct((N, Ho, Wo, Cpo), jnp.float32),
            jax.ShapeDtypeStruct((1, Cpo), jnp.float32),
            jax.ShapeDtypeStruct((1, Cpo), jnp.float32),
        ),
        scratch_shapes=[
            pltpu.VMEM((Ho + 2, Wo + 2, Cpo), jnp.bfloat16),   # padded normalized y1
            pltpu.VMEM((Ho * Wo, Cpo), jnp.float32),           # conv2 accumulator
        ],
        compiler_params=pltpu.CompilerParams(
            dimension_semantics=("arbitrary",),
            vmem_limit_bytes=VMEM_LIMIT),
    )(y1_raw, s1, q1, g1, be1, w2m)

    # ---- kernel C: BN2 + residual (+ fused 1x1 downsample) + ReLU ----------
    y2_flat = y2_raw.reshape(M, Cpo)
    TM, Mp = _pick_row_tile(M)
    if Mp != M:
        y2_flat = jnp.pad(y2_flat, ((0, Mp - M), (0, 0)))

    need_down = (stride != 1) or (Cin != Cout)
    if need_down:
        xres = x[:, :S * Ho:S, :S * Wo:S, :].reshape(M, Cpi).astype(jnp.bfloat16)
        if Mp != M:
            xres = jnp.pad(xres, ((0, Mp - M), (0, 0)))
        wdm = _pad_to(params["wd"][:, :, 0, 0].T, (Cpi, Cpo)).astype(jnp.bfloat16)
        bd = _pad_to(params["bd"], (Cpo,)).reshape(1, Cpo)
        out_flat = pl.pallas_call(
            functools.partial(_bn2_down_add_relu_kernel, inv_m=inv_m),
            grid=(Mp // TM,),
            in_specs=[
                pl.BlockSpec((TM, Cpo), lambda i: (i, 0)),
                pl.BlockSpec((1, Cpo), lambda i: (0, 0)),
                pl.BlockSpec((1, Cpo), lambda i: (0, 0)),
                pl.BlockSpec((1, Cpo), lambda i: (0, 0)),
                pl.BlockSpec((1, Cpo), lambda i: (0, 0)),
                pl.BlockSpec((TM, Cpi), lambda i: (i, 0)),
                pl.BlockSpec((Cpi, Cpo), lambda i: (0, 0)),
                pl.BlockSpec((1, Cpo), lambda i: (0, 0)),
            ],
            out_specs=pl.BlockSpec((TM, Cpo), lambda i: (i, 0)),
            out_shape=jax.ShapeDtypeStruct((Mp, Cpo), jnp.float32),
            compiler_params=pltpu.CompilerParams(
                dimension_semantics=("parallel",),         # megacore over row tiles
                vmem_limit_bytes=VMEM_LIMIT),
        )(y2_flat, s2, q2, g2, be2, xres, wdm, bd)
    else:
        res = x.reshape(M, Cpo)                            # identity residual, f32
        if Mp != M:
            res = jnp.pad(res, ((0, Mp - M), (0, 0)))
        out_flat = pl.pallas_call(
            functools.partial(_bn2_add_relu_kernel, inv_m=inv_m),
            grid=(Mp // TM,),
            in_specs=[
                pl.BlockSpec((TM, Cpo), lambda i: (i, 0)),
                pl.BlockSpec((1, Cpo), lambda i: (0, 0)),
                pl.BlockSpec((1, Cpo), lambda i: (0, 0)),
                pl.BlockSpec((1, Cpo), lambda i: (0, 0)),
                pl.BlockSpec((1, Cpo), lambda i: (0, 0)),
                pl.BlockSpec((TM, Cpo), lambda i: (i, 0)),
            ],
            out_specs=pl.BlockSpec((TM, Cpo), lambda i: (i, 0)),
            out_shape=jax.ShapeDtypeStruct((Mp, Cpo), jnp.float32),
            compiler_params=pltpu.CompilerParams(
                dimension_semantics=("parallel",),
                vmem_limit_bytes=VMEM_LIMIT),
        )(y2_flat, s2, q2, g2, be2, res)

    out = out_flat[:M, :Cout].reshape(N, Ho, Wo, Cout)
    return jnp.transpose(out, (0, 3, 1, 2))                # back to NCHW


# ---------------------------------------------------------------------------
# Pure-JAX references (correctness check only)
# ---------------------------------------------------------------------------
def _ref_conv(x, w, b, stride, pad, mixed):
    if mixed:
        x = x.astype(jnp.bfloat16)
        w = w.astype(jnp.bfloat16)
    y = jax.lax.conv_general_dilated(
        x, w, (stride, stride), [(pad, pad), (pad, pad)],
        dimension_numbers=("NCHW", "OIHW", "NCHW"),
        preferred_element_type=jnp.float32)
    if b is not None:
        y = y + b[None, :, None, None].astype(jnp.float32)
    return y


def _ref_bn_train(y, g, b):
    m = y.mean(axis=(0, 2, 3), keepdims=True)
    v = ((y - m) ** 2).mean(axis=(0, 2, 3), keepdims=True)
    return (y - m) * jax.lax.rsqrt(v + EPS) * g[None, :, None, None] + b[None, :, None, None]


def resblock_reference(x, params, stride, mixed=False):
    """mixed=True mirrors the kernel's bf16-operand / f32-accumulate arithmetic."""
    Cin, Cout = x.shape[1], params["w1"].shape[0]
    y = _ref_conv(x, params["w1"], params["b1"], stride, 1, mixed)
    y = jnp.maximum(_ref_bn_train(y, params["g1"], params["beta1"]), 0.0)
    y = _ref_conv(y, params["w2"], params["b2"], 1, 1, mixed)
    y = _ref_bn_train(y, params["g2"], params["beta2"])
    if stride != 1 or Cin != Cout:
        res = _ref_conv(x, params["wd"], params["bd"], stride, 0, mixed)
    else:
        res = x
    return jnp.maximum(y + res, 0.0)


# ---------------------------------------------------------------------------
def make_params(key, cin, cout, need_downsample):
    ks = jax.random.split(key, 8)
    p = {
        "w1": 0.1 * jax.random.normal(ks[0], (cout, cin, 3, 3), jnp.float32),
        "b1": 0.1 * jax.random.normal(ks[1], (cout,), jnp.float32),
        "g1": 1.0 + 0.1 * jax.random.normal(ks[2], (cout,), jnp.float32),
        "beta1": 0.1 * jax.random.normal(ks[3], (cout,), jnp.float32),
        "w2": 0.1 * jax.random.normal(ks[4], (cout, cout, 3, 3), jnp.float32),
        "b2": 0.1 * jax.random.normal(ks[5], (cout,), jnp.float32),
        "g2": 1.0 + 0.1 * jax.random.normal(ks[6], (cout,), jnp.float32),
        "beta2": 0.1 * jax.random.normal(ks[7], (cout,), jnp.float32),
    }
    if need_downsample:
        kd = jax.random.split(ks[0], 2)
        p["wd"] = 0.1 * jax.random.normal(kd[0], (cout, cin, 1, 1), jnp.float32)
        p["bd"] = 0.1 * jax.random.normal(kd[1], (cout,), jnp.float32)
    return p


if __name__ == "__main__":
    key = jax.random.PRNGKey(0)
    kx, kp1, kp2 = jax.random.split(key, 3)

    # Case 1: downsample path (stride=2, channel change)
    N, Cin, H, W = 2, 4, 16, 16
    Cout, stride = 8, 2
    x = jax.random.normal(kx, (N, Cin, H, W), jnp.float32)
    params = make_params(kp1, Cin, Cout, need_downsample=True)
    out = jax.block_until_ready(resblock_forward(x, params, stride))
    assert out.shape == (N, Cout, H // stride, W // stride)
    ref_mixed = resblock_reference(x, params, stride, mixed=True)
    ref_f32 = resblock_reference(x, params, stride, mixed=False)
    assert jnp.allclose(out, ref_mixed, rtol=1e-2, atol=1e-2), "mismatch (downsample path)"
    assert float(jnp.max(jnp.abs(out - ref_f32))) < 0.1, "f32 sanity mismatch (downsample path)"

    # Case 2: identity residual path (stride=1, same channels)
    params_id = make_params(kp2, Cin, Cin, need_downsample=False)
    out_id = jax.block_until_ready(resblock_forward(x, params_id, 1))
    assert out_id.shape == (N, Cin, H, W)
    ref_mixed_id = resblock_reference(x, params_id, 1, mixed=True)
    ref_f32_id = resblock_reference(x, params_id, 1, mixed=False)
    assert jnp.allclose(out_id, ref_mixed_id, rtol=1e-2, atol=1e-2), "mismatch (identity path)"
    assert float(jnp.max(jnp.abs(out_id - ref_f32_id))) < 0.1, "f32 sanity mismatch (identity path)"

    print("KERNEL_OK")
</pallas_src>

<mosaic_0001>
module attributes {stable_mosaic.version = 11 : i64} {
  func.func @_conv1_stats_kernel(%arg0: i32, %arg1: memref<4x9x9x128xbf16, #tpu.memory_space<vmem>>, %arg2: memref<9x128x128xbf16, #tpu.memory_space<vmem>>, %arg3: memref<1x8x8x128xf32, #tpu.memory_space<vmem>>, %arg4: memref<1x128xf32, #tpu.memory_space<vmem>>, %arg5: memref<1x128xf32, #tpu.memory_space<vmem>>, %arg6: memref<64x128xf32, #tpu.memory_space<vmem>>) attributes {dimension_semantics = [#tpu.dimension_semantics<arbitrary>], iteration_bounds = array<i64: 2>, scalar_prefetch = 0 : i64, scratch_operands = 1 : i64, tpu.core_type = #tpu.core_type<tc>, window_params = [{transform_indices = @transform_0, window_bounds = array<i64: 4, 9, 9, 128>}, {pipeline_mode = #tpu.pipeline_mode<synchronous>, transform_indices = @transform_1, window_bounds = array<i64: 9, 128, 128>}, {transform_indices = @transform_2, window_bounds = array<i64: 1, 8, 8, 128>}, {pipeline_mode = #tpu.pipeline_mode<synchronous>, transform_indices = @transform_3, window_bounds = array<i64: 1, 128>}, {pipeline_mode = #tpu.pipeline_mode<synchronous>, transform_indices = @transform_4, window_bounds = array<i64: 1, 128>}]} {
    %c0_i32 = arith.constant 0 : i32
    %0 = arith.cmpi eq, %arg0, %c0_i32 : i32
    %1 = arith.extui %0 : i1 to i32
    %c0_i32_0 = arith.constant 0 : i32
    %2 = arith.cmpi ne, %1, %c0_i32_0 : i32
    scf.if %2 {
      %cst_118 = arith.constant 0.000000e+00 : f32
      %100 = vector.broadcast %cst_118 : f32 to vector<1x128xf32>
      %c0_119 = arith.constant 0 : index
      %c0_120 = arith.constant 0 : index
      %101 = vector.load %arg4[%c0_119, %c0_120] : memref<1x128xf32, #tpu.memory_space<vmem>>, vector<1x128xf32>
      tpu.vector_store %arg4[%c0_119, %c0_120], %100 {strides = array<i32>} : memref<1x128xf32, #tpu.memory_space<vmem>>, vector<1x128xf32>,
      %cst_121 = arith.constant 0.000000e+00 : f32
      %102 = vector.broadcast %cst_121 : f32 to vector<1x128xf32>
      %c0_122 = arith.constant 0 : index
      %c0_123 = arith.constant 0 : index
      %103 = vector.load %arg5[%c0_122, %c0_123] : memref<1x128xf32, #tpu.memory_space<vmem>>, vector<1x128xf32>
      tpu.vector_store %arg5[%c0_122, %c0_123], %102 {strides = array<i32>} : memref<1x128xf32, #tpu.memory_space<vmem>>, vector<1x128xf32>,
    } else {
    }
    %cst = arith.constant 0.000000e+00 : f32
    %3 = vector.broadcast %cst : f32 to vector<64x128xf32>
    %c0 = arith.constant 0 : index
    %c0_1 = arith.constant 0 : index
    %4 = vector.load %arg6[%c0, %c0_1] : memref<64x128xf32, #tpu.memory_space<vmem>>, vector<64x128xf32>
    tpu.vector_store %arg6[%c0, %c0_1], %3 {strides = array<i32>} : memref<64x128xf32, #tpu.memory_space<vmem>>, vector<64x128xf32>,
    %c0_2 = arith.constant 0 : index
    %c0_3 = arith.constant 0 : index
    %c0_4 = arith.constant 0 : index
    %c0_5 = arith.constant 0 : index
    %5 = vector.load %arg1[%c0_2, %c0_3, %c0_4, %c0_5] : memref<4x9x9x128xbf16, #tpu.memory_space<vmem>>, vector<1x8x8x128xbf16>
    %6 = vector.shape_cast %5 : vector<1x8x8x128xbf16> to vector<8x8x128xbf16>
    %c0_6 = arith.constant 0 : index
    %c0_7 = arith.constant 0 : index
    %7 = vector.load %arg6[%c0_6, %c0_7] : memref<64x128xf32, #tpu.memory_space<vmem>>, vector<64x128xf32>
    %8 = vector.shape_cast %6 : vector<8x8x128xbf16> to vector<64x128xbf16>
    %c0_8 = arith.constant 0 : index
    %c0_9 = arith.constant 0 : index
    %c0_10 = arith.constant 0 : index
    %9 = vector.load %arg2[%c0_8, %c0_9, %c0_10] : memref<9x128x128xbf16, #tpu.memory_space<vmem>>, vector<1x128x128xbf16>
    %10 = vector.shape_cast %9 : vector<1x128x128xbf16> to vector<128x128xbf16>
    %cst_11 = arith.constant dense<0.000000e+00> : vector<64x128xf32>
    %11 = tpu.matmul %8, %10, %cst_11 {dimension_numbers = #tpu.dot_dimension_numbers<[1], [0], [0], [1], [0, 0, 1, 1], [], []>} : vector<64x128xbf16>, vector<128x128xbf16>, vector<64x128xf32> -> vector<64x128xf32>
    %12 = arith.addf %7, %11 : vector<64x128xf32>
    %c0_12 = arith.constant 0 : index
    %c0_13 = arith.constant 0 : index
    %13 = vector.load %arg6[%c0_12, %c0_13] : memref<64x128xf32, #tpu.memory_space<vmem>>, vector<64x128xf32>
    tpu.vector_store %arg6[%c0_12, %c0_13], %12 {strides = array<i32>} : memref<64x128xf32, #tpu.memory_space<vmem>>, vector<64x128xf32>,
    %c1 = arith.constant 1 : index
    %c0_14 = arith.constant 0 : index
    %c0_15 = arith.constant 0 : index
    %c0_16 = arith.constant 0 : index
    %14 = vector.load %arg1[%c1, %c0_14, %c0_15, %c0_16] : memref<4x9x9x128xbf16, #tpu.memory_space<vmem>>, vector<1x8x8x128xbf16>
    %15 = vector.shape_cast %14 : vector<1x8x8x128xbf16> to vector<8x8x128xbf16>
    %c0_17 = arith.constant 0 : index
    %c0_18 = arith.constant 0 : index
    %16 = vector.load %arg6[%c0_17, %c0_18] : memref<64x128xf32, #tpu.memory_space<vmem>>, vector<64x128xf32>
    %17 = vector.shape_cast %15 : vector<8x8x128xbf16> to vector<64x128xbf16>
    %c1_19 = arith.constant 1 : index
    %c0_20 = arith.constant 0 : index
    %c0_21 = arith.constant 0 : index
    %18 = vector.load %arg2[%c1_19, %c0_20, %c0_21] : memref<9x128x128xbf16, #tpu.memory_space<vmem>>, vector<1x128x128xbf16>
    %19 = vector.shape_cast %18 : vector<1x128x128xbf16> to vector<128x128xbf16>
    %cst_22 = arith.constant dense<0.000000e+00> : vector<64x128xf32>
    %20 = tpu.matmul %17, %19, %cst_22 {dimension_numbers = #tpu.dot_dimension_numbers<[1], [0], [0], [1], [0, 0, 1, 1], [], []>} : vector<64x128xbf16>, vector<128x128xbf16>, vector<64x128xf32> -> vector<64x128xf32>
    %21 = arith.addf %16, %20 : vector<64x128xf32>
    %c0_23 = arith.constant 0 : index
    %c0_24 = arith.constant 0 : index
    %22 = vector.load %arg6[%c0_23, %c0_24] : memref<64x128xf32, #tpu.memory_space<vmem>>, vector<64x128xf32>
    tpu.vector_store %arg6[%c0_23, %c0_24], %21 {strides = array<i32>} : memref<64x128xf32, #tpu.memory_space<vmem>>, vector<64x128xf32>,
    %c0_25 = arith.constant 0 : index
    %c0_26 = arith.constant 0 : index
    %c1_27 = arith.constant 1 : index
    %c0_28 = arith.constant 0 : index
    %23 = vector.load %arg1[%c0_25, %c0_26, %c1_27, %c0_28] : memref<4x9x9x128xbf16, #tpu.memory_space<vmem>>, vector<1x8x8x128xbf16>
    %24 = vector.shape_cast %23 : vector<1x8x8x128xbf16> to vector<8x8x128xbf16>
    %c0_29 = arith.constant 0 : index
    %c0_30 = arith.constant 0 : index
    %25 = vector.load %arg6[%c0_29, %c0_30] : memref<64x128xf32, #tpu.memory_space<vmem>>, vector<64x128xf32>
    %26 = vector.shape_cast %24 : vector<8x8x128xbf16> to vector<64x128xbf16>
    %c2 = arith.constant 2 : index
    %c0_31 = arith.constant 0 : index
    %c0_32 = arith.constant 0 : index
    %27 = vector.load %arg2[%c2, %c0_31, %c0_32] : memref<9x128x128xbf16, #tpu.memory_space<vmem>>, vector<1x128x128xbf16>
    %28 = vector.shape_cast %27 : vector<1x128x128xbf16> to vector<128x128xbf16>
    %cst_33 = arith.constant dense<0.000000e+00> : vector<64x128xf32>
    %29 = tpu.matmul %26, %28, %cst_33 {dimension_numbers = #tpu.dot_dimension_numbers<[1], [0], [0], [1], [0, 0, 1, 1], [], []>} : vector<64x128xbf16>, vector<128x128xbf16>, vector<64x128xf32> -> vector<64x128xf32>
    %30 = arith.addf %25, %29 : vector<64x128xf32>
    %c0_34 = arith.constant 0 : index
    %c0_35 = arith.constant 0 : index
    %31 = vector.load %arg6[%c0_34, %c0_35] : memref<64x128xf32, #tpu.memory_space<vmem>>, vector<64x128xf32>
    tpu.vector_store %arg6[%c0_34, %c0_35], %30 {strides = array<i32>} : memref<64x128xf32, #tpu.memory_space<vmem>>, vector<64x128xf32>,
    %c2_36 = arith.constant 2 : index
    %c0_37 = arith.constant 0 : index
    %c0_38 = arith.constant 0 : index
    %c0_39 = arith.constant 0 : index
    %32 = vector.load %arg1[%c2_36, %c0_37, %c0_38, %c0_39] : memref<4x9x9x128xbf16, #tpu.memory_space<vmem>>, vector<1x8x8x128xbf16>
    %33 = vector.shape_cast %32 : vector<1x8x8x128xbf16> to vector<8x8x128xbf16>
    %c0_40 = arith.constant 0 : index
    %c0_41 = arith.constant 0 : index
    %34 = vector.load %arg6[%c0_40, %c0_41] : memref<64x128xf32, #tpu.memory_space<vmem>>, vector<64x128xf32>
    %35 = vector.shape_cast %33 : vector<8x8x128xbf16> to vector<64x128xbf16>
    %c3 = arith.constant 3 : index
    %c0_42 = arith.constant 0 : index
    %c0_43 = arith.constant 0 : index
    %36 = vector.load %arg2[%c3, %c0_42, %c0_43] : memref<9x128x128xbf16, #tpu.memory_space<vmem>>, vector<1x128x128xbf16>
    %37 = vector.shape_cast %36 : vector<1x128x128xbf16> to vector<128x128xbf16>
    %cst_44 = arith.constant dense<0.000000e+00> : vector<64x128xf32>
    %38 = tpu.matmul %35, %37, %cst_44 {dimension_numbers = #tpu.dot_dimension_numbers<[1], [0], [0], [1], [0, 0, 1, 1], [], []>} : vector<64x128xbf16>, vector<128x128xbf16>, vector<64x128xf32> -> vector<64x128xf32>
    %39 = arith.addf %34, %38 : vector<64x128xf32>
    %c0_45 = arith.constant 0 : index
    %c0_46 = arith.constant 0 : index
    %40 = vector.load %arg6[%c0_45, %c0_46] : memref<64x128xf32, #tpu.memory_space<vmem>>, vector<64x128xf32>
    tpu.vector_store %arg6[%c0_45, %c0_46], %39 {strides = array<i32>} : memref<64x128xf32, #tpu.memory_space<vmem>>, vector<64x128xf32>,
    %c3_47 = arith.constant 3 : index
    %c0_48 = arith.constant 0 : index
    %c0_49 = arith.constant 0 : index
    %c0_50 = arith.constant 0 : index
    %41 = vector.load %arg1[%c3_47, %c0_48, %c0_49, %c0_50] : memref<4x9x9x128xbf16, #tpu.memory_space<vmem>>, vector<1x8x8x128xbf16>
    %42 = vector.shape_cast %41 : vector<1x8x8x128xbf16> to vector<8x8x128xbf16>
    %c0_51 = arith.constant 0 : index
    %c0_52 = arith.constant 0 : index
    %43 = vector.load %arg6[%c0_51, %c0_52] : memref<64x128xf32, #tpu.memory_space<vmem>>, vector<64x128xf32>
    %44 = vector.shape_cast %42 : vector<8x8x128xbf16> to vector<64x128xbf16>
    %c4 = arith.constant 4 : index
    %c0_53 = arith.constant 0 : index
    %c0_54 = arith.constant 0 : index
    %45 = vector.load %arg2[%c4, %c0_53, %c0_54] : memref<9x128x128xbf16, #tpu.memory_space<vmem>>, vector<1x128x128xbf16>
    %46 = vector.shape_cast %45 : vector<1x128x128xbf16> to vector<128x128xbf16>
    %cst_55 = arith.constant dense<0.000000e+00> : vector<64x128xf32>
    %47 = tpu.matmul %44, %46, %cst_55 {dimension_numbers = #tpu.dot_dimension_numbers<[1], [0], [0], [1], [0, 0, 1, 1], [], []>} : vector<64x128xbf16>, vector<128x128xbf16>, vector<64x128xf32> -> vector<64x128xf32>
    %48 = arith.addf %43, %47 : vector<64x128xf32>
    %c0_56 = arith.constant 0 : index
    %c0_57 = arith.constant 0 : index
    %49 = vector.load %arg6[%c0_56, %c0_57] : memref<64x128xf32, #tpu.memory_space<vmem>>, vector<64x128xf32>
    tpu.vector_store %arg6[%c0_56, %c0_57], %48 {strides = array<i32>} : memref<64x128xf32, #tpu.memory_space<vmem>>, vector<64x128xf32>,
    %c2_58 = arith.constant 2 : index
    %c0_59 = arith.constant 0 : index
    %c1_60 = arith.constant 1 : index
    %c0_61 = arith.constant 0 : index
    %50 = vector.load %arg1[%c2_58, %c0_59, %c1_60, %c0_61] : memref<4x9x9x128xbf16, #tpu.memory_space<vmem>>, vector<1x8x8x128xbf16>
    %51 = vector.shape_cast %50 : vector<1x8x8x128xbf16> to vector<8x8x128xbf16>
    %c0_62 = arith.constant 0 : index
    %c0_63 = arith.constant 0 : index
    %52 = vector.load %arg6[%c0_62, %c0_63] : memref<64x128xf32, #tpu.memory_space<vmem>>, vector<64x128xf32>
    %53 = vector.shape_cast %51 : vector<8x8x128xbf16> to vector<64x128xbf16>
    %c5 = arith.constant 5 : index
    %c0_64 = arith.constant 0 : index
    %c0_65 = arith.constant 0 : index
    %54 = vector.load %arg2[%c5, %c0_64, %c0_65] : memref<9x128x128xbf16, #tpu.memory_space<vmem>>, vector<1x128x128xbf16>
    %55 = vector.shape_cast %54 : vector<1x128x128xbf16> to vector<128x128xbf16>
    %cst_66 = arith.constant dense<0.000000e+00> : vector<64x128xf32>
    %56 = tpu.matmul %53, %55, %cst_66 {dimension_numbers = #tpu.dot_dimension_numbers<[1], [0], [0], [1], [0, 0, 1, 1], [], []>} : vector<64x128xbf16>, vector<128x128xbf16>, vector<64x128xf32> -> vector<64x128xf32>
    %57 = arith.addf %52, %56 : vector<64x128xf32>
    %c0_67 = arith.constant 0 : index
    %c0_68 = arith.constant 0 : index
    %58 = vector.load %arg6[%c0_67, %c0_68] : memref<64x128xf32, #tpu.memory_space<vmem>>, vector<64x128xf32>
    tpu.vector_store %arg6[%c0_67, %c0_68], %57 {strides = array<i32>} : memref<64x128xf32, #tpu.memory_space<vmem>>, vector<64x128xf32>,
    %c0_69 = arith.constant 0 : index
    %c1_70 = arith.constant 1 : index
    %c0_71 = arith.constant 0 : index
    %c0_72 = arith.constant 0 : index
    %59 = vector.load %arg1[%c0_69, %c1_70, %c0_71, %c0_72] : memref<4x9x9x128xbf16, #tpu.memory_space<vmem>>, vector<1x8x8x128xbf16>
    %60 = vector.shape_cast %59 : vector<1x8x8x128xbf16> to vector<8x8x128xbf16>
    %c0_73 = arith.constant 0 : index
    %c0_74 = arith.constant 0 : index
    %61 = vector.load %arg6[%c0_73, %c0_74] : memref<64x128xf32, #tpu.memory_space<vmem>>, vector<64x128xf32>
    %62 = vector.shape_cast %60 : vector<8x8x128xbf16> to vector<64x128xbf16>
    %c6 = arith.constant 6 : index
    %c0_75 = arith.constant 0 : index
    %c0_76 = arith.constant 0 : index
    %63 = vector.load %arg2[%c6, %c0_75, %c0_76] : memref<9x128x128xbf16, #tpu.memory_space<vmem>>, vector<1x128x128xbf16>
    %64 = vector.shape_cast %63 : vector<1x128x128xbf16> to vector<128x128xbf16>
    %cst_77 = arith.constant dense<0.000000e+00> : vector<64x128xf32>
    %65 = tpu.matmul %62, %64, %cst_77 {dimension_numbers = #tpu.dot_dimension_numbers<[1], [0], [0], [1], [0, 0, 1, 1], [], []>} : vector<64x128xbf16>, vector<128x128xbf16>, vector<64x128xf32> -> vector<64x128xf32>
    %66 = arith.addf %61, %65 : vector<64x128xf32>
    %c0_78 = arith.constant 0 : index
    %c0_79 = arith.constant 0 : index
    %67 = vector.load %arg6[%c0_78, %c0_79] : memref<64x128xf32, #tpu.memory_space<vmem>>, vector<64x128xf32>
    tpu.vector_store %arg6[%c0_78, %c0_79], %66 {strides = array<i32>} : memref<64x128xf32, #tpu.memory_space<vmem>>, vector<64x128xf32>,
    %c1_80 = arith.constant 1 : index
    %c1_81 = arith.constant 1 : index
    %c0_82 = arith.constant 0 : index
    %c0_83 = arith.constant 0 : index
    %68 = vector.load %arg1[%c1_80, %c1_81, %c0_82, %c0_83] : memref<4x9x9x128xbf16, #tpu.memory_space<vmem>>, vector<1x8x8x128xbf16>
    %69 = vector.shape_cast %68 : vector<1x8x8x128xbf16> to vector<8x8x128xbf16>
    %c0_84 = arith.constant 0 : index
    %c0_85 = arith.constant 0 : index
    %70 = vector.load %arg6[%c0_84, %c0_85] : memref<64x128xf32, #tpu.memory_space<vmem>>, vector<64x128xf32>
    %71 = vector.shape_cast %69 : vector<8x8x128xbf16> to vector<64x128xbf16>
    %c7 = arith.constant 7 : index
    %c0_86 = arith.constant 0 : index
    %c0_87 = arith.constant 0 : index
    %72 = vector.load %arg2[%c7, %c0_86, %c0_87] : memref<9x128x128xbf16, #tpu.memory_space<vmem>>, vector<1x128x128xbf16>
    %73 = vector.shape_cast %72 : vector<1x128x128xbf16> to vector<128x128xbf16>
    %cst_88 = arith.constant dense<0.000000e+00> : vector<64x128xf32>
    %74 = tpu.matmul %71, %73, %cst_88 {dimension_numbers = #tpu.dot_dimension_numbers<[1], [0], [0], [1], [0, 0, 1, 1], [], []>} : vector<64x128xbf16>, vector<128x128xbf16>, vector<64x128xf32> -> vector<64x128xf32>
    %75 = arith.addf %70, %74 : vector<64x128xf32>
    %c0_89 = arith.constant 0 : index
    %c0_90 = arith.constant 0 : index
    %76 = vector.load %arg6[%c0_89, %c0_90] : memref<64x128xf32, #tpu.memory_space<vmem>>, vector<64x128xf32>
    tpu.vector_store %arg6[%c0_89, %c0_90], %75 {strides = array<i32>} : memref<64x128xf32, #tpu.memory_space<vmem>>, vector<64x128xf32>,
    %c0_91 = arith.constant 0 : index
    %c1_92 = arith.constant 1 : index
    %c1_93 = arith.constant 1 : index
    %c0_94 = arith.constant 0 : index
    %77 = vector.load %arg1[%c0_91, %c1_92, %c1_93, %c0_94] : memref<4x9x9x128xbf16, #tpu.memory_space<vmem>>, vector<1x8x8x128xbf16>
    %78 = vector.shape_cast %77 : vector<1x8x8x128xbf16> to vector<8x8x128xbf16>
    %c0_95 = arith.constant 0 : index
    %c0_96 = arith.constant 0 : index
    %79 = vector.load %arg6[%c0_95, %c0_96] : memref<64x128xf32, #tpu.memory_space<vmem>>, vector<64x128xf32>
    %80 = vector.shape_cast %78 : vector<8x8x128xbf16> to vector<64x128xbf16>
    %c8 = arith.constant 8 : index
    %c0_97 = arith.constant 0 : index
    %c0_98 = arith.constant 0 : index
    %81 = vector.load %arg2[%c8, %c0_97, %c0_98] : memref<9x128x128xbf16, #tpu.memory_space<vmem>>, vector<1x128x128xbf16>
    %82 = vector.shape_cast %81 : vector<1x128x128xbf16> to vector<128x128xbf16>
    %cst_99 = arith.constant dense<0.000000e+00> : vector<64x128xf32>
    %83 = tpu.matmul %80, %82, %cst_99 {dimension_numbers = #tpu.dot_dimension_numbers<[1], [0], [0], [1], [0, 0, 1, 1], [], []>} : vector<64x128xbf16>, vector<128x128xbf16>, vector<64x128xf32> -> vector<64x128xf32>
    %84 = arith.addf %79, %83 : vector<64x128xf32>
    %c0_100 = arith.constant 0 : index
    %c0_101 = arith.constant 0 : index
    %85 = vector.load %arg6[%c0_100, %c0_101] : memref<64x128xf32, #tpu.memory_space<vmem>>, vector<64x128xf32>
    tpu.vector_store %arg6[%c0_100, %c0_101], %84 {strides = array<i32>} : memref<64x128xf32, #tpu.memory_space<vmem>>, vector<64x128xf32>,
    %c0_102 = arith.constant 0 : index
    %c0_103 = arith.constant 0 : index
    %86 = vector.load %arg6[%c0_102, %c0_103] : memref<64x128xf32, #tpu.memory_space<vmem>>, vector<64x128xf32>
    %87 = vector.shape_cast %86 : vector<64x128xf32> to vector<1x8x8x128xf32>
    %c0_104 = arith.constant 0 : index
    %c0_105 = arith.constant 0 : index
    %c0_106 = arith.constant 0 : index
    %c0_107 = arith.constant 0 : index
    %88 = vector.load %arg3[%c0_104, %c0_105, %c0_106, %c0_107] : memref<1x8x8x128xf32, #tpu.memory_space<vmem>>, vector<1x8x8x128xf32>
    tpu.vector_store %arg3[%c0_104, %c0_105, %c0_106, %c0_107], %87 {strides = array<i32>} : memref<1x8x8x128xf32, #tpu.memory_space<vmem>>, vector<1x8x8x128xf32>,
    %c0_108 = arith.constant 0 : index
    %c0_109 = arith.constant 0 : index
    %89 = vector.load %arg4[%c0_108, %c0_109] : memref<1x128xf32, #tpu.memory_space<vmem>>, vector<1x128xf32>
    %cst_110 = arith.constant dense<0.000000e+00> : vector<128xf32>
    %90 = vector.multi_reduction <add>, %86, %cst_110 [0] : vector<64x128xf32> to vector<128xf32>
    %91 = vector.shape_cast %90 : vector<128xf32> to vector<1x128xf32>
    %92 = arith.addf %89, %91 : vector<1x128xf32>
    %c0_111 = arith.constant 0 : index
    %c0_112 = arith.constant 0 : index
    %93 = vector.load %arg4[%c0_111, %c0_112] : memref<1x128xf32, #tpu.memory_space<vmem>>, vector<1x128xf32>
    tpu.vector_store %arg4[%c0_111, %c0_112], %92 {strides = array<i32>} : memref<1x128xf32, #tpu.memory_space<vmem>>, vector<1x128xf32>,
    %c0_113 = arith.constant 0 : index
    %c0_114 = arith.constant 0 : index
    %94 = vector.load %arg5[%c0_113, %c0_114] : memref<1x128xf32, #tpu.memory_space<vmem>>, vector<1x128xf32>
    %95 = arith.mulf %86, %86 : vector<64x128xf32>
    %cst_115 = arith.constant dense<0.000000e+00> : vector<128xf32>
    %96 = vector.multi_reduction <add>, %95, %cst_115 [0] : vector<64x128xf32> to vector<128xf32>
    %97 = vector.shape_cast %96 : vector<128xf32> to vector<1x128xf32>
    %98 = arith.addf %94, %97 : vector<1x128xf32>
    %c0_116 = arith.constant 0 : index
    %c0_117 = arith.constant 0 : index
    %99 = vector.load %arg5[%c0_116, %c0_117] : memref<1x128xf32, #tpu.memory_space<vmem>>, vector<1x128xf32>
    tpu.vector_store %arg5[%c0_116, %c0_117], %98 {strides = array<i32>} : memref<1x128xf32, #tpu.memory_space<vmem>>, vector<1x128xf32>,
    return
  }
  func.func @transform_0(%arg0: i32) -> (i32, i32, i32, i32) {
    %c0_i32 = arith.constant 0 : i32
    %c0_i32_0 = arith.constant 0 : i32
    %c0_i32_1 = arith.constant 0 : i32
    %c0_i32_2 = arith.constant 0 : i32
    return %arg0, %c0_i32, %c0_i32_0, %c0_i32_1 : i32, i32, i32, i32
  }
  func.func @transform_1(%arg0: i32) -> (i32, i32, i32) {
    %c0_i32 = arith.constant 0 : i32
    %c0_i32_0 = arith.constant 0 : i32
    %c0_i32_1 = arith.constant 0 : i32
    %c0_i32_2 = arith.constant 0 : i32
    return %c0_i32, %c0_i32_0, %c0_i32_1 : i32, i32, i32
  }
  func.func @transform_2(%arg0: i32) -> (i32, i32, i32, i32) {
    %c0_i32 = arith.constant 0 : i32
    %c0_i32_0 = arith.constant 0 : i32
    %c0_i32_1 = arith.constant 0 : i32
    %c0_i32_2 = arith.constant 0 : i32
    return %arg0, %c0_i32, %c0_i32_0, %c0_i32_1 : i32, i32, i32, i32
  }
  func.func @transform_3(%arg0: i32) -> (i32, i32) {
    %c0_i32 = arith.constant 0 : i32
    %c0_i32_0 = arith.constant 0 : i32
    %c0_i32_1 = arith.constant 0 : i32
    return %c0_i32, %c0_i32_0 : i32, i32
  }
  func.func @transform_4(%arg0: i32) -> (i32, i32) {
    %c0_i32 = arith.constant 0 : i32
    %c0_i32_0 = arith.constant 0 : i32
    %c0_i32_1 = arith.constant 0 : i32
    return %c0_i32, %c0_i32_0 : i32, i32
  }
}

module attributes {stable_mosaic.version = 11 : i64} {
  func.func @_bn1_relu_conv2_stats_kernel(%arg0: i32, %arg1: memref<1x8x8x128xf32, #tpu.memory_space<vmem>>, %arg2: memref<1x128xf32, #tpu.memory_space<vmem>>, %arg3: memref<1x128xf32, #tpu.memory_space<vmem>>, %arg4: memref<1x128xf32, #tpu.memory_space<vmem>>, %arg5: memref<1x128xf32, #tpu.memory_space<vmem>>, %arg6: memref<9x128x128xbf16, #tpu.memory_space<vmem>>, %arg7: memref<1x8x8x128xf32, #tpu.memory_space<vmem>>, %arg8: memref<1x128xf32, #tpu.memory_space<vmem>>, %arg9: memref<1x128xf32, #tpu.memory_space<vmem>>, %arg10: memref<10x10x128xbf16, #tpu.memory_space<vmem>>, %arg11: memref<64x128xf32, #tpu.memory_space<vmem>>) attributes {dimension_semantics = [#tpu.dimension_semantics<arbitrary>], iteration_bounds = array<i64: 2>, scalar_prefetch = 0 : i64, scratch_operands = 2 : i64, tpu.core_type = #tpu.core_type<tc>, window_params = [{transform_indices = @transform_0, window_bounds = array<i64: 1, 8, 8, 128>}, {pipeline_mode = #tpu.pipeline_mode<synchronous>, transform_indices = @transform_1, window_bounds = array<i64: 1, 128>}, {pipeline_mode = #tpu.pipeline_mode<synchronous>, transform_indices = @transform_2, window_bounds = array<i64: 1, 128>}, {pipeline_mode = #tpu.pipeline_mode<synchronous>, transform_indices = @transform_3, window_bounds = array<i64: 1, 128>}, {pipeline_mode = #tpu.pipeline_mode<synchronous>, transform_indices = @transform_4, window_bounds = array<i64: 1, 128>}, {pipeline_mode = #tpu.pipeline_mode<synchronous>, transform_indices = @transform_5, window_bounds = array<i64: 9, 128, 128>}, {transform_indices = @transform_6, window_bounds = array<i64: 1, 8, 8, 128>}, {pipeline_mode = #tpu.pipeline_mode<synchronous>, transform_indices = @transform_7, window_bounds = array<i64: 1, 128>}, {pipeline_mode = #tpu.pipeline_mode<synchronous>, transform_indices = @transform_8, window_bounds = array<i64: 1, 128>}]} {
    %c0_i32 = arith.constant 0 : i32
    %0 = arith.cmpi eq, %arg0, %c0_i32 : i32
    %1 = arith.extui %0 : i1 to i32
    %c0_i32_0 = arith.constant 0 : i32
    %2 = arith.cmpi ne, %1, %c0_i32_0 : i32
    scf.if %2 {
      %cst_128 = arith.constant 0.000000e+00 : f32
      %120 = vector.broadcast %cst_128 : f32 to vector<1x128xf32>
      %c0_129 = arith.constant 0 : index
      %c0_130 = arith.constant 0 : index
      %121 = vector.load %arg8[%c0_129, %c0_130] : memref<1x128xf32, #tpu.memory_space<vmem>>, vector<1x128xf32>
      tpu.vector_store %arg8[%c0_129, %c0_130], %120 {strides = array<i32>} : memref<1x128xf32, #tpu.memory_space<vmem>>, vector<1x128xf32>,
      %cst_131 = arith.constant 0.000000e+00 : f32
      %122 = vector.broadcast %cst_131 : f32 to vector<1x128xf32>
      %c0_132 = arith.constant 0 : index
      %c0_133 = arith.constant 0 : index
      %123 = vector.load %arg9[%c0_132, %c0_133] : memref<1x128xf32, #tpu.memory_space<vmem>>, vector<1x128xf32>
      tpu.vector_store %arg9[%c0_132, %c0_133], %122 {strides = array<i32>} : memref<1x128xf32, #tpu.memory_space<vmem>>, vector<1x128xf32>,
      %cst_134 = arith.constant 0.000000e+00 : bf16
      %124 = vector.broadcast %cst_134 : bf16 to vector<10x10x128xbf16>
      %c0_135 = arith.constant 0 : index
      %c0_136 = arith.constant 0 : index
      %c0_137 = arith.constant 0 : index
      %125 = vector.load %arg10[%c0_135, %c0_136, %c0_137] : memref<10x10x128xbf16, #tpu.memory_space<vmem>>, vector<10x10x128xbf16>
      tpu.vector_store %arg10[%c0_135, %c0_136, %c0_137], %124 {strides = array<i32>} : memref<10x10x128xbf16, #tpu.memory_space<vmem>>, vector<10x10x128xbf16>,
    } else {
    }
    %c0 = arith.constant 0 : index
    %c0_1 = arith.constant 0 : index
    %3 = vector.load %arg2[%c0, %c0_1] : memref<1x128xf32, #tpu.memory_space<vmem>>, vector<1x128xf32>
    %cst = arith.constant 7.812500e-03 : f32
    %4 = vector.broadcast %cst : f32 to vector<1x128xf32>
    %5 = arith.mulf %3, %4 : vector<1x128xf32>
    %c0_2 = arith.constant 0 : index
    %c0_3 = arith.constant 0 : index
    %6 = vector.load %arg3[%c0_2, %c0_3] : memref<1x128xf32, #tpu.memory_space<vmem>>, vector<1x128xf32>
    %cst_4 = arith.constant 7.812500e-03 : f32
    %7 = vector.broadcast %cst_4 : f32 to vector<1x128xf32>
    %8 = arith.mulf %6, %7 : vector<1x128xf32>
    %9 = arith.mulf %5, %5 : vector<1x128xf32>
    %10 = arith.subf %8, %9 : vector<1x128xf32>
    %c0_5 = arith.constant 0 : index
    %c0_6 = arith.constant 0 : index
    %11 = vector.load %arg4[%c0_5, %c0_6] : memref<1x128xf32, #tpu.memory_space<vmem>>, vector<1x128xf32>
    %cst_7 = arith.constant 9.99999974E-6 : f32
    %12 = vector.broadcast %cst_7 : f32 to vector<1x128xf32>
    %13 = arith.addf %10, %12 : vector<1x128xf32>
    %14 = math.rsqrt %13 : vector<1x128xf32>
    %15 = arith.mulf %11, %14 : vector<1x128xf32>
    %16 = vector.shape_cast %15 : vector<1x128xf32> to vector<1x1x128xf32>
    %c0_8 = arith.constant 0 : index
    %c0_9 = arith.constant 0 : index
    %17 = vector.load %arg5[%c0_8, %c0_9] : memref<1x128xf32, #tpu.memory_space<vmem>>, vector<1x128xf32>
    %18 = vector.shape_cast %17 : vector<1x128xf32> to vector<1x1x128xf32>
    %19 = vector.shape_cast %5 : vector<1x128xf32> to vector<1x1x128xf32>
    %20 = arith.mulf %19, %16 : vector<1x1x128xf32>
    %21 = arith.subf %18, %20 : vector<1x1x128xf32>
    %c0_10 = arith.constant 0 : index
    %c0_11 = arith.constant 0 : index
    %c0_12 = arith.constant 0 : index
    %c0_13 = arith.constant 0 : index
    %22 = vector.load %arg1[%c0_10, %c0_11, %c0_12, %c0_13] : memref<1x8x8x128xf32, #tpu.memory_space<vmem>>, vector<1x8x8x128xf32>
    %23 = vector.shape_cast %22 : vector<1x8x8x128xf32> to vector<8x8x128xf32>
    %24 = vector.broadcast %16 : vector<1x1x128xf32> to vector<8x8x128xf32>
    %25 = arith.mulf %23, %24 : vector<8x8x128xf32>
    %26 = vector.broadcast %21 : vector<1x1x128xf32> to vector<8x8x128xf32>
    %27 = arith.addf %25, %26 : vector<8x8x128xf32>
    %cst_14 = arith.constant 0.000000e+00 : f32
    %28 = vector.broadcast %cst_14 : f32 to vector<8x8x128xf32>
    %29 = arith.maximumf %27, %28 : vector<8x8x128xf32>
    %30 = arith.truncf %29 : vector<8x8x128xf32> to vector<8x8x128xbf16>
    %c1 = arith.constant 1 : index
    %c1_15 = arith.constant 1 : index
    %c0_16 = arith.constant 0 : index
    %31 = vector.load %arg10[%c1, %c1_15, %c0_16] : memref<10x10x128xbf16, #tpu.memory_space<vmem>>, vector<8x8x128xbf16>
    tpu.vector_store %arg10[%c1, %c1_15, %c0_16], %30 {strides = array<i32>} : memref<10x10x128xbf16, #tpu.memory_space<vmem>>, vector<8x8x128xbf16>,
    %cst_17 = arith.constant 0.000000e+00 : f32
    %32 = vector.broadcast %cst_17 : f32 to vector<64x128xf32>
    %c0_18 = arith.constant 0 : index
    %c0_19 = arith.constant 0 : index
    %33 = vector.load %arg11[%c0_18, %c0_19] : memref<64x128xf32, #tpu.memory_space<vmem>>, vector<64x128xf32>
    tpu.vector_store %arg11[%c0_18, %c0_19], %32 {strides = array<i32>} : memref<64x128xf32, #tpu.memory_space<vmem>>, vector<64x128xf32>,
    %c0_20 = arith.constant 0 : index
    %c0_21 = arith.constant 0 : index
    %c0_22 = arith.constant 0 : index
    %34 = vector.load %arg10[%c0_20, %c0_21, %c0_22] : memref<10x10x128xbf16, #tpu.memory_space<vmem>>, vector<8x8x128xbf16>
    %c0_23 = arith.constant 0 : index
    %c0_24 = arith.constant 0 : index
    %35 = vector.load %arg11[%c0_23, %c0_24] : memref<64x128xf32, #tpu.memory_space<vmem>>, vector<64x128xf32>
    %36 = vector.shape_cast %34 : vector<8x8x128xbf16> to vector<64x128xbf16>
    %c0_25 = arith.constant 0 : index
    %c0_26 = arith.constant 0 : index
    %c0_27 = arith.constant 0 : index
    %37 = vector.load %arg6[%c0_25, %c0_26, %c0_27] : memref<9x128x128xbf16, #tpu.memory_space<vmem>>, vector<1x128x128xbf16>
    %38 = vector.shape_cast %37 : vector<1x128x128xbf16> to vector<128x128xbf16>
    %cst_28 = arith.constant dense<0.000000e+00> : vector<64x128xf32>
    %39 = tpu.matmul %36, %38, %cst_28 {dimension_numbers = #tpu.dot_dimension_numbers<[1], [0], [0], [1], [0, 0, 1, 1], [], []>} : vector<64x128xbf16>, vector<128x128xbf16>, vector<64x128xf32> -> vector<64x128xf32>
    %40 = arith.addf %35, %39 : vector<64x128xf32>
    %c0_29 = arith.constant 0 : index
    %c0_30 = arith.constant 0 : index
    %41 = vector.load %arg11[%c0_29, %c0_30] : memref<64x128xf32, #tpu.memory_space<vmem>>, vector<64x128xf32>
    tpu.vector_store %arg11[%c0_29, %c0_30], %40 {strides = array<i32>} : memref<64x128xf32, #tpu.memory_space<vmem>>, vector<64x128xf32>,
    %c0_31 = arith.constant 0 : index
    %c1_32 = arith.constant 1 : index
    %c0_33 = arith.constant 0 : index
    %42 = vector.load %arg10[%c0_31, %c1_32, %c0_33] : memref<10x10x128xbf16, #tpu.memory_space<vmem>>, vector<8x8x128xbf16>
    %c0_34 = arith.constant 0 : index
    %c0_35 = arith.constant 0 : index
    %43 = vector.load %arg11[%c0_34, %c0_35] : memref<64x128xf32, #tpu.memory_space<vmem>>, vector<64x128xf32>
    %44 = vector.shape_cast %42 : vector<8x8x128xbf16> to vector<64x128xbf16>
    %c1_36 = arith.constant 1 : index
    %c0_37 = arith.constant 0 : index
    %c0_38 = arith.constant 0 : index
    %45 = vector.load %arg6[%c1_36, %c0_37, %c0_38] : memref<9x128x128xbf16, #tpu.memory_space<vmem>>, vector<1x128x128xbf16>
    %46 = vector.shape_cast %45 : vector<1x128x128xbf16> to vector<128x128xbf16>
    %cst_39 = arith.constant dense<0.000000e+00> : vector<64x128xf32>
    %47 = tpu.matmul %44, %46, %cst_39 {dimension_numbers = #tpu.dot_dimension_numbers<[1], [0], [0], [1], [0, 0, 1, 1], [], []>} : vector<64x128xbf16>, vector<128x128xbf16>, vector<64x128xf32> -> vector<64x128xf32>
    %48 = arith.addf %43, %47 : vector<64x128xf32>
    %c0_40 = arith.constant 0 : index
    %c0_41 = arith.constant 0 : index
    %49 = vector.load %arg11[%c0_40, %c0_41] : memref<64x128xf32, #tpu.memory_space<vmem>>, vector<64x128xf32>
    tpu.vector_store %arg11[%c0_40, %c0_41], %48 {strides = array<i32>} : memref<64x128xf32, #tpu.memory_space<vmem>>, vector<64x128xf32>,
    %c0_42 = arith.constant 0 : index
    %c2 = arith.constant 2 : index
    %c0_43 = arith.constant 0 : index
    %50 = vector.load %arg10[%c0_42, %c2, %c0_43] : memref<10x10x128xbf16, #tpu.memory_space<vmem>>, vector<8x8x128xbf16>
    %c0_44 = arith.constant 0 : index
    %c0_45 = arith.constant 0 : index
    %51 = vector.load %arg11[%c0_44, %c0_45] : memref<64x128xf32, #tpu.memory_space<vmem>>, vector<64x128xf32>
    %52 = vector.shape_cast %50 : vector<8x8x128xbf16> to vector<64x128xbf16>
    %c2_46 = arith.constant 2 : index
    %c0_47 = arith.constant 0 : index
    %c0_48 = arith.constant 0 : index
    %53 = vector.load %arg6[%c2_46, %c0_47, %c0_48] : memref<9x128x128xbf16, #tpu.memory_space<vmem>>, vector<1x128x128xbf16>
    %54 = vector.shape_cast %53 : vector<1x128x128xbf16> to vector<128x128xbf16>
    %cst_49 = arith.constant dense<0.000000e+00> : vector<64x128xf32>
    %55 = tpu.matmul %52, %54, %cst_49 {dimension_numbers = #tpu.dot_dimension_numbers<[1], [0], [0], [1], [0, 0, 1, 1], [], []>} : vector<64x128xbf16>, vector<128x128xbf16>, vector<64x128xf32> -> vector<64x128xf32>
    %56 = arith.addf %51, %55 : vector<64x128xf32>
    %c0_50 = arith.constant 0 : index
    %c0_51 = arith.constant 0 : index
    %57 = vector.load %arg11[%c0_50, %c0_51] : memref<64x128xf32, #tpu.memory_space<vmem>>, vector<64x128xf32>
    tpu.vector_store %arg11[%c0_50, %c0_51], %56 {strides = array<i32>} : memref<64x128xf32, #tpu.memory_space<vmem>>, vector<64x128xf32>,
    %c1_52 = arith.constant 1 : index
    %c0_53 = arith.constant 0 : index
    %c0_54 = arith.constant 0 : index
    %58 = vector.load %arg10[%c1_52, %c0_53, %c0_54] : memref<10x10x128xbf16, #tpu.memory_space<vmem>>, vector<8x8x128xbf16>
    %c0_55 = arith.constant 0 : index
    %c0_56 = arith.constant 0 : index
    %59 = vector.load %arg11[%c0_55, %c0_56] : memref<64x128xf32, #tpu.memory_space<vmem>>, vector<64x128xf32>
    %60 = vector.shape_cast %58 : vector<8x8x128xbf16> to vector<64x128xbf16>
    %c3 = arith.constant 3 : index
    %c0_57 = arith.constant 0 : index
    %c0_58 = arith.constant 0 : index
    %61 = vector.load %arg6[%c3, %c0_57, %c0_58] : memref<9x128x128xbf16, #tpu.memory_space<vmem>>, vector<1x128x128xbf16>
    %62 = vector.shape_cast %61 : vector<1x128x128xbf16> to vector<128x128xbf16>
    %cst_59 = arith.constant dense<0.000000e+00> : vector<64x128xf32>
    %63 = tpu.matmul %60, %62, %cst_59 {dimension_numbers = #tpu.dot_dimension_numbers<[1], [0], [0], [1], [0, 0, 1, 1], [], []>} : vector<64x128xbf16>, vector<128x128xbf16>, vector<64x128xf32> -> vector<64x128xf32>
    %64 = arith.addf %59, %63 : vector<64x128xf32>
    %c0_60 = arith.constant 0 : index
    %c0_61 = arith.constant 0 : index
    %65 = vector.load %arg11[%c0_60, %c0_61] : memref<64x128xf32, #tpu.memory_space<vmem>>, vector<64x128xf32>
    tpu.vector_store %arg11[%c0_60, %c0_61], %64 {strides = array<i32>} : memref<64x128xf32, #tpu.memory_space<vmem>>, vector<64x128xf32>,
    %c1_62 = arith.constant 1 : index
    %c1_63 = arith.constant 1 : index
    %c0_64 = arith.constant 0 : index
    %66 = vector.load %arg10[%c1_62, %c1_63, %c0_64] : memref<10x10x128xbf16, #tpu.memory_space<vmem>>, vector<8x8x128xbf16>
    %c0_65 = arith.constant 0 : index
    %c0_66 = arith.constant 0 : index
    %67 = vector.load %arg11[%c0_65, %c0_66] : memref<64x128xf32, #tpu.memory_space<vmem>>, vector<64x128xf32>
    %68 = vector.shape_cast %66 : vector<8x8x128xbf16> to vector<64x128xbf16>
    %c4 = arith.constant 4 : index
    %c0_67 = arith.constant 0 : index
    %c0_68 = arith.constant 0 : index
    %69 = vector.load %arg6[%c4, %c0_67, %c0_68] : memref<9x128x128xbf16, #tpu.memory_space<vmem>>, vector<1x128x128xbf16>
    %70 = vector.shape_cast %69 : vector<1x128x128xbf16> to vector<128x128xbf16>
    %cst_69 = arith.constant dense<0.000000e+00> : vector<64x128xf32>
    %71 = tpu.matmul %68, %70, %cst_69 {dimension_numbers = #tpu.dot_dimension_numbers<[1], [0], [0], [1], [0, 0, 1, 1], [], []>} : vector<64x128xbf16>, vector<128x128xbf16>, vector<64x128xf32> -> vector<64x128xf32>
    %72 = arith.addf %67, %71 : vector<64x128xf32>
    %c0_70 = arith.constant 0 : index
    %c0_71 = arith.constant 0 : index
    %73 = vector.load %arg11[%c0_70, %c0_71] : memref<64x128xf32, #tpu.memory_space<vmem>>, vector<64x128xf32>
    tpu.vector_store %arg11[%c0_70, %c0_71], %72 {strides = array<i32>} : memref<64x128xf32, #tpu.memory_space<vmem>>, vector<64x128xf32>,
    %c1_72 = arith.constant 1 : index
    %c2_73 = arith.constant 2 : index
    %c0_74 = arith.constant 0 : index
    %74 = vector.load %arg10[%c1_72, %c2_73, %c0_74] : memref<10x10x128xbf16, #tpu.memory_space<vmem>>, vector<8x8x128xbf16>
    %c0_75 = arith.constant 0 : index
    %c0_76 = arith.constant 0 : index
    %75 = vector.load %arg11[%c0_75, %c0_76] : memref<64x128xf32, #tpu.memory_space<vmem>>, vector<64x128xf32>
    %76 = vector.shape_cast %74 : vector<8x8x128xbf16> to vector<64x128xbf16>
    %c5 = arith.constant 5 : index
    %c0_77 = arith.constant 0 : index
    %c0_78 = arith.constant 0 : index
    %77 = vector.load %arg6[%c5, %c0_77, %c0_78] : memref<9x128x128xbf16, #tpu.memory_space<vmem>>, vector<1x128x128xbf16>
    %78 = vector.shape_cast %77 : vector<1x128x128xbf16> to vector<128x128xbf16>
    %cst_79 = arith.constant dense<0.000000e+00> : vector<64x128xf32>
    %79 = tpu.matmul %76, %78, %cst_79 {dimension_numbers = #tpu.dot_dimension_numbers<[1], [0], [0], [1], [0, 0, 1, 1], [], []>} : vector<64x128xbf16>, vector<128x128xbf16>, vector<64x128xf32> -> vector<64x128xf32>
    %80 = arith.addf %75, %79 : vector<64x128xf32>
    %c0_80 = arith.constant 0 : index
    %c0_81 = arith.constant 0 : index
    %81 = vector.load %arg11[%c0_80, %c0_81] : memref<64x128xf32, #tpu.memory_space<vmem>>, vector<64x128xf32>
    tpu.vector_store %arg11[%c0_80, %c0_81], %80 {strides = array<i32>} : memref<64x128xf32, #tpu.memory_space<vmem>>, vector<64x128xf32>,
    %c2_82 = arith.constant 2 : index
    %c0_83 = arith.constant 0 : index
    %c0_84 = arith.constant 0 : index
    %82 = vector.load %arg10[%c2_82, %c0_83, %c0_84] : memref<10x10x128xbf16, #tpu.memory_space<vmem>>, vector<8x8x128xbf16>
    %c0_85 = arith.constant 0 : index
    %c0_86 = arith.constant 0 : index
    %83 = vector.load %arg11[%c0_85, %c0_86] : memref<64x128xf32, #tpu.memory_space<vmem>>, vector<64x128xf32>
    %84 = vector.shape_cast %82 : vector<8x8x128xbf16> to vector<64x128xbf16>
    %c6 = arith.constant 6 : index
    %c0_87 = arith.constant 0 : index
    %c0_88 = arith.constant 0 : index
    %85 = vector.load %arg6[%c6, %c0_87, %c0_88] : memref<9x128x128xbf16, #tpu.memory_space<vmem>>, vector<1x128x128xbf16>
    %86 = vector.shape_cast %85 : vector<1x128x128xbf16> to vector<128x128xbf16>
    %cst_89 = arith.constant dense<0.000000e+00> : vector<64x128xf32>
    %87 = tpu.matmul %84, %86, %cst_89 {dimension_numbers = #tpu.dot_dimension_numbers<[1], [0], [0], [1], [0, 0, 1, 1], [], []>} : vector<64x128xbf16>, vector<128x128xbf16>, vector<64x128xf32> -> vector<64x128xf32>
    %88 = arith.addf %83, %87 : vector<64x128xf32>
    %c0_90 = arith.constant 0 : index
    %c0_91 = arith.constant 0 : index
    %89 = vector.load %arg11[%c0_90, %c0_91] : memref<64x128xf32, #tpu.memory_space<vmem>>, vector<64x128xf32>
    tpu.vector_store %arg11[%c0_90, %c0_91], %88 {strides = array<i32>} : memref<64x128xf32, #tpu.memory_space<vmem>>, vector<64x128xf32>,
    %c2_92 = arith.constant 2 : index
    %c1_93 = arith.constant 1 : index
    %c0_94 = arith.constant 0 : index
    %90 = vector.load %arg10[%c2_92, %c1_93, %c0_94] : memref<10x10x128xbf16, #tpu.memory_space<vmem>>, vector<8x8x128xbf16>
    %c0_95 = arith.constant 0 : index
    %c0_96 = arith.constant 0 : index
    %91 = vector.load %arg11[%c0_95, %c0_96] : memref<64x128xf32, #tpu.memory_space<vmem>>, vector<64x128xf32>
    %92 = vector.shape_cast %90 : vector<8x8x128xbf16> to vector<64x128xbf16>
    %c7 = arith.constant 7 : index
    %c0_97 = arith.constant 0 : index
    %c0_98 = arith.constant 0 : index
    %93 = vector.load %arg6[%c7, %c0_97, %c0_98] : memref<9x128x128xbf16, #tpu.memory_space<vmem>>, vector<1x128x128xbf16>
    %94 = vector.shape_cast %93 : vector<1x128x128xbf16> to vector<128x128xbf16>
    %cst_99 = arith.constant dense<0.000000e+00> : vector<64x128xf32>
    %95 = tpu.matmul %92, %94, %cst_99 {dimension_numbers = #tpu.dot_dimension_numbers<[1], [0], [0], [1], [0, 0, 1, 1], [], []>} : vector<64x128xbf16>, vector<128x128xbf16>, vector<64x128xf32> -> vector<64x128xf32>
    %96 = arith.addf %91, %95 : vector<64x128xf32>
    %c0_100 = arith.constant 0 : index
    %c0_101 = arith.constant 0 : index
    %97 = vector.load %arg11[%c0_100, %c0_101] : memref<64x128xf32, #tpu.memory_space<vmem>>, vector<64x128xf32>
    tpu.vector_store %arg11[%c0_100, %c0_101], %96 {strides = array<i32>} : memref<64x128xf32, #tpu.memory_space<vmem>>, vector<64x128xf32>,
    %c2_102 = arith.constant 2 : index
    %c2_103 = arith.constant 2 : index
    %c0_104 = arith.constant 0 : index
    %98 = vector.load %arg10[%c2_102, %c2_103, %c0_104] : memref<10x10x128xbf16, #tpu.memory_space<vmem>>, vector<8x8x128xbf16>
    %c0_105 = arith.constant 0 : index
    %c0_106 = arith.constant 0 : index
    %99 = vector.load %arg11[%c0_105, %c0_106] : memref<64x128xf32, #tpu.memory_space<vmem>>, vector<64x128xf32>
    %100 = vector.shape_cast %98 : vector<8x8x128xbf16> to vector<64x128xbf16>
    %c8 = arith.constant 8 : index
    %c0_107 = arith.constant 0 : index
    %c0_108 = arith.constant 0 : index
    %101 = vector.load %arg6[%c8, %c0_107, %c0_108] : memref<9x128x128xbf16, #tpu.memory_space<vmem>>, vector<1x128x128xbf16>
    %102 = vector.shape_cast %101 : vector<1x128x128xbf16> to vector<128x128xbf16>
    %cst_109 = arith.constant dense<0.000000e+00> : vector<64x128xf32>
    %103 = tpu.matmul %100, %102, %cst_109 {dimension_numbers = #tpu.dot_dimension_numbers<[1], [0], [0], [1], [0, 0, 1, 1], [], []>} : vector<64x128xbf16>, vector<128x128xbf16>, vector<64x128xf32> -> vector<64x128xf32>
    %104 = arith.addf %99, %103 : vector<64x128xf32>
    %c0_110 = arith.constant 0 : index
    %c0_111 = arith.constant 0 : index
    %105 = vector.load %arg11[%c0_110, %c0_111] : memref<64x128xf32, #tpu.memory_space<vmem>>, vector<64x128xf32>
    tpu.vector_store %arg11[%c0_110, %c0_111], %104 {strides = array<i32>} : memref<64x128xf32, #tpu.memory_space<vmem>>, vector<64x128xf32>,
    %c0_112 = arith.constant 0 : index
    %c0_113 = arith.constant 0 : index
    %106 = vector.load %arg11[%c0_112, %c0_113] : memref<64x128xf32, #tpu.memory_space<vmem>>, vector<64x128xf32>
    %107 = vector.shape_cast %106 : vector<64x128xf32> to vector<1x8x8x128xf32>
    %c0_114 = arith.constant 0 : index
    %c0_115 = arith.constant 0 : index
    %c0_116 = arith.constant 0 : index
    %c0_117 = arith.constant 0 : index
    %108 = vector.load %arg7[%c0_114, %c0_115, %c0_116, %c0_117] : memref<1x8x8x128xf32, #tpu.memory_space<vmem>>, vector<1x8x8x128xf32>
    tpu.vector_store %arg7[%c0_114, %c0_115, %c0_116, %c0_117], %107 {strides = array<i32>} : memref<1x8x8x128xf32, #tpu.memory_space<vmem>>, vector<1x8x8x128xf32>,
    %c0_118 = arith.constant 0 : index
    %c0_119 = arith.constant 0 : index
    %109 = vector.load %arg8[%c0_118, %c0_119] : memref<1x128xf32, #tpu.memory_space<vmem>>, vector<1x128xf32>
    %cst_120 = arith.constant dense<0.000000e+00> : vector<128xf32>
    %110 = vector.multi_reduction <add>, %106, %cst_120 [0] : vector<64x128xf32> to vector<128xf32>
    %111 = vector.shape_cast %110 : vector<128xf32> to vector<1x128xf32>
    %112 = arith.addf %109, %111 : vector<1x128xf32>
    %c0_121 = arith.constant 0 : index
    %c0_122 = arith.constant 0 : index
    %113 = vector.load %arg8[%c0_121, %c0_122] : memref<1x128xf32, #tpu.memory_space<vmem>>, vector<1x128xf32>
    tpu.vector_store %arg8[%c0_121, %c0_122], %112 {strides = array<i32>} : memref<1x128xf32, #tpu.memory_space<vmem>>, vector<1x128xf32>,
    %c0_123 = arith.constant 0 : index
    %c0_124 = arith.constant 0 : index
    %114 = vector.load %arg9[%c0_123, %c0_124] : memref<1x128xf32, #tpu.memory_space<vmem>>, vector<1x128xf32>
    %115 = arith.mulf %106, %106 : vector<64x128xf32>
    %cst_125 = arith.constant dense<0.000000e+00> : vector<128xf32>
    %116 = vector.multi_reduction <add>, %115, %cst_125 [0] : vector<64x128xf32> to vector<128xf32>
    %117 = vector.shape_cast %116 : vector<128xf32> to vector<1x128xf32>
    %118 = arith.addf %114, %117 : vector<1x128xf32>
    %c0_126 = arith.constant 0 : index
    %c0_127 = arith.constant 0 : index
    %119 = vector.load %arg9[%c0_126, %c0_127] : memref<1x128xf32, #tpu.memory_space<vmem>>, vector<1x128xf32>
    tpu.vector_store %arg9[%c0_126, %c0_127], %118 {strides = array<i32>} : memref<1x128xf32, #tpu.memory_space<vmem>>, vector<1x128xf32>,
    return
  }
  func.func @transform_0(%arg0: i32) -> (i32, i32, i32, i32) {
    %c0_i32 = arith.constant 0 : i32
    %c0_i32_0 = arith.constant 0 : i32
    %c0_i32_1 = arith.constant 0 : i32
    %c0_i32_2 = arith.constant 0 : i32
    return %arg0, %c0_i32, %c0_i32_0, %c0_i32_1 : i32, i32, i32, i32
  }
  func.func @transform_1(%arg0: i32) -> (i32, i32) {
    %c0_i32 = arith.constant 0 : i32
    %c0_i32_0 = arith.constant 0 : i32
    %c0_i32_1 = arith.constant 0 : i32
    return %c0_i32, %c0_i32_0 : i32, i32
  }
  func.func @transform_2(%arg0: i32) -> (i32, i32) {
    %c0_i32 = arith.constant 0 : i32
    %c0_i32_0 = arith.constant 0 : i32
    %c0_i32_1 = arith.constant 0 : i32
    return %c0_i32, %c0_i32_0 : i32, i32
  }
  func.func @transform_3(%arg0: i32) -> (i32, i32) {
    %c0_i32 = arith.constant 0 : i32
    %c0_i32_0 = arith.constant 0 : i32
    %c0_i32_1 = arith.constant 0 : i32
    return %c0_i32, %c0_i32_0 : i32, i32
  }
  func.func @transform_4(%arg0: i32) -> (i32, i32) {
    %c0_i32 = arith.constant 0 : i32
    %c0_i32_0 = arith.constant 0 : i32
    %c0_i32_1 = arith.constant 0 : i32
    return %c0_i32, %c0_i32_0 : i32, i32
  }
  func.func @transform_5(%arg0: i32) -> (i32, i32, i32) {
    %c0_i32 = arith.constant 0 : i32
    %c0_i32_0 = arith.constant 0 : i32
    %c0_i32_1 = arith.constant 0 : i32
    %c0_i32_2 = arith.constant 0 : i32
    return %c0_i32, %c0_i32_0, %c0_i32_1 : i32, i32, i32
  }
  func.func @transform_6(%arg0: i32) -> (i32, i32, i32, i32) {
    %c0_i32 = arith.constant 0 : i32
    %c0_i32_0 = arith.constant 0 : i32
    %c0_i32_1 = arith.constant 0 : i32
    %c0_i32_2 = arith.constant 0 : i32
    return %arg0, %c0_i32, %c0_i32_0, %c0_i32_1 : i32, i32, i32, i32
  }
  func.func @transform_7(%arg0: i32) -> (i32, i32) {
    %c0_i32 = arith.constant 0 : i32
    %c0_i32_0 = arith.constant 0 : i32
    %c0_i32_1 = arith.constant 0 : i32
    return %c0_i32, %c0_i32_0 : i32, i32
  }
  func.func @transform_8(%arg0: i32) -> (i32, i32) {
    %c0_i32 = arith.constant 0 : i32
    %c0_i32_0 = arith.constant 0 : i32
    %c0_i32_1 = arith.constant 0 : i32
    return %c0_i32, %c0_i32_0 : i32, i32
  }
}

module attributes {stable_mosaic.version = 11 : i64} {
  func.func @_bn2_down_add_relu_kernel(%arg0: i32, %arg1: memref<128x128xf32, #tpu.memory_space<vmem>>, %arg2: memref<1x128xf32, #tpu.memory_space<vmem>>, %arg3: memref<1x128xf32, #tpu.memory_space<vmem>>, %arg4: memref<1x128xf32, #tpu.memory_space<vmem>>, %arg5: memref<1x128xf32, #tpu.memory_space<vmem>>, %arg6: memref<128x128xbf16, #tpu.memory_space<vmem>>, %arg7: memref<128x128xbf16, #tpu.memory_space<vmem>>, %arg8: memref<1x128xf32, #tpu.memory_space<vmem>>, %arg9: memref<128x128xf32, #tpu.memory_space<vmem>>) attributes {dimension_semantics = [#tpu.dimension_semantics<parallel>], iteration_bounds = array<i64: 1>, scalar_prefetch = 0 : i64, scratch_operands = 0 : i64, tpu.core_type = #tpu.core_type<tc>, window_params = [{transform_indices = @transform_0, window_bounds = array<i64: 128, 128>}, {pipeline_mode = #tpu.pipeline_mode<synchronous>, transform_indices = @transform_1, window_bounds = array<i64: 1, 128>}, {pipeline_mode = #tpu.pipeline_mode<synchronous>, transform_indices = @transform_2, window_bounds = array<i64: 1, 128>}, {pipeline_mode = #tpu.pipeline_mode<synchronous>, transform_indices = @transform_3, window_bounds = array<i64: 1, 128>}, {pipeline_mode = #tpu.pipeline_mode<synchronous>, transform_indices = @transform_4, window_bounds = array<i64: 1, 128>}, {transform_indices = @transform_5, window_bounds = array<i64: 128, 128>}, {pipeline_mode = #tpu.pipeline_mode<synchronous>, transform_indices = @transform_6, window_bounds = array<i64: 128, 128>}, {pipeline_mode = #tpu.pipeline_mode<synchronous>, transform_indices = @transform_7, window_bounds = array<i64: 1, 128>}, {transform_indices = @transform_8, window_bounds = array<i64: 128, 128>}]} {
    %c0 = arith.constant 0 : index
    %c0_0 = arith.constant 0 : index
    %0 = vector.load %arg2[%c0, %c0_0] : memref<1x128xf32, #tpu.memory_space<vmem>>, vector<1x128xf32>
    %cst = arith.constant 7.812500e-03 : f32
    %1 = vector.broadcast %cst : f32 to vector<1x128xf32>
    %2 = arith.mulf %0, %1 : vector<1x128xf32>
    %c0_1 = arith.constant 0 : index
    %c0_2 = arith.constant 0 : index
    %3 = vector.load %arg3[%c0_1, %c0_2] : memref<1x128xf32, #tpu.memory_space<vmem>>, vector<1x128xf32>
    %cst_3 = arith.constant 7.812500e-03 : f32
    %4 = vector.broadcast %cst_3 : f32 to vector<1x128xf32>
    %5 = arith.mulf %3, %4 : vector<1x128xf32>
    %6 = arith.mulf %2, %2 : vector<1x128xf32>
    %7 = arith.subf %5, %6 : vector<1x128xf32>
    %c0_4 = arith.constant 0 : index
    %c0_5 = arith.constant 0 : index
    %8 = vector.load %arg4[%c0_4, %c0_5] : memref<1x128xf32, #tpu.memory_space<vmem>>, vector<1x128xf32>
    %cst_6 = arith.constant 9.99999974E-6 : f32
    %9 = vector.broadcast %cst_6 : f32 to vector<1x128xf32>
    %10 = arith.addf %7, %9 : vector<1x128xf32>
    %11 = math.rsqrt %10 : vector<1x128xf32>
    %12 = arith.mulf %8, %11 : vector<1x128xf32>
    %c0_7 = arith.constant 0 : index
    %c0_8 = arith.constant 0 : index
    %13 = vector.load %arg5[%c0_7, %c0_8] : memref<1x128xf32, #tpu.memory_space<vmem>>, vector<1x128xf32>
    %14 = arith.mulf %2, %12 : vector<1x128xf32>
    %15 = arith.subf %13, %14 : vector<1x128xf32>
    %c0_9 = arith.constant 0 : index
    %c0_10 = arith.constant 0 : index
    %16 = vector.load %arg1[%c0_9, %c0_10] : memref<128x128xf32, #tpu.memory_space<vmem>>, vector<128x128xf32>
    %17 = vector.broadcast %12 : vector<1x128xf32> to vector<128x128xf32>
    %18 = arith.mulf %16, %17 : vector<128x128xf32>
    %19 = vector.broadcast %15 : vector<1x128xf32> to vector<128x128xf32>
    %20 = arith.addf %18, %19 : vector<128x128xf32>
    %c0_11 = arith.constant 0 : index
    %c0_12 = arith.constant 0 : index
    %21 = vector.load %arg6[%c0_11, %c0_12] : memref<128x128xbf16, #tpu.memory_space<vmem>>, vector<128x128xbf16>
    %c0_13 = arith.constant 0 : index
    %c0_14 = arith.constant 0 : index
    %22 = vector.load %arg7[%c0_13, %c0_14] : memref<128x128xbf16, #tpu.memory_space<vmem>>, vector<128x128xbf16>
    %cst_15 = arith.constant dense<0.000000e+00> : vector<128x128xf32>
    %23 = tpu.matmul %21, %22, %cst_15 {dimension_numbers = #tpu.dot_dimension_numbers<[1], [0], [0], [1], [0, 0, 1, 1], [], []>} : vector<128x128xbf16>, vector<128x128xbf16>, vector<128x128xf32> -> vector<128x128xf32>
    %c0_16 = arith.constant 0 : index
    %c0_17 = arith.constant 0 : index
    %24 = vector.load %arg8[%c0_16, %c0_17] : memref<1x128xf32, #tpu.memory_space<vmem>>, vector<1x128xf32>
    %25 = vector.broadcast %24 : vector<1x128xf32> to vector<128x128xf32>
    %26 = arith.addf %23, %25 : vector<128x128xf32>
    %27 = arith.addf %20, %26 : vector<128x128xf32>
    %cst_18 = arith.constant 0.000000e+00 : f32
    %28 = vector.broadcast %cst_18 : f32 to vector<128x128xf32>
    %29 = arith.maximumf %27, %28 : vector<128x128xf32>
    %c0_19 = arith.constant 0 : index
    %c0_20 = arith.constant 0 : index
    %30 = vector.load %arg9[%c0_19, %c0_20] : memref<128x128xf32, #tpu.memory_space<vmem>>, vector<128x128xf32>
    tpu.vector_store %arg9[%c0_19, %c0_20], %29 {strides = array<i32>} : memref<128x128xf32, #tpu.memory_space<vmem>>, vector<128x128xf32>,
    return
  }
  func.func @transform_0(%arg0: i32) -> (i32, i32) {
    %c0_i32 = arith.constant 0 : i32
    %c0_i32_0 = arith.constant 0 : i32
    return %arg0, %c0_i32 : i32, i32
  }
  func.func @transform_1(%arg0: i32) -> (i32, i32) {
    %c0_i32 = arith.constant 0 : i32
    %c0_i32_0 = arith.constant 0 : i32
    %c0_i32_1 = arith.constant 0 : i32
    return %c0_i32, %c0_i32_0 : i32, i32
  }
  func.func @transform_2(%arg0: i32) -> (i32, i32) {
    %c0_i32 = arith.constant 0 : i32
    %c0_i32_0 = arith.constant 0 : i32
    %c0_i32_1 = arith.constant 0 : i32
    return %c0_i32, %c0_i32_0 : i32, i32
  }
  func.func @transform_3(%arg0: i32) -> (i32, i32) {
    %c0_i32 = arith.constant 0 : i32
    %c0_i32_0 = arith.constant 0 : i32
    %c0_i32_1 = arith.constant 0 : i32
    return %c0_i32, %c0_i32_0 : i32, i32
  }
  func.func @transform_4(%arg0: i32) -> (i32, i32) {
    %c0_i32 = arith.constant 0 : i32
    %c0_i32_0 = arith.constant 0 : i32
    %c0_i32_1 = arith.constant 0 : i32
    return %c0_i32, %c0_i32_0 : i32, i32
  }
  func.func @transform_5(%arg0: i32) -> (i32, i32) {
    %c0_i32 = arith.constant 0 : i32
    %c0_i32_0 = arith.constant 0 : i32
    return %arg0, %c0_i32 : i32, i32
  }
  func.func @transform_6(%arg0: i32) -> (i32, i32) {
    %c0_i32 = arith.constant 0 : i32
    %c0_i32_0 = arith.constant 0 : i32
    %c0_i32_1 = arith.constant 0 : i32
    return %c0_i32, %c0_i32_0 : i32, i32
  }
  func.func @transform_7(%arg0: i32) -> (i32, i32) {
    %c0_i32 = arith.constant 0 : i32
    %c0_i32_0 = arith.constant 0 : i32
    %c0_i32_1 = arith.constant 0 : i32
    return %c0_i32, %c0_i32_0 : i32, i32
  }
  func.func @transform_8(%arg0: i32) -> (i32, i32) {
    %c0_i32 = arith.constant 0 : i32
    %c0_i32_0 = arith.constant 0 : i32
    return %arg0, %c0_i32 : i32, i32
  }
}

</mosaic_0001>

<bundles_post_ra>
// kernel: resblock_forward.3
= control target key start
LH: loop header
LB: loop body
LE: loop exit
PB: predicated region body
PF: predicated region fallthrough
CT: control target
= control target key end

     0   :  { %s3218_s15 = smov 0   ;;  %s3607_s0 = inlined_call_operand.vmem [shape: bf16[8,9,9,128], index: 0, kind: input, shape index: {}]   ;;  %s3608_s1 = inlined_call_operand.vmem [shape: bf16[9,128,128], index: 1, kind: input, shape index: {}]   ;;  %s3609_s2 = inlined_call_operand.vmem [shape: f32[2,8,8,128], index: 2, kind: output, shape index: {0}]   ;;  %s3610_s3 = inlined_call_operand.vmem [shape: f32[1,128], index: 3, kind: output, shape index: {1}]   ;;  %s3611_s4 = inlined_call_operand.vmem [shape: f32[1,128], index: 4, kind: output, shape index: {2}]  }
   0x1 LB: > { %s2353_s16 = sadd.s32 4294967295, %s3190_s15   ;;  %p2357_p0 = scmp.ge.s32.totalorder %s3190_s15, 1  ;;  %s3190_s15 = sphi %s3218_s15, %s15_s15  }
   0x2   : > { %p159_p1 = scmp.lt.s32.totalorder %s3190_s15, 3 }
   0x4   : > { %p160_p2 = pnand %p2357_p0, %p159_p1 }
   0x5   : > { %s2358_s17 = sshll.u32 (!%p160_p2), %s2353_s16, 2  ;;  %p193_p3 = scmp.lt.s32.totalorder (!%p160_p2), %s2353_s16, 1 }
   0x6   : > { %163 = sbr.rel (%p160_p2) target bundleno = 431 (0x1af), region = 28  ;;  %p187_p4 = scmp.lt.s32.totalorder (!%p160_p2), %s2358_s17, 7 }
   0x7   : > { %p2362_p5 = scmp.ne.s32.totalorder (!%p160_p2), %s2353_s16, 0 }
   0xd   : > { %s194_s18 = scalar_select %p193_p3, %s2353_s16, 1 }
   0xe   : > { %s3615_s17 = smov (!%p187_p4, %s2358_s17), 7  ;;  %202 = sbr.rel (%p2362_p5) target bundleno = 21 (0x15), region = 32 }
   0xf   : > { %s2673_s19 = sshll.u32 %s194_s18, 6  ;;  %s3078_s20 = smul.u32 72, %s3615_s17  ;;  %v3192_v0 = vmov (!%p2362_p5), 0.0  }
  0x10   : > { %s3229_s23 = scalar_lea.vmem %s3609_s2, %s2673_s19  ;;  %203 = vst [vmem:[%s3610_s3] sm:$0x1] (!%p2362_p5), %v3192_v0  ;;  %204 = vst [vmem:[%s3611_s4] sm:$0x1] (!%p2362_p5), %v3192_v0 }
  0x11   : > { %s3234_s26 = scalar_lea.vmem %s3607_s0, %s3078_s20 }
  0x15 PF: > { %v3088_v1 = vld [vmem:[%s3608_s1] sm:$0xff]   ;;  %v3090_v3 = vld [vmem:[%s3608_s1 + $0x8] sm:$0xff]   ;;  %v3092_v5 = vld [vmem:[%s3608_s1 + $0x10] sm:$0xff]   ;;  %vm609_vm0 = vsmask.f32 3328 }
  0x16   : > { %v3089_v2 = vld [vmem:[%s3608_s1 + $0x100] sm:$0xff]   ;;  %2782 = vmatprep.subr.bf16.mxu1 %v3088_v1  ;;  %v3091_v4 = vld [vmem:[%s3608_s1 + $0x108] sm:$0xff]   ;;  %v3093_v6 = vld [vmem:[%s3608_s1 + $0x110] sm:$0xff]   ;;  %vm610_vm1 = vsmask.f32 7440 }
  0x17   : > { %2878 = vmatprep.subr.bf16.mxu0 %v3089_v2  ;;  %2783 = vmatpush3.bf16.msra.mxu1 %v3088_v1  ;;  %v3094_v7 = vld [vmem:[%s3608_s1 + $0x18] sm:$0xff]   ;;  %v3096_v9 = vld [vmem:[%s3608_s1 + $0x20] sm:$0xff]   ;;  %v3098_v11 = vld [vmem:[%s3608_s1 + $0x28] sm:$0xff]  }
  0x18   : > { %2879 = vmatpush3.bf16.msra.mxu0 %v3089_v2  ;;  %2784 = vmatprep.subr.bf16.mxu1 %v3090_v3  ;;  %v3095_v8 = vld [vmem:[%s3608_s1 + $0x118] sm:$0xff]   ;;  %v3097_v10 = vld [vmem:[%s3608_s1 + $0x120] sm:$0xff]   ;;  %v3099_v13 = vld [vmem:[%s3608_s1 + $0x128] sm:$0xff]  }
  0x19   : > { %2880 = vmatprep.subr.bf16.mxu0 %v3091_v4  ;;  %v3104_v12 = vld [vmem:[%s3234_s26] ss:$8 sps:$4 sm:$0xff]   ;;  %v3100_v15 = vld [vmem:[%s3608_s1 + $0x30] sm:$0xff]   ;;  %v3102_v17 = vld [vmem:[%s3608_s1 + $0x38] sm:$0xff]  }
  0x1a   : > { %2798 = vmatprep.mubr.bf16.mxu1 %v3104_v12  ;;  %v3106_v14 = vld [vmem:[%s3234_s26 + $0xd8] ss:$8 sps:$4 sm:$0xff]   ;;  %v3101_v16 = vld [vmem:[%s3608_s1 + $0x130] sm:$0xff]   ;;  %v3110_v23 = vld [vmem:[%s3608_s1 + $0x48] sm:$0xff]  }
  0x1b   : > { %2785 = vmatpush3.bf16.msra.mxu1 %v3090_v3  ;;  %2894 = vmatprep.mubr.bf16.mxu0 %v3106_v14  ;;  %v3103_v18 = vld [vmem:[%s3608_s1 + $0x138] sm:$0xff]   ;;  %v3105_v19 = vld [vmem:[%s3608_s1 + $0x40] sm:$0xff]   ;;  %v3109_v22 = vld [vmem:[%s3234_s26 + $0xe8] ss:$8 sps:$4 sm:$0xff]  }
  0x1c   : > { %2881 = vmatpush3.bf16.msra.mxu0 %v3091_v4  ;;  %2786 = vmatprep.subr.bf16.mxu1 %v3092_v5  ;;  %v3107_v20 = vld [vmem:[%s3608_s1 + $0x140] sm:$0xff]   ;;  %v3108_v21 = vld [vmem:[%s3234_s26 + $0x10] ss:$8 sps:$4 sm:$0xff]   ;;  %v3111_v24 = vld [vmem:[%s3608_s1 + $0x148] sm:$0xff]  }
  0x1d   : > { %2882 = vmatprep.subr.bf16.mxu0 %v3093_v6  ;;  %v3120_v25 = vld [vmem:[%s3234_s26 + $0x20] ss:$8 sps:$4 sm:$0xff]   ;;  %v3112_v27 = vld [vmem:[%s3608_s1 + $0x50] sm:$0xff]   ;;  %v3114_v29 = vld [vmem:[%s3608_s1 + $0x58] sm:$0xff]  }
  0x1e   : > { %v3122_v26 = vld [vmem:[%s3234_s26 + $0xf8] ss:$8 sps:$4 sm:$0xff]   ;;  %v3113_v28 = vld [vmem:[%s3608_s1 + $0x150] sm:$0xff]   ;;  %v2514_v40 = vld [vmem:[%s3234_s26 + $0x9c] sm:$0x1] }
  0x1f   : > { %2787 = vmatpush3.bf16.msra.mxu1 %v3092_v5  ;;  %v3124_v30 = vld [vmem:[%s3234_s26 + $0x30] ss:$8 sps:$4 sm:$0xff]   ;;  %v2512_v35 = vld [vmem:[%s3234_s26 + $0x94] sm:$0x1]  ;;  %v3116_v39 = vld [vmem:[%s3608_s1 + $0x60] sm:$0xff]   ;;  %v1308_v47 = vshll.u32 %v2514_v40, 16 }
  0x20   : > { %2883 = vmatpush3.bf16.msra.mxu0 %v3093_v6  ;;  %2788 = vmatprep.subr.bf16.mxu1 %v3094_v7  ;;  %v3125_v31 = vld [vmem:[%s3234_s26 + $0x108] ss:$8 sps:$4 sm:$0xff]   ;;  %v3115_v32 = vld [vmem:[%s3608_s1 + $0x158] sm:$0xff]   ;;  %v1294_v41 = vshll.u32 %v2512_v35, 16  ;;  %v3117_v44 = vld [vmem:[%s3608_s1 + $0x160] sm:$0xff]  }
  0x21   : > { %2884 = vmatprep.subr.bf16.mxu0 %v3095_v8  ;;  %v3128_v33 = vld [vmem:[%s3234_s26 + $0x48] ss:$8 sps:$4 sm:$0xff]   ;;  %v2513_v36 = vld [vmem:[%s3234_s26 + $0x98] sm:$0xf]  ;;  %vm3341_vm2 = vmor %vm609_vm0, %vm610_vm1  ;;  %v1310_v56 = vrot.slane %v1308_v47, 5 }
  0x22   : > { %v2511_v34 = vld [vmem:[%s3234_s26 + $0x90] sm:$0xf]  ;;  %v1299_v42 = vshrl.u32 %v2513_v36, 16  ;;  %v1302_v43 = vshll.u32 %v2513_v36, 16  ;;  %v3118_v48 = vld [vmem:[%s3608_s1 + $0x68] sm:$0xff]   ;;  %v1296_v53 = vrot.slane %v1294_v41, 5 }
  0x23   : > { %2789 = vmatpush3.bf16.msra.mxu1 %v3094_v7  ;;  %v1285_v37 = vshrl.u32 %v2511_v34, 16  ;;  %v1288_v38 = vshll.u32 %v2511_v34, 16  ;;  %v3119_v51 = vld [vmem:[%s3608_s1 + $0x168] sm:$0xff]   ;;  %v2515_v57 = vld [vmem:[%s3234_s26 + $0xa0] sm:$0xf]  ;;  %v3121_v3 = vld [vmem:[%s3608_s1 + $0x70] sm:$0xff]  }
  0x24   : > { %2885 = vmatpush3.bf16.msra.mxu0 %v3095_v8  ;;  %2790 = vmatprep.subr.bf16.mxu1 %v3096_v9  ;;  %v1301_v49 = vrot.slane %v1299_v42, 4  ;;  %v1304_v50 = vrot.slane %v1302_v43, 5  ;;  %v2516_v58 = vld [vmem:[%s3234_s26 + $0xa4] sm:$0x1]  ;;  %v2517_v60 = vld [vmem:[%s3234_s26 + $0xa8] sm:$0xf] }
  0x25   : > { %2886 = vmatprep.subr.bf16.mxu0 %v3097_v10  ;;  %v1287_v45 = vrot.slane %v1285_v37, 4  ;;  %v1290_v46 = vrot.slane %v1288_v38, 5  ;;  %v2518_v61 = vld [vmem:[%s3234_s26 + $0xac] sm:$0x1]  ;;  %v1313_v62 = vshrl.u32 %v2515_v57, 16  ;;  %v1316_v0 = vshll.u32 %v2515_v57, 16 }
  0x26   : > { %v1305_v55 = vor.u32 %v1304_v50, %v1301_v49  ;;  %v1322_v1 = vshll.u32 %v2516_v58, 16  ;;  %v1327_v2 = vshrl.u32 %v2517_v60, 16  ;;  %v1330_v6 = vshll.u32 %v2517_v60, 16  ;;  %v3123_v7 = vld [vmem:[%s3608_s1 + $0x170] sm:$0xff]   ;;  %v3145_v49 = vld [vmem:[%s3234_s26 + $0x78] ss:$8 sps:$4 sm:$0xff]  }
  0x27   : > { %2791 = vmatpush3.bf16.msra.mxu1 %v3096_v9  ;;  %v1291_v52 = vor.u32 %v1290_v46, %v1287_v45  ;;  %v1315_v5 = vrot.slane %v1313_v62, 4  ;;  %v1318_v9 = vrot.slane %v1316_v0, 5  ;;  %v3142_v38 = vld [vmem:[%s3234_s26 + $0x68] ss:$8 sps:$4 sm:$0xff]   ;;  %v2523_v50 = vld [vmem:[%s3234_s26 + $0xc0] sm:$0xf] }
  0x28   : > { %2887 = vmatpush3.bf16.msra.mxu0 %v3097_v10  ;;  %2792 = vmatprep.subr.bf16.mxu1 %v3098_v11  ;;  %v1306_v63 = vrot.slane %v1305_v55, 4  ;;  %v1329_v10 = vrot.slane %v1327_v2, 4  ;;  %v1332_v14 = vrot.slane %v1330_v6, 5  ;;  %v1369_v57 = vshrl.u32 %v2523_v50, 16  ;;  %v3136_v60 = vld [vmem:[%s3608_s1 + $0x98] sm:$0xff]  }
  0x29   : > { %2888 = vmatprep.subr.bf16.mxu0 %v3099_v13  ;;  %v1292_v59 = vrot.slane %v1291_v52, 4  ;;  %v2525_v52 = vld [vmem:[%s3234_s26 + $0xc8] sm:$0xf]  ;;  %v1372_v58 = vshll.u32 %v2523_v50, 16 }
  0x2a   : > { %v1311_v8 = vsel %vm3341_vm2, %v1306_v63, %v1310_v56  ;;  %v2526_v56 = vld [vmem:[%s3234_s26 + $0xcc] sm:$0x1]  ;;  %v1383_v62 = vshrl.u32 %v2525_v52, 16  ;;  %v1386_v63 = vshll.u32 %v2525_v52, 16  ;;  %v1371_v2 = vrot.slane %v1369_v57, 4 }
  0x2b   : > { %2793 = vmatpush3.bf16.msra.mxu1 %v3098_v11  ;;  %v1297_v4 = vsel %vm3341_vm2, %v1292_v59, %v1296_v53  ;;  %v1336_v11 = vshll.u32 %v2518_v61, 16  ;;  %v3135_v53 = vld [vmem:[%s3608_s1 + $0x190] sm:$0xff]   ;;  %v1392_v0 = vshll.u32 %v2526_v56, 16 }
  0x2c   : > { %2889 = vmatpush3.bf16.msra.mxu0 %v3099_v13  ;;  %2794 = vmatprep.subr.bf16.mxu1 %v3100_v15  ;;  %v2543_v12 = vcombine.low %v1297_v4, %v1311_v8  ;;  %v1324_v13 = vrot.slane %v1322_v1, 5  ;;  %v1388_v8 = vrot.slane %v1386_v63, 5 }
  0x2d   : > { %2890 = vmatprep.subr.bf16.mxu0 %v3101_v16 }
  0x2f   : > { %2795 = vmatpush3.bf16.msra.mxu1 %v3100_v15  ;;  %v3126_v15 = vld [vmem:[%s3608_s1 + $0x78] sm:$0xff]  }
  0x30   : > { %2891 = vmatpush3.bf16.msra.mxu0 %v3101_v16  ;;  %2796 = vmatprep.subr.bf16.mxu1 %v3102_v17  ;;  %v1319_v16 = vor.u32 %v1318_v9, %v1315_v5  ;;  %v3137_v5 = vld [vmem:[%s3608_s1 + $0x198] sm:$0xff]   ;;  %v1394_v9 = vrot.slane %v1392_v0, 5 }
  0x31   : > { %2892 = vmatprep.subr.bf16.mxu0 %v3103_v18 }
  0x33   : > { %2797 = vmatpush3.bf16.msra.mxu1 %v3102_v17  ;;  %v1333_v17 = vor.u32 %v1332_v14, %v1329_v10  ;;  %v3138_v14 = vld [vmem:[%s3608_s1 + $0xa0] sm:$0xff]  }
  0x34   : > { %2893 = vmatpush3.bf16.msra.mxu0 %v3103_v18  ;;  %2806 = vmatprep.subr.bf16.mxu1 %v3105_v19  ;;  %v1320_v18 = vrot.slane %v1319_v16, 4 }
  0x35   : > { %2902 = vmatprep.subr.bf16.mxu0 %v3107_v20 }
  0x36   : > { %2799 = vmatmul.mubr.bf16.vlgmr.msra.gmra.mrb[0].mxu1 %v3108_v21  ;;  %v1334_v21 = vrot.slane %v1333_v17, 4  ;;  %v587_v17 = vld [vmem:[%s3234_s26 + $0x8] sm:$0xf] }
  0x37   : > { %2807 = vmatpush3.bf16.msra.mxu1 %v3105_v19  ;;  %2895 = vmatmul.mubr.bf16.vlgmr.msra.gmra.mrb[0].mxu0 %v3109_v22  ;;  %v1338_v19 = vrot.slane %v1336_v11, 5  ;;  %v3129_v22 = vld [vmem:[%s3608_s1 + $0x80] sm:$0xff]  }
  0x38   : > { %2903 = vmatpush3.bf16.msra.mxu0 %v3107_v20  ;;  %2808 = vmatprep.subr.bf16.mxu1 %v3110_v23  ;;  %v3127_v20 = vld [vmem:[%s3608_s1 + $0x178] sm:$0xff]  }
  0x39   : > { %2904 = vmatprep.subr.bf16.mxu0 %v3111_v24  ;;  %2802 = vmatprep.mubr.bf16.mxu1 %v3120_v25  ;;  %v3130_v25 = vld [vmem:[%s3608_s1 + $0x180] sm:$0xff]  }
  0x3a   : > { %2898 = vmatprep.mubr.bf16.mxu0 %v3122_v26  ;;  %v3131_v26 = vld [vmem:[%s3234_s26 + $0x58] ss:$8 sps:$4 sm:$0xff]  }
  0x3b   : > { %2809 = vmatpush3.bf16.msra.mxu1 %v3110_v23  ;;  %v1325_v23 = vsel %vm3341_vm2, %v1320_v18, %v1324_v13  ;;  %v586_v13 = vld [vmem:[%s3234_s26 + $0x4] sm:$0x1]  ;;  %v588_v18 = vld [vmem:[%s3234_s26 + $0xc] sm:$0x1] }
  0x3c   : > { %2905 = vmatpush3.bf16.msra.mxu0 %v3111_v24  ;;  %2810 = vmatprep.subr.bf16.mxu1 %v3112_v27  ;;  %v1339_v24 = vsel %vm3341_vm2, %v1334_v21, %v1338_v19 }
  0x3d   : > { %2906 = vmatprep.subr.bf16.mxu0 %v3113_v28 }
  0x3e   : > { %2803 = vmatmul.mubr.bf16.gmra.mrb[4].mxu1 %v3124_v30  ;;  %v3133_v30 = vld [vmem:[%s3608_s1 + $0x188] sm:$0xff]  }
  0x3f   : > { %2811 = vmatpush3.bf16.msra.mxu1 %v3112_v27  ;;  %2899 = vmatmul.mubr.bf16.gmra.mrb[4].mxu0 %v3125_v31  ;;  %v3132_v27 = vld [vmem:[%s3608_s1 + $0x88] sm:$0xff]   ;;  %v2520_v31 = vld [vmem:[%s3234_s26 + $0xb4] sm:$0x1] }
  0x40   : > { %2907 = vmatpush3.bf16.msra.mxu0 %v3113_v28  ;;  %2812 = vmatprep.subr.bf16.mxu1 %v3114_v29  ;;  %v2519_v28 = vld [vmem:[%s3234_s26 + $0xb0] sm:$0xf]  ;;  %v1350_v36 = vshll.u32 %v2520_v31, 16 }
  0x41   : > { %2908 = vmatprep.subr.bf16.mxu0 %v3115_v32  ;;  %2822 = vmatprep.mubr.bf16.mxu1 %v3128_v33  ;;  %v2522_v33 = vld [vmem:[%s3234_s26 + $0xbc] sm:$0x1]  ;;  %v1341_v34 = vshrl.u32 %v2519_v28, 16  ;;  %v1344_v35 = vshll.u32 %v2519_v28, 16  ;;  %v636_v28 = vshll.u32 %v588_v18, 16 }
  0x42   : > { %2918 = vmatprep.mubr.bf16.mxu0 %v2543_v12  ;;  %v1364_v40 = vshll.u32 %v2522_v33, 16  ;;  %v1352_v45 = vrot.slane %v1350_v36, 5  ;;  %v585_v12 = vld [vmem:[%s3234_s26] sm:$0xf]  ;;  %v3140_v33 = vld [vmem:[%s3608_s1 + $0xa8] sm:$0xff]  }
  0x43   : > { %2813 = vmatpush3.bf16.msra.mxu1 %v3114_v29  ;;  %v2544_v29 = vcombine.low %v1325_v23, %v1339_v24  ;;  %v1343_v41 = vrot.slane %v1341_v34, 4  ;;  %v1346_v42 = vrot.slane %v1344_v35, 5  ;;  %v613_v19 = vshrl.u32 %v585_v12, 16  ;;  %v596_v18 = vld [vmem:[%s3234_s26 + $0x2c] sm:$0x1] }
  0x44   : > { %2909 = vmatpush3.bf16.msra.mxu0 %v3115_v32  ;;  %2814 = vmatprep.subr.bf16.mxu1 %v3116_v39  ;;  %v2521_v32 = vld [vmem:[%s3234_s26 + $0xb8] sm:$0xf]  ;;  %v1366_v47 = vrot.slane %v1364_v40, 5  ;;  %v627_v23 = vshrl.u32 %v587_v17, 16  ;;  %v630_v24 = vshll.u32 %v587_v17, 16 }
  0x45   : > { %2910 = vmatprep.subr.bf16.mxu0 %v3117_v44  ;;  %v1355_v37 = vshrl.u32 %v2521_v32, 16  ;;  %v595_v17 = vld [vmem:[%s3234_s26 + $0x28] sm:$0xf] }
  0x46   : > { %v629_v31 = vrot.slane %v627_v23, 4  ;;  %v683_v23 = vshrl.u32 %v595_v17, 16 }
  0x47   : > { %2815 = vmatpush3.bf16.msra.mxu1 %v3116_v39  ;;  %v1358_v39 = vshll.u32 %v2521_v32, 16  ;;  %v1357_v43 = vrot.slane %v1355_v37, 4  ;;  %v632_v32 = vrot.slane %v630_v24, 5  ;;  %v638_v37 = vrot.slane %v636_v28, 5 }
  0x48   : > { %2911 = vmatpush3.bf16.msra.mxu0 %v3117_v44  ;;  %2816 = vmatprep.subr.bf16.mxu1 %v3118_v48  ;;  %v3134_v44 = vld [vmem:[%s3608_s1 + $0x90] sm:$0xff]   ;;  %v686_v24 = vshll.u32 %v595_v17, 16  ;;  %v2628_v17 = vld [vmem:[%s3234_s26 + $0xc] sm:$0x1] }
  0x49   : > { %2912 = vmatprep.subr.bf16.mxu0 %v3119_v51  ;;  %v1360_v46 = vrot.slane %v1358_v39, 5  ;;  %v3141_v39 = vld [vmem:[%s3608_s1 + $0x1a8] sm:$0xff]  }
  0x4b   : > { %2817 = vmatpush3.bf16.msra.mxu1 %v3118_v48  ;;  %v1347_v48 = vor.u32 %v1346_v42, %v1343_v41  ;;  %v1361_v55 = vor.u32 %v1360_v46, %v1357_v43  ;;  %v633_v41 = vor.u32 %v632_v32, %v629_v31  ;;  %v589_v42 = vld [vmem:[%s3234_s26 + $0x10] sm:$0xf]  ;;  %v688_v32 = vrot.slane %v686_v24, 5 }
  0x4c   : > { %2913 = vmatpush3.bf16.msra.mxu0 %v3119_v51  ;;  %2818 = vmatprep.subr.bf16.mxu1 %v3121_v3  ;;  %v2524_v51 = vld [vmem:[%s3234_s26 + $0xc4] sm:$0x1]  ;;  %v641_v46 = vshrl.u32 %v589_v42, 16  ;;  %v597_v31 = vld [vmem:[%s3234_s26 + $0x30] sm:$0xf] }
  0x4d   : > { %2914 = vmatprep.subr.bf16.mxu0 %v3123_v7  ;;  %v1378_v59 = vshll.u32 %v2524_v51, 16  ;;  %v1348_v61 = vrot.slane %v1347_v48, 4  ;;  %v1362_v1 = vrot.slane %v1361_v55, 4  ;;  %v592_v48 = vld [vmem:[%s3234_s26 + $0x1c] sm:$0x1] }
  0x4f   : > { %2819 = vmatpush3.bf16.msra.mxu1 %v3121_v3  ;;  %v1374_v3 = vrot.slane %v1372_v58, 5  ;;  %v1380_v4 = vrot.slane %v1378_v59, 5  ;;  %v1353_v6 = vsel %vm3341_vm2, %v1348_v61, %v1352_v45  ;;  %v1367_v10 = vsel %vm3341_vm2, %v1362_v1, %v1366_v47  ;;  %v591_v45 = vld [vmem:[%s3234_s26 + $0x18] sm:$0xf]  ;;  %v3144_v61 = vld [vmem:[%s3608_s1 + $0x1b0] sm:$0xff]  }
  0x50   : > { %2915 = vmatpush3.bf16.msra.mxu0 %v3123_v7  ;;  %2820 = vmatprep.subr.bf16.mxu1 %v3126_v15  ;;  %v1385_v7 = vrot.slane %v1383_v62, 4  ;;  %v634_v47 = vrot.slane %v633_v41, 4  ;;  %v655_v51 = vshrl.u32 %v591_v45, 16  ;;  %v658_v55 = vshll.u32 %v591_v45, 16 }
  0x51   : > { %2916 = vmatprep.subr.bf16.mxu0 %v3127_v20  ;;  %v1375_v11 = vor.u32 %v1374_v3, %v1371_v2  ;;  %v664_v59 = vshll.u32 %v592_v48, 16 }
  0x52   : > { %v1389_v16 = vor.u32 %v1388_v8, %v1385_v7  ;;  %v639_v56 = vsel %vm3341_vm2, %v634_v47, %v638_v37  ;;  %v657_v58 = vrot.slane %v655_v51, 4  ;;  %v660_v0 = vrot.slane %v658_v55, 5  ;;  %v3147_v7 = vld [vmem:[%s3608_s1 + $0x1b8] sm:$0xff]   ;;  %v3148_v8 = vld [vmem:[%s3608_s1 + $0xc0] sm:$0xff]  }
  0x53   : > { %2821 = vmatpush3.bf16.msra.mxu1 %v3126_v15  ;;  %v2545_v15 = vcombine.low %v1353_v6, %v1367_v10  ;;  %v1376_v21 = vrot.slane %v1375_v11, 4  ;;  %v3150_v11 = vld [vmem:[%s3608_s1 + $0x1c0] sm:$0xff]   ;;  %v3156_v51 = vld [vmem:[%s3608_s1 + $0xd8] sm:$0xff]  }
  0x54   : > { %2917 = vmatpush3.bf16.msra.mxu0 %v3127_v20  ;;  %2830 = vmatprep.subr.bf16.mxu1 %v3129_v22  ;;  %v616_v20 = vshll.u32 %v585_v12, 16  ;;  %v661_v2 = vor.u32 %v660_v0, %v657_v58  ;;  %v3151_v12 = vld [vmem:[%s3234_s26 + $0x18] ss:$8 sps:$4 sm:$0xff]  }
  0x55   : > { %2926 = vmatprep.subr.bf16.mxu0 %v3130_v25 }
  0x56   : > { %2823 = vmatmul.mubr.bf16.vlgmr.msra.gmra.mrb[0].mxu1 %v3131_v26  ;;  %v615_v26 = vrot.slane %v613_v19, 4  ;;  %v662_v6 = vrot.slane %v661_v2, 4  ;;  %v3153_v19 = vld [vmem:[%s3608_s1 + $0x1c8] sm:$0xff]   ;;  %v3158_v2 = vld [vmem:[%s3608_s1 + $0xe0] sm:$0xff]  }
  0x57   : > { %2831 = vmatpush3.bf16.msra.mxu1 %v3129_v22  ;;  %2919 = vmatmul.mubr.bf16.vlgmr.msra.gmra.mrb[0].mxu0 %v2544_v29  ;;  %v622_v22 = vshll.u32 %v586_v13, 16  ;;  %v3139_v29 = vld [vmem:[%s3608_s1 + $0x1a0] sm:$0xff]  }
  0x58   : > { %2927 = vmatpush3.bf16.msra.mxu0 %v3130_v25  ;;  %2832 = vmatprep.subr.bf16.mxu1 %v3132_v27  ;;  %v1390_v25 = vrot.slane %v1389_v16, 4  ;;  %v593_v13 = vld [vmem:[%s3234_s26 + $0x20] sm:$0xf]  ;;  %v594_v16 = vld [vmem:[%s3234_s26 + $0x24] sm:$0x1] }
  0x59   : > { %2928 = vmatprep.subr.bf16.mxu0 %v3133_v30  ;;  %2826 = vmatprep.mubr.bf16.mxu1 %v3142_v38  ;;  %v624_v36 = vrot.slane %v622_v22, 5  ;;  %v3149_v38 = vld [vmem:[%s3234_s26 + $0x8] ss:$8 sps:$4 sm:$0xff]   ;;  %v678_v22 = vshll.u32 %v594_v16, 16 }
  0x5a   : > { %2922 = vmatprep.mubr.bf16.mxu0 %v2545_v15  ;;  %v1395_v34 = vsel %vm3341_vm2, %v1390_v25, %v1394_v9  ;;  %v3152_v15 = vld [vmem:[%s3608_s1 + $0xc8] sm:$0xff]   ;;  %v692_v25 = vshll.u32 %v596_v18, 16  ;;  %v2629_v18 = vld [vmem:[%s3234_s26 + $0x10] sm:$0xf] }
  0x5b   : > { %2833 = vmatpush3.bf16.msra.mxu1 %v3132_v27  ;;  %v618_v27 = vrot.slane %v616_v20, 5  ;;  %v669_v20 = vshrl.u32 %v593_v13, 16  ;;  %v2627_v16 = vld [vmem:[%s3234_s26 + $0x8] sm:$0xf]  ;;  %v1974_v24 = vshll.u32 %v2629_v18, 16 }
  0x5c   : > { %2929 = vmatpush3.bf16.msra.mxu0 %v3133_v30  ;;  %2834 = vmatprep.subr.bf16.mxu1 %v3134_v44  ;;  %v1381_v30 = vsel %vm3341_vm2, %v1376_v21, %v1380_v4  ;;  %v666_v4 = vrot.slane %v664_v59, 5  ;;  %v672_v21 = vshll.u32 %v593_v13, 16  ;;  %v3164_v59 = vld [vmem:[%s3234_s26 + $0x38] ss:$8 sps:$4 sm:$0xff]  }
  0x5d   : > { %2930 = vmatprep.subr.bf16.mxu0 %v3135_v53  ;;  %v619_v35 = vor.u32 %v618_v27, %v615_v26  ;;  %v2546_v40 = vcombine.low %v1381_v30, %v1395_v34  ;;  %v3162_v26 = vld [vmem:[%s3234_s26 + $0x28] ss:$8 sps:$4 sm:$0xff]   ;;  %v671_v27 = vrot.slane %v669_v20, 4  ;;  %v685_v30 = vrot.slane %v683_v23, 4  ;;  %v598_v34 = vld [vmem:[%s3234_s26 + $0x34] sm:$0x1] }
  0x5e   : > { %2827 = vmatmul.mubr.bf16.gmra.mrb[4].mxu1 %v3145_v49  ;;  %v644_v49 = vshll.u32 %v589_v42, 16  ;;  %v667_v10 = vsel %vm3341_vm2, %v662_v6, %v666_v4  ;;  %v674_v28 = vrot.slane %v672_v21, 5  ;;  %v706_v41 = vshll.u32 %v598_v34, 16  ;;  %v3155_v42 = vld [vmem:[%s3608_s1 + $0x1d0] sm:$0xff]   ;;  %v3159_v6 = vld [vmem:[%s3608_s1 + $0x1e0] sm:$0xff]   ;;  %v3166_v13 = vld [vmem:[%s3608_s1 + $0xf8] sm:$0xff]  }
  0x5f   : > { %2835 = vmatpush3.bf16.msra.mxu1 %v3134_v44  ;;  %v620_v43 = vrot.slane %v619_v35, 4  ;;  %v590_v44 = vld [vmem:[%s3234_s26 + $0x14] sm:$0x1]  ;;  %2923 = vmatmul.mubr.bf16.gmra.mrb[4].mxu0 %v2546_v40  ;;  %v599_v35 = vld [vmem:[%s3234_s26 + $0x38] sm:$0xf]  ;;  %v700_v40 = vshll.u32 %v597_v31, 16 }
  0x60   : > { %2931 = vmatpush3.bf16.msra.mxu0 %v3135_v53  ;;  %2836 = vmatprep.subr.bf16.mxu1 %v3136_v60  ;;  %v650_v50 = vshll.u32 %v590_v44, 16  ;;  %v643_v53 = vrot.slane %v641_v46, 4  ;;  %v646_v57 = vrot.slane %v644_v49, 5  ;;  %v675_v37 = vor.u32 %v674_v28, %v671_v27  ;;  %v2638_v34 = vld [vmem:[%s3234_s26 + $0x34] sm:$0x1] }
  0x61   : > { %2932 = vmatprep.subr.bf16.mxu0 %v3137_v5  ;;  %v625_v52 = vsel %vm3341_vm2, %v620_v43, %v624_v36  ;;  %2942 = vmatprep.mubr.bf16.mxu0 %v3149_v38  ;;  %v3154_v36 = vld [vmem:[%s3608_s1 + $0xd0] sm:$0xff]   ;;  %v600_v38 = vld [vmem:[%s3234_s26 + $0x3c] sm:$0x1]  ;;  %v689_v43 = vor.u32 %v688_v32, %v685_v30  ;;  %v711_v44 = vshrl.u32 %v599_v35, 16  ;;  %v714_v45 = vshll.u32 %v599_v35, 16 }
  0x62   : > { %v2427_v62 = vcombine.low %v625_v52, %v639_v56  ;;  %v652_v63 = vrot.slane %v650_v50, 5  ;;  %v647_v1 = vor.u32 %v646_v57, %v643_v53  ;;  %v720_v46 = vshll.u32 %v600_v38, 16  ;;  %v2637_v30 = vld [vmem:[%s3234_s26 + $0x30] sm:$0xf]  ;;  %v3171_v35 = vld [vmem:[%s3234_s26 + $0x60] ss:$8 sps:$4 sm:$0xff]  }
  0x63   : > { %2837 = vmatpush3.bf16.msra.mxu1 %v3136_v60  ;;  %v3143_v60 = vld [vmem:[%s3608_s1 + $0xb0] sm:$0xff]   ;;  %v676_v47 = vrot.slane %v675_v37, 4  ;;  %v702_v49 = vrot.slane %v700_v40, 5  ;;  %v708_v50 = vrot.slane %v706_v41, 5  ;;  %v690_v52 = vrot.slane %v689_v43, 4  ;;  %v3173_v40 = vld [vmem:[%s3608_s1 + $0x208] sm:$0xff]  }
  0x64   : > { %2933 = vmatpush3.bf16.msra.mxu0 %v3137_v5  ;;  %2838 = vmatprep.subr.bf16.mxu1 %v3138_v14  ;;  %v648_v3 = vrot.slane %v647_v1, 4  ;;  %v3146_v5 = vld [vmem:[%s3608_s1 + $0xb8] sm:$0xff]   ;;  %v713_v53 = vrot.slane %v711_v44, 4  ;;  %v716_v55 = vrot.slane %v714_v45, 5  ;;  %v722_v56 = vrot.slane %v720_v46, 5 }
  0x65   : > { %2934 = vmatprep.subr.bf16.mxu0 %v3139_v29  ;;  %2846 = vmatprep.mubr.bf16.mxu1 %v2427_v62  ;;  %v3157_v62 = vld [vmem:[%s3608_s1 + $0x1d8] sm:$0xff]   ;;  %v1957_v20 = vshrl.u32 %v2627_v16, 16  ;;  %v1960_v21 = vshll.u32 %v2627_v16, 16  ;;  %v1971_v23 = vshrl.u32 %v2629_v18, 16  ;;  %v2030_v43 = vshll.u32 %v2637_v30, 16  ;;  %v3180_v16 = vld [vmem:[%s3608_s1 + $0x220] sm:$0xff]  }
  0x66   : > { %v653_v9 = vsel %vm3341_vm2, %v648_v3, %v652_v63  ;;  %v2036_v44 = vshll.u32 %v2638_v34, 16  ;;  %v3174_v45 = vld [vmem:[%s3234_s26 + $0xb0] ss:$8 sps:$4 sm:$0xff]  }
  0x67   : > { %2839 = vmatpush3.bf16.msra.mxu1 %v3138_v14  ;;  %v2428_v14 = vcombine.low %v653_v9, %v667_v10  ;;  %v3160_v9 = vld [vmem:[%s3608_s1 + $0xe8] sm:$0xff]   ;;  %v1959_v27 = vrot.slane %v1957_v20, 4  ;;  %v1962_v28 = vrot.slane %v1960_v21, 5  ;;  %v1973_v32 = vrot.slane %v1971_v23, 4 }
  0x68   : > { %2935 = vmatpush3.bf16.msra.mxu0 %v3139_v29  ;;  %2840 = vmatprep.subr.bf16.mxu1 %v3140_v33  ;;  %v680_v29 = vrot.slane %v678_v22, 5  ;;  %v3161_v10 = vld [vmem:[%s3608_s1 + $0x1e8] sm:$0xff]   ;;  %v1966_v22 = vshll.u32 %v2628_v17, 16 }
  0x69   : > { %2936 = vmatprep.subr.bf16.mxu0 %v3141_v39  ;;  %v3181_v21 = vld [vmem:[%s3608_s1 + $0x228] sm:$0xff]  }
  0x6a   : > { %v681_v57 = vsel %vm3341_vm2, %v676_v47, %v680_v29  ;;  %v2636_v29 = vld [vmem:[%s3234_s26 + $0x2c] sm:$0x1]  ;;  %v1968_v46 = vrot.slane %v1966_v22, 5  ;;  %v2640_v22 = vld [vmem:[%s3234_s26 + $0x3c] sm:$0x1] }
  0x6b   : > { %2841 = vmatpush3.bf16.msra.mxu1 %v3140_v33  ;;  %v694_v33 = vrot.slane %v692_v25, 5 }
  0x6c   : > { %2937 = vmatpush3.bf16.msra.mxu0 %v3141_v39  ;;  %2842 = vmatprep.subr.bf16.mxu1 %v3143_v60  ;;  %v697_v39 = vshrl.u32 %v597_v31, 16  ;;  %v3170_v31 = vld [vmem:[%s3234_s26 + $0xa0] ss:$8 sps:$4 sm:$0xff]  }
  0x6d   : > { %2938 = vmatprep.subr.bf16.mxu0 %v3144_v61 }
  0x6e   : > { %v699_v48 = vrot.slane %v697_v39, 4  ;;  %v2022_v39 = vshll.u32 %v2636_v29, 16 }
  0x6f   : > { %2843 = vmatpush3.bf16.msra.mxu1 %v3143_v60  ;;  %v695_v60 = vsel %vm3341_vm2, %v690_v52, %v694_v33  ;;  %v1976_v33 = vrot.slane %v1974_v24, 5 }
  0x70   : > { %2939 = vmatpush3.bf16.msra.mxu0 %v3144_v61  ;;  %2844 = vmatprep.subr.bf16.mxu1 %v3146_v5  ;;  %v703_v58 = vor.u32 %v702_v49, %v699_v48  ;;  %v717_v61 = vor.u32 %v716_v55, %v713_v53  ;;  %v2429_v63 = vcombine.low %v681_v57, %v695_v60  ;;  %v2032_v55 = vrot.slane %v2030_v43, 5 }
  0x71   : > { %2940 = vmatprep.subr.bf16.mxu0 %v3147_v7  ;;  %v1977_v41 = vor.u32 %v1976_v33, %v1973_v32  ;;  %v2024_v57 = vrot.slane %v2022_v39, 5  ;;  %v2038_v60 = vrot.slane %v2036_v44, 5  ;;  %v2632_v32 = vld [vmem:[%s3234_s26 + $0x1c] sm:$0x1]  ;;  %v2634_v33 = vld [vmem:[%s3234_s26 + $0x24] sm:$0x1] }
  0x72   : > { %v704_v0 = vrot.slane %v703_v58, 4  ;;  %v718_v1 = vrot.slane %v717_v61, 4  ;;  %v3178_v58 = vld [vmem:[%s3608_s1 + $0x210] sm:$0xff]  }
  0x73   : > { %2845 = vmatpush3.bf16.msra.mxu1 %v3146_v5  ;;  %v3169_v5 = vld [vmem:[%s3234_s26 + $0x50] ss:$8 sps:$4 sm:$0xff]   ;;  %v1978_v52 = vrot.slane %v1977_v41, 4 }
  0x74   : > { %2941 = vmatpush3.bf16.msra.mxu0 %v3147_v7  ;;  %2854 = vmatprep.subr.bf16.mxu1 %v3148_v8  ;;  %v709_v3 = vsel %vm3341_vm2, %v704_v0, %v708_v50  ;;  %v723_v4 = vsel %vm3341_vm2, %v718_v1, %v722_v56  ;;  %v3175_v50 = vld [vmem:[%s3234_s26 + $0x70] ss:$8 sps:$4 sm:$0xff]  }
  0x75   : > { %2950 = vmatprep.subr.bf16.mxu0 %v3150_v11  ;;  %v2430_v7 = vcombine.low %v709_v3, %v723_v4  ;;  %v3179_v4 = vld [vmem:[%s3608_s1 + $0x218] sm:$0xff]  }
  0x76   : > { %2847 = vmatmul.mubr.bf16.vlgmr.msra.gmra.mrb[0].mxu1 %v2428_v14  ;;  %v3167_v14 = vld [vmem:[%s3608_s1 + $0x1f8] sm:$0xff]  }
  0x77   : > { %2855 = vmatpush3.bf16.msra.mxu1 %v3148_v8  ;;  %2943 = vmatmul.mubr.bf16.vlgmr.msra.gmra.mrb[0].mxu0 %v3151_v12  ;;  %v3168_v8 = vld [vmem:[%s3234_s26 + $0x90] ss:$8 sps:$4 sm:$0xff]  }
  0x78   : > { %2951 = vmatpush3.bf16.msra.mxu0 %v3150_v11  ;;  %2856 = vmatprep.subr.bf16.mxu1 %v3152_v15  ;;  %v3163_v11 = vld [vmem:[%s3608_s1 + $0xf0] sm:$0xff]  }
  0x79   : > { %2952 = vmatprep.subr.bf16.mxu0 %v3153_v19  ;;  %2946 = vmatprep.mubr.bf16.mxu0 %v3162_v26  ;;  %v3165_v12 = vld [vmem:[%s3608_s1 + $0x1f0] sm:$0xff]   ;;  %v2635_v26 = vld [vmem:[%s3234_s26 + $0x28] sm:$0xf] }
  0x7a   : > { %2850 = vmatprep.mubr.bf16.mxu1 %v2429_v63  ;;  %v2013_v37 = vshrl.u32 %v2635_v26, 16  ;;  %v2016_v38 = vshll.u32 %v2635_v26, 16 }
  0x7b   : > { %2857 = vmatpush3.bf16.msra.mxu1 %v3152_v15  ;;  %v3172_v15 = vld [vmem:[%s3608_s1 + $0x200] sm:$0xff]  }
  0x7c   : > { %2953 = vmatpush3.bf16.msra.mxu0 %v3153_v19  ;;  %2858 = vmatprep.subr.bf16.mxu1 %v3154_v36  ;;  %v2630_v19 = vld [vmem:[%s3234_s26 + $0x14] sm:$0x1]  ;;  %v2015_v48 = vrot.slane %v2013_v37, 4  ;;  %v2018_v49 = vrot.slane %v2016_v38, 5 }
  0x7d   : > { %2954 = vmatprep.subr.bf16.mxu0 %v3155_v42  ;;  %v1980_v25 = vshll.u32 %v2630_v19, 16  ;;  %v3182_v38 = vld [vmem:[%s3608_s1 + $0x230] sm:$0xff]  }
  0x7e   : > { %2851 = vmatmul.mubr.bf16.gmra.mrb[4].mxu1 %v2430_v7  ;;  %v2019_v56 = vor.u32 %v2018_v49, %v2015_v48  ;;  %v2641_v7 = vld [vmem:[%s3234_s26 + $0x40] sm:$0xf] }
  0x7f   : > { %2859 = vmatpush3.bf16.msra.mxu1 %v3154_v36  ;;  %2947 = vmatmul.mubr.bf16.gmra.mrb[4].mxu0 %v3164_v59  ;;  %v1963_v36 = vor.u32 %v1962_v28, %v1959_v27  ;;  %v1982_v47 = vrot.slane %v1980_v25, 5 }
  0x80   : > { %2955 = vmatpush3.bf16.msra.mxu0 %v3155_v42  ;;  %2860 = vmatprep.subr.bf16.mxu1 %v3156_v51  ;;  %v2027_v42 = vshrl.u32 %v2637_v30, 16  ;;  %v2020_v61 = vrot.slane %v2019_v56, 4 }
  0x81   : > { %2956 = vmatprep.subr.bf16.mxu0 %v3157_v62  ;;  %2966 = vmatprep.mubr.bf16.mxu0 %v3169_v5  ;;  %v1983_v0 = vsel %vm3341_vm2, %v1978_v52, %v1982_v47  ;;  %v3183_v47 = vld [vmem:[%s3608_s1 + $0x238] sm:$0xff]  }
  0x82   : > { %2870 = vmatprep.mubr.bf16.mxu1 %v3168_v8  ;;  %v2029_v53 = vrot.slane %v2027_v42, 4  ;;  %v2025_v3 = vsel %vm3341_vm2, %v2020_v61, %v2024_v57  ;;  %v2008_v42 = vshll.u32 %v2634_v33, 16 }
  0x83   : > { %2861 = vmatpush3.bf16.msra.mxu1 %v3156_v51  ;;  %v1964_v51 = vrot.slane %v1963_v36, 4 }
  0x84   : > { %2957 = vmatpush3.bf16.msra.mxu0 %v3157_v62  ;;  %2862 = vmatprep.subr.bf16.mxu1 %v3158_v2  ;;  %v2033_v59 = vor.u32 %v2032_v55, %v2029_v53  ;;  %v3176_v62 = vld [vmem:[%s3234_s26 + $0xc0] ss:$8 sps:$4 sm:$0xff]  }
  0x85   : > { %2958 = vmatprep.subr.bf16.mxu0 %v3159_v6  ;;  %v1969_v63 = vsel %vm3341_vm2, %v1964_v51, %v1968_v46  ;;  %v2010_v51 = vrot.slane %v2008_v42, 5 }
  0x86   : > { %v2034_v1 = vrot.slane %v2033_v59, 4  ;;  %v2659_v8 = vcombine.low %v1969_v63, %v1983_v0 }
  0x87   : > { %2863 = vmatpush3.bf16.msra.mxu1 %v3158_v2  ;;  %v3177_v2 = vld [vmem:[%s3234_s26 + $0x80] ss:$8 sps:$4 sm:$0xff]  }
  0x88   : > { %2959 = vmatpush3.bf16.msra.mxu0 %v3159_v6  ;;  %2864 = vmatprep.subr.bf16.mxu1 %v3160_v9  ;;  %v2039_v5 = vsel %vm3341_vm2, %v2034_v1, %v2038_v60  ;;  %v2639_v6 = vld [vmem:[%s3234_s26 + $0x38] sm:$0xf] }
  0x89   : > { %2960 = vmatprep.subr.bf16.mxu0 %v3161_v10 }
  0x8b   : > { %2865 = vmatpush3.bf16.msra.mxu1 %v3160_v9  ;;  %v2631_v9 = vld [vmem:[%s3234_s26 + $0x18] sm:$0xf] }
  0x8c   : > { %2961 = vmatpush3.bf16.msra.mxu0 %v3161_v10  ;;  %2866 = vmatprep.subr.bf16.mxu1 %v3163_v11  ;;  %v2633_v10 = vld [vmem:[%s3234_s26 + $0x20] sm:$0xf]  ;;  %v1985_v17 = vshrl.u32 %v2631_v9, 16  ;;  %v1988_v18 = vshll.u32 %v2631_v9, 16 }
  0x8d   : > { %2962 = vmatprep.subr.bf16.mxu0 %v3165_v12  ;;  %v1999_v19 = vshrl.u32 %v2633_v10, 16  ;;  %v2002_v20 = vshll.u32 %v2633_v10, 16 }
  0x8e   : > { %v1987_v27 = vrot.slane %v1985_v17, 4  ;;  %v1990_v28 = vrot.slane %v1988_v18, 5 }
  0x8f   : > { %2867 = vmatpush3.bf16.msra.mxu1 %v3163_v11  ;;  %v2661_v11 = vcombine.low %v2025_v3, %v2039_v5  ;;  %v2001_v29 = vrot.slane %v1999_v19, 4  ;;  %v2004_v30 = vrot.slane %v2002_v20, 5 }
  0x90   : > { %2963 = vmatpush3.bf16.msra.mxu0 %v3165_v12  ;;  %2868 = vmatprep.subr.bf16.mxu1 %v3166_v13  ;;  %v2041_v12 = vshrl.u32 %v2639_v6, 16  ;;  %v1991_v39 = vor.u32 %v1990_v28, %v1987_v27 }
  0x91   : > { %2964 = vmatprep.subr.bf16.mxu0 %v3167_v14  ;;  %v2005_v41 = vor.u32 %v2004_v30, %v2001_v29 }
  0x92   : > { %v2043_v23 = vrot.slane %v2041_v12, 4  ;;  %v1992_v48 = vrot.slane %v1991_v39, 4 }
  0x93   : > { %2869 = vmatpush3.bf16.msra.mxu1 %v3166_v13  ;;  %v2044_v13 = vshll.u32 %v2639_v6, 16 }
  0x94   : > { %2965 = vmatpush3.bf16.msra.mxu0 %v3167_v14  ;;  %2998 = vmatprep.subr.bf16.mxu1 %v3172_v15  ;;  %v2055_v14 = vshrl.u32 %v2641_v7, 16 }
  0x95   : > { %2974 = vmatprep.subr.bf16.mxu0 %v3172_v15  ;;  %v2046_v24 = vrot.slane %v2044_v13, 5 }
  0x96   : > { %2871 = vmatmul.mubr.bf16.vlgmr.msra.gmra.mrb[0].mxu1 %v3170_v31  ;;  %v2057_v25 = vrot.slane %v2055_v14, 4  ;;  %v2642_v31 = vld [vmem:[%s3234_s26 + $0x44] sm:$0x1] }
  0x97   : > { %2967 = vmatmul.mubr.bf16.vlgmr.msra.gmra.mrb[0].mxu0 %v3171_v35  ;;  %3006 = vmatpush3.bf16.msra.mxu1 %v3172_v15  ;;  %v2047_v34 = vor.u32 %v2046_v24, %v2043_v23  ;;  %v2050_v35 = vshll.u32 %v2640_v22, 16  ;;  %v2064_v37 = vshll.u32 %v2642_v31, 16 }
  0x98   : > { %2975 = vmatpush3.bf16.msra.mxu0 %v3172_v15  ;;  %2999 = vmatprep.subr.bf16.mxu1 %v3173_v40  ;;  %v2058_v15 = vshll.u32 %v2641_v7, 16 }
  0x99   : > { %2976 = vmatprep.subr.bf16.mxu0 %v3173_v40  ;;  %2874 = vmatprep.mubr.bf16.mxu1 %v3174_v45  ;;  %v2048_v43 = vrot.slane %v2047_v34, 4  ;;  %v2052_v44 = vrot.slane %v2050_v35, 5  ;;  %v2066_v46 = vrot.slane %v2064_v37, 5 }
  0x9a   : > { %2970 = vmatprep.mubr.bf16.mxu0 %v3175_v50  ;;  %v2060_v26 = vrot.slane %v2058_v15, 5  ;;  %v2006_v50 = vrot.slane %v2005_v41, 4 }
  0x9b   : > { %3007 = vmatpush3.bf16.msra.mxu1 %v3173_v40  ;;  %v2053_v52 = vsel %vm3341_vm2, %v2048_v43, %v2052_v44 }
  0x9c   : > { %2977 = vmatpush3.bf16.msra.mxu0 %v3173_v40  ;;  %3000 = vmatprep.subr.bf16.mxu1 %v3178_v58  ;;  %v2061_v36 = vor.u32 %v2060_v26, %v2057_v25  ;;  %v1994_v40 = vshll.u32 %v2632_v32, 16  ;;  %v2011_v56 = vsel %vm3341_vm2, %v2006_v50, %v2010_v51 }
  0x9d   : > { %2978 = vmatprep.subr.bf16.mxu0 %v3178_v58 }
  0x9e   : > { %2875 = vmatmul.mubr.bf16.gmra.mrb[4].mxu1 %v3176_v62  ;;  %v2062_v45 = vrot.slane %v2061_v36, 4  ;;  %v1996_v49 = vrot.slane %v1994_v40, 5 }
  0x9f   : > { %2971 = vmatmul.mubr.bf16.gmra.mrb[4].mxu0 %v3177_v2  ;;  %3008 = vmatpush3.bf16.msra.mxu1 %v3178_v58 }
  0xa0   : > { %2979 = vmatpush3.bf16.msra.mxu0 %v3178_v58  ;;  %3001 = vmatprep.subr.bf16.mxu1 %v3179_v4  ;;  %v2067_v53 = vsel %vm3341_vm2, %v2062_v45, %v2066_v46  ;;  %v1997_v55 = vsel %vm3341_vm2, %v1992_v48, %v1996_v49 }
  0xa1   : > { %2980 = vmatprep.subr.bf16.mxu0 %v3179_v4  ;;  %2990 = vmatprep.mubr.bf16.mxu0 %v2659_v8  ;;  %v2662_v57 = vcombine.low %v2053_v52, %v2067_v53  ;;  %v2660_v58 = vcombine.low %v1997_v55, %v2011_v56 }
  0xa2   : > { %2994 = vmatprep.mubr.bf16.mxu1 %v2661_v11 }
  0xa3   : > { %3009 = vmatpush3.bf16.msra.mxu1 %v3179_v4 }
  0xa4   : > { %2981 = vmatpush3.bf16.msra.mxu0 %v3179_v4  ;;  %3002 = vmatprep.subr.bf16.mxu1 %v3180_v16 }
  0xa5   : > { %2982 = vmatprep.subr.bf16.mxu0 %v3180_v16 }
  0xa7   : > { %3010 = vmatpush3.bf16.msra.mxu1 %v3180_v16 }
  0xa8   : > { %2983 = vmatpush3.bf16.msra.mxu0 %v3180_v16  ;;  %3003 = vmatprep.subr.bf16.mxu1 %v3181_v21 }
  0xa9   : > { %2984 = vmatprep.subr.bf16.mxu0 %v3181_v21 }
  0xab   : > { %3011 = vmatpush3.bf16.msra.mxu1 %v3181_v21 }
  0xac   : > { %2985 = vmatpush3.bf16.msra.mxu0 %v3181_v21  ;;  %3004 = vmatprep.subr.bf16.mxu1 %v3182_v38 }
  0xad   : > { %2986 = vmatprep.subr.bf16.mxu0 %v3182_v38 }
  0xaf   : > { %3012 = vmatpush3.bf16.msra.mxu1 %v3182_v38 }
  0xb0   : > { %2987 = vmatpush3.bf16.msra.mxu0 %v3182_v38  ;;  %3005 = vmatprep.subr.bf16.mxu1 %v3183_v47 }
  0xb1   : > { %2988 = vmatprep.subr.bf16.mxu0 %v3183_v47 }
  0xb3   : > { %3013 = vmatpush3.bf16.msra.mxu1 %v3183_v47 }
  0xb4   : > { %2989 = vmatpush3.bf16.msra.mxu0 %v3183_v47 }
  0xb6   : > { %2995 = vmatmul.mubr.bf16.vlgmr.msra.gmra.mrb[8].mxu1 %v2662_v57 }
  0xb7   : > { %2991 = vmatmul.mubr.bf16.vlgmr.msra.gmra.mrb[0].mxu0 %v2660_v58  ;;  %v2246_v58 = vld [vmem:[%s3610_s3] sm:$0x1] }
 0x169   : > { %v2872_v59 = vpop.f32.mrb[0].mxu1 }
 0x16a   : > { %v1026_v60 = vpop.f32.mrb[1].mxu1 }
 0x16b   : > { %v2873_v61 = vpop.f32.mrb[2].mxu1 }
 0x16c   : > { %v1029_v62 = vpop.f32.mrb[3].mxu1 }
 0x171   : > { %v2876_v63 = vpop.f32.mrb[4].mxu1 }
 0x172   : > { %v2972_v0 = vpop.f32.mrb[4].mxu0  ;;  %v1042_v1 = vpop.f32.mrb[5].mxu1 }
 0x173   : > { %v3018_v2 = vadd.f32 %v2972_v0, %v2876_v63  ;;  %v1901_v3 = vpop.f32.mrb[5].mxu0  ;;  %v2877_v4 = vpop.f32.mrb[6].mxu1 }
 0x174   : > { %v3020_v54 = vadd.f32 %v1901_v3, %v1042_v1  ;;  %v2973_v5 = vpop.f32.mrb[6].mxu0  ;;  %v1045_v6 = vpop.f32.mrb[7].mxu1 }
 0x175   : > { %v3022_v7 = vadd.f32 %v2973_v5, %v2877_v4  ;;  %v1904_v8 = vpop.f32.mrb[7].mxu0 }
 0x176   : > { %v3024_v9 = vadd.f32 %v1904_v8, %v1045_v6 }
 0x189   : > { %v2996_v10 = vpop.f32.mrb[8].mxu1 }
 0x18a   : > { %v2992_v11 = vpop.f32.mrb[0].mxu0  ;;  %v3019_v12 = vadd.f32 %v3018_v2, %v2996_v10  ;;  %v2199_v13 = vpop.f32.mrb[9].mxu1 }
 0x18b   : > { %v3014_v14 = vadd.f32 %v2992_v11, %v2872_v59  ;;  %v2183_v15 = vpop.f32.mrb[1].mxu0  ;;  %v3021_v16 = vadd.f32 %v3020_v54, %v2199_v13  ;;  %v2997_v17 = vpop.f32.mrb[10].mxu1 }
 0x18c   : > { %2244 = vst [vmem:[%s3229_s23 + $0x30] sm:$0xff] %v3019_v12  ;;  %v3015_v18 = vadd.f32 %v2183_v15, %v1026_v60  ;;  %v2993_v19 = vpop.f32.mrb[2].mxu0  ;;  %v3023_v20 = vadd.f32 %v3022_v7, %v2997_v17  ;;  %v2202_v21 = vpop.f32.mrb[11].mxu1  ;;  %v2269_v41 = vmul.f32 %v3019_v12, %v3019_v12 }
 0x18d   : > { %2240 = vst [vmem:[%s3229_s23 + $0x10] sm:$0xff] %v3014_v14  ;;  %2242 = vst [vmem:[%s3229_s23 + $0x20] sm:$0xff] %v3021_v16  ;;  %v3016_v22 = vadd.f32 %v2993_v19, %v2873_v61  ;;  %v2186_v23 = vpop.f32.mrb[3].mxu0  ;;  %v3025_v24 = vadd.f32 %v3024_v9, %v2202_v21  ;;  %v2265_v29 = vmul.f32 %v3014_v14, %v3014_v14  ;;  %v2262_v61 = vld [vmem:[%s3611_s4] sm:$0x1] }
 0x18e   : > { %2238 = vst [vmem:[%s3229_s23] sm:$0xff] %v3015_v18  ;;  %2245 = vst [vmem:[%s3229_s23 + $0x38] sm:$0xff] %v3023_v20  ;;  %v3017_v25 = vadd.f32 %v2186_v23, %v1029_v62  ;;  %v2263_v26 = vmul.f32 %v3015_v18, %v3015_v18  ;;  %v2267_v35 = vmul.f32 %v3021_v16, %v3021_v16 }
 0x18f   : > { %2241 = vst [vmem:[%s3229_s23 + $0x18] sm:$0xff] %v3016_v22  ;;  %2243 = vst [vmem:[%s3229_s23 + $0x28] sm:$0xff] %v3025_v24  ;;  %v2266_v32 = vmul.f32 %v3016_v22, %v3016_v22  ;;  %v2268_v39 = vmul.f32 %v3025_v24, %v3025_v24  ;;  %v2270_v44 = vmul.f32 %v3023_v20, %v3023_v20 }
 0x190   : > { %2239 = vst [vmem:[%s3229_s23 + $0x8] sm:$0xff] %v3017_v25  ;;  %v2247_v27 = vadd.f32 %v3017_v25, %v3015_v18  ;;  %v2264_v28 = vmul.f32 %v3017_v25, %v3017_v25 }
 0x192   : > { %v2248_v30 = vadd.f32 %v3014_v14, %v2247_v27  ;;  %v2271_v31 = vadd.f32 %v2264_v28, %v2263_v26 }
 0x194   : > { %v2272_v33 = vadd.f32 %v2271_v31, %v2265_v29  ;;  %v2249_v34 = vadd.f32 %v3016_v22, %v2248_v30 }
 0x196   : > { %v2250_v36 = vadd.f32 %v3021_v16, %v2249_v34  ;;  %v2273_v37 = vadd.f32 %v2272_v33, %v2266_v32 }
 0x198   : > { %v2251_v38 = vadd.f32 %v3025_v24, %v2250_v36  ;;  %v2274_v40 = vadd.f32 %v2273_v37, %v2267_v35 }
 0x19a   : > { %v2252_v42 = vadd.f32 %v3019_v12, %v2251_v38  ;;  %v2275_v43 = vadd.f32 %v2274_v40, %v2268_v39 }
 0x19c   : > { %v2253_v45 = vadd.f32 %v3023_v20, %v2252_v42  ;;  %v2276_v46 = vadd.f32 %v2275_v43, %v2269_v41 }
 0x19e   : > { %v2254_v47 = vrot.slane %v2253_v45, 4  ;;  %v2277_v48 = vadd.f32 %v2276_v46, %v2270_v44 }
 0x1a0   : > { %v2255_v49 = vadd.f32 %v2254_v47, %v2253_v45  ;;  %v2278_v50 = vrot.slane %v2277_v48, 4 }
 0x1a2   : > { %v2256_v51 = vrot.slane %v2255_v49, 2  ;;  %v2279_v52 = vadd.f32 %v2278_v50, %v2277_v48 }
 0x1a4   : > { %v2257_v53 = vadd.f32 %v2256_v51, %v2255_v49  ;;  %v2280_v55 = vrot.slane %v2279_v52, 2 }
 0x1a6   : > { %v2258_v56 = vrot.slane %v2257_v53, 1  ;;  %v2281_v57 = vadd.f32 %v2280_v55, %v2279_v52 }
 0x1a8   : > { %v2259_v59 = vadd.f32 %v2258_v56, %v2257_v53  ;;  %v2282_v60 = vrot.slane %v2281_v57, 1 }
 0x1aa   : > { %v2260_v62 = vadd.f32 %v2259_v59, %v2246_v58  ;;  %v2283_v63 = vadd.f32 %v2282_v60, %v2281_v57 }
 0x1ac   : > { %2261 = vst [vmem:[%s3610_s3] sm:$0x1] %v2260_v62  ;;  %v2284_v0 = vadd.f32 %v2283_v63, %v2262_v61 }
 0x1ae   : > { %2285 = vst [vmem:[%s3611_s4] sm:$0x1] %v2284_v0 }
 0x1af PF: > { %s15_s15 = sadd.s32 1, %s3190_s15  }
 0x1b0   : > { %p12_p6 = scmp.ge.s32.totalorder %s15_s15, 4  }
 0x1b2   :  { %14 = sbr.rel (!%p12_p6) target bundleno = 1 (0x1), region = 91 }

// kernel: resblock_forward.4
= control target key start
LH: loop header
LB: loop body
LE: loop exit
PB: predicated region body
PF: predicated region fallthrough
CT: control target
= control target key end

     0   :  { %s3688_s27 = smov 0   ;;  %s4282_s0 = inlined_call_operand.vmem [shape: f32[2,8,8,128], index: 0, kind: input, shape index: {}]   ;;  %s4283_s1 = inlined_call_operand.vmem [shape: f32[1,128], index: 1, kind: input, shape index: {}]   ;;  %s4284_s2 = inlined_call_operand.vmem [shape: f32[1,128], index: 2, kind: input, shape index: {}]   ;;  %s4285_s3 = inlined_call_operand.vmem [shape: f32[1,128], index: 3, kind: input, shape index: {}]   ;;  %s4286_s4 = inlined_call_operand.vmem [shape: f32[1,128], index: 4, kind: input, shape index: {}]   ;;  %s4287_s5 = inlined_call_operand.vmem [shape: bf16[9,128,128], index: 5, kind: input, shape index: {}]   ;;  %s4288_s6 = inlined_call_operand.vmem [shape: f32[2,8,8,128], index: 6, kind: output, shape index: {0}]   ;;  %s4289_s7 = inlined_call_operand.vmem [shape: f32[1,128], index: 7, kind: output, shape index: {1}]   ;;  %s4290_s8 = inlined_call_operand.vmem [shape: f32[1,128], index: 8, kind: output, shape index: {2}]  }
   0x1 LB: > { %s2843_s28 = sadd.s32 4294967295, %s3639_s27   ;;  %p2847_p0 = scmp.ge.s32.totalorder %s3639_s27, 1  ;;  %s3639_s27 = sphi %s3688_s27, %s19_s27  }
   0x2   : > { %p257_p1 = scmp.lt.s32.totalorder %s3639_s27, 3 }
   0x4   : > { %p258_p2 = pnand %p2847_p0, %p257_p1 }
   0x5   : > { %p291_p3 = scmp.lt.s32.totalorder (!%p258_p2), %s2843_s28, 1  ;;  %p2852_p4 = scmp.ne.s32.totalorder (!%p258_p2), %s2843_s28, 0 }
   0x6   : > { %261 = sbr.rel (%p258_p2) target bundleno = 478 (0x1de), region = 44 }
   0xd   : > { %s292_s29 = scalar_select %p291_p3, %s2843_s28, 1 }
   0xe   : > { %305 = sbr.rel (%p2852_p4) target bundleno = 26 (0x1a), region = 48  ;;  %v3641_v0 = vmov (!%p2852_p4), 0.0   ;;  %v3642_v1 = vmov (!%p2852_p4), 0  }
   0xf   : > { %s3123_s30 = sshll.u32 %s292_s29, 6  ;;  %306 = vst [vmem:[%s4289_s7] sm:$0x1] (!%p2852_p4), %v3641_v0  ;;  %307 = vst [vmem:[%s4290_s8] sm:$0x1] (!%p2852_p4), %v3641_v0 }
  0x10   : > { %s3699_s11 = scalar_lea.vmem %s4282_s0, %s3123_s30  ;;  %s3704_s14 = scalar_lea.vmem %s4288_s6, %s3123_s30  ;;  %308 = vst [vmem:[#allocation2] sm:$0xf] (!%p2852_p4), %v3642_v1  ;;  %309 = vst [vmem:[#allocation2 + $0x4] sm:$0x1] (!%p2852_p4), %v3642_v1 }
  0x11   : > { %310 = vst [vmem:[#allocation2 + $0x8] sm:$0xf] (!%p2852_p4), %v3642_v1  ;;  %311 = vst [vmem:[#allocation2 + $0xc] sm:$0x1] (!%p2852_p4), %v3642_v1 }
  0x12   : > { %312 = vst [vmem:[#allocation2 + $0x10] sm:$0xf] (!%p2852_p4), %v3642_v1  ;;  %313 = vst [vmem:[#allocation2 + $0x14] sm:$0x1] (!%p2852_p4), %v3642_v1 }
  0x13   : > { %314 = vst [vmem:[#allocation2 + $0x18] sm:$0xf] (!%p2852_p4), %v3642_v1  ;;  %315 = vst [vmem:[#allocation2 + $0x1c] sm:$0x1] (!%p2852_p4), %v3642_v1 }
  0x14   : > { %316 = vst [vmem:[#allocation2 + $0x20] sm:$0xf] (!%p2852_p4), %v3642_v1  ;;  %317 = vst [vmem:[#allocation2 + $0x24] sm:$0x1] (!%p2852_p4), %v3642_v1 }
  0x15   : > { %318 = vst [vmem:[#allocation2 + $0x28] sm:$0xf] %v3642_v1  ;;  %319 = vst [vmem:[#allocation2 + $0x2c] sm:$0x1] %v3642_v1 }
  0x16   : > { %320 = vst [vmem:[#allocation2 + $0x30] sm:$0xf] %v3642_v1  ;;  %321 = vst [vmem:[#allocation2 + $0x34] sm:$0x1] %v3642_v1 }
  0x17   : > { %322 = vst [vmem:[#allocation2 + $0x38] sm:$0xf] %v3642_v1  ;;  %323 = vst [vmem:[#allocation2 + $0x3c] sm:$0x1] %v3642_v1 }
  0x18   : > { %324 = vst [vmem:[#allocation2 + $0x40] sm:$0xf] %v3642_v1  ;;  %325 = vst [vmem:[#allocation2 + $0x44] sm:$0x1] %v3642_v1 }
  0x19   : > { %326 = vst [vmem:[#allocation2 + $0x48] sm:$0xf] %v3642_v1  ;;  %327 = vst [vmem:[#allocation2 + $0x4c] sm:$0x1] %v3642_v1 }
  0x1a PF: > { %v3547_v2 = vld [vmem:[%s4287_s5] sm:$0xff]   ;;  %v3548_v3 = vld [vmem:[%s4287_s5 + $0x8] sm:$0xff]   ;;  %v3549_v5 = vld [vmem:[%s4287_s5 + $0x10] sm:$0xff]   ;;  %v350_v24 = vlaneseq  ;;  %vm498_vm0 = vcmask 1043456   ;;  %vm499_vm1 = vsmask.f32 7938 }
  0x1b   : > { %3241 = vmatprep.subr.bf16.mxu1 %v3547_v2  ;;  %v3550_v4 = vld [vmem:[%s4287_s5 + $0x100] sm:$0xff]   ;;  %v3552_v6 = vld [vmem:[%s4287_s5 + $0x108] sm:$0xff]   ;;  %v3554_v7 = vld [vmem:[%s4287_s5 + $0x110] sm:$0xff]   ;;  %vm504_vm2 = vcmask 1040384   ;;  %vm505_vm3 = vsmask.f32 256 }
  0x1c   : > { %3242 = vmatpush3.bf16.msra.mxu1 %v3547_v2  ;;  %3337 = vmatprep.subr.bf16.mxu0 %v3550_v4  ;;  %v3551_v8 = vld [vmem:[%s4287_s5 + $0x18] sm:$0xff]   ;;  %v3553_v10 = vld [vmem:[%s4287_s5 + $0x20] sm:$0xff]   ;;  %v3555_v16 = vld [vmem:[%s4287_s5 + $0x28] sm:$0xff]   ;;  %v351_v26 = vshrl.u32 %v350_v24, 7  ;;  %vm769_vm6 = vsmask.f32 3328 }
  0x1d   : > { %3243 = vmatprep.subr.bf16.mxu1 %v3548_v3  ;;  %3338 = vmatpush3.bf16.msra.mxu0 %v3550_v4  ;;  %v3556_v9 = vld [vmem:[%s4287_s5 + $0x118] sm:$0xff]   ;;  %v328_v11 = vld [vmem:[%s4283_s1] sm:$0x1]  ;;  %v3560_v18 = vld [vmem:[%s4287_s5 + $0x128] sm:$0xff]   ;;  %vm770_vm7 = vsmask.f32 7440 }
  0x1e   : > { %3339 = vmatprep.subr.bf16.mxu0 %v3552_v6  ;;  %v330_v12 = vld [vmem:[%s4284_s2] sm:$0x1]  ;;  %v329_v14 = vmul.f32 0.0078125, %v328_v11  ;;  %v3557_v20 = vld [vmem:[%s4287_s5 + $0x30] sm:$0xff]   ;;  %v3559_v23 = vld [vmem:[%s4287_s5 + $0x38] sm:$0xff]   ;;  %v352_v30 = vsub.s32 0, %v351_v26 }
  0x1f   : > { %v3558_v13 = vld [vmem:[%s4287_s5 + $0x120] sm:$0xff]   ;;  %v331_v15 = vmul.f32 0.0078125, %v330_v12  ;;  %v3564_v22 = vld [vmem:[%s4287_s5 + $0x130] sm:$0xff]   ;;  %v3566_v25 = vld [vmem:[%s4287_s5 + $0x138] sm:$0xff]   ;;  %vm1086_vm9 = vcmask 1042432   ;;  %vm1087_vm10 = vcmask 1046532  }
  0x20   : > { %3244 = vmatpush3.bf16.msra.mxu1 %v3548_v3  ;;  %v332_v17 = vmul.f32 %v329_v14, %v329_v14  ;;  %v3769_v27 = vld [vmem:[%s4287_s5 + $0x40] sm:$0xff]   ;;  %v342_v35 = vld [vmem:[%s3699_s11 + $0x8] sm:$0xff]  ;;  %v343_v36 = vld [vmem:[%s3699_s11 + $0x10] sm:$0xff] }
  0x21   : > { %3245 = vmatprep.subr.bf16.mxu1 %v3549_v5  ;;  %3340 = vmatpush3.bf16.msra.mxu0 %v3552_v6  ;;  %v334_v28 = vld [vmem:[%s4285_s3] sm:$0x1]  ;;  %v344_v37 = vld [vmem:[%s3699_s11 + $0x18] sm:$0xff]  ;;  %v346_v39 = vld [vmem:[%s3699_s11 + $0x28] sm:$0xff] }
  0x22   : > { %3341 = vmatprep.subr.bf16.mxu0 %v3554_v7  ;;  %v333_v19 = vsub.f32 %v331_v15, %v332_v17  ;;  %v3777_v29 = vld [vmem:[%s4287_s5 + $0x140] sm:$0xff]   ;;  %v347_v42 = vld [vmem:[%s3699_s11 + $0x30] sm:$0xff]  ;;  %vm3823_vm4 = vmand %vm498_vm0, %vm499_vm1 }
  0x23   : > { %v338_v32 = vld [vmem:[%s4286_s4] sm:$0x1]  ;;  %v513_v24 = vld [vmem:[#allocation2 + $0x14] sm:$0x1]  ;;  %vm3831_vm5 = vmand %vm504_vm2, %vm505_vm3 }
  0x24   : > { %3246 = vmatpush3.bf16.msra.mxu1 %v3549_v5  ;;  %v335_v21 = vadd.f32 1e-05, %v333_v19  ;;  %v341_v33 = vld [vmem:[%s3699_s11] sm:$0xff]  ;;  %v501_v19 = vld [vmem:[#allocation2 + $0x8] sm:$0xf]  ;;  %vm3888_vm8 = vmor %vm769_vm6, %vm770_vm7 }
  0x25   : > { %3247 = vmatprep.subr.bf16.mxu1 %v3551_v8  ;;  %3342 = vmatpush3.bf16.msra.mxu0 %v3554_v7  ;;  %v345_v38 = vld [vmem:[%s3699_s11 + $0x20] sm:$0xff]  ;;  %vm3958_vm11 = vmor %vm1086_vm9, %vm1087_vm10 }
  0x26   : > { %3343 = vmatprep.subr.bf16.mxu0 %v3556_v9  ;;  %3631 = vrsqrt.f32 %v335_v21  ;;  %v745_v51 = vld [vmem:[#allocation2] sm:$0xf] }
  0x27   : > { %v773_v53 = vshrl.u32 %v745_v51, 16  ;;  %v776_v54 = vshll.u32 %v745_v51, 16 }
  0x28   : > { %3248 = vmatpush3.bf16.msra.mxu1 %v3551_v8 }
  0x29   : > { %3249 = vmatprep.subr.bf16.mxu1 %v3553_v10  ;;  %3344 = vmatpush3.bf16.msra.mxu0 %v3556_v9  ;;  %v3809_v62 = vrot.slane %v773_v53, 4  ;;  %v3811_v6 = vrot.slane %v776_v54, 5 }
  0x2a   : > { %3345 = vmatprep.subr.bf16.mxu0 %v3558_v13 }
  0x2c   : > { %3250 = vmatpush3.bf16.msra.mxu1 %v3553_v10 }
  0x2d   : > { %3251 = vmatprep.subr.bf16.mxu1 %v3555_v16  ;;  %3346 = vmatpush3.bf16.msra.mxu0 %v3558_v13 }
  0x2e   : > { %3347 = vmatprep.subr.bf16.mxu0 %v3560_v18 }
  0x30   : > { %3252 = vmatpush3.bf16.msra.mxu1 %v3555_v16  ;;  %v3632_v31 = vpop.eup %3631 }
  0x31   : > { %3253 = vmatprep.subr.bf16.mxu1 %v3557_v20  ;;  %3348 = vmatpush3.bf16.msra.mxu0 %v3560_v18  ;;  %v337_v34 = vmul.f32 %v3632_v31, %v334_v28 }
  0x32   : > { %3349 = vmatprep.subr.bf16.mxu0 %v3564_v22 }
  0x33   : > { %v339_v40 = vmul.f32 %v337_v34, %v329_v14  ;;  %v3790_v41 = vrot.slane %v337_v34, %v352_v30  ;;  %v779_v14 = vor.u32 %v3811_v6, %v3809_v62  ;;  %v522_v34 = vld [vmem:[#allocation2 + $0x20] sm:$0xf] }
  0x34   : > { %3254 = vmatpush3.bf16.msra.mxu1 %v3557_v20 }
  0x35   : > { %3255 = vmatprep.subr.bf16.mxu1 %v3559_v23  ;;  %3350 = vmatpush3.bf16.msra.mxu0 %v3564_v22  ;;  %v340_v43 = vsub.f32 %v338_v32, %v339_v40  ;;  %v355_v44 = vmul.f32 %v3790_v41, %v341_v33  ;;  %v356_v45 = vmul.f32 %v3790_v41, %v342_v35  ;;  %v510_v22 = vld [vmem:[#allocation2 + $0x10] sm:$0xf]  ;;  %v516_v32 = vld [vmem:[#allocation2 + $0x18] sm:$0xf]  ;;  %v519_v33 = vld [vmem:[#allocation2 + $0x1c] sm:$0x1] }
  0x36   : > { %3351 = vmatprep.subr.bf16.mxu0 %v3566_v25  ;;  %v357_v46 = vmul.f32 %v3790_v41, %v343_v36  ;;  %v358_v47 = vmul.f32 %v3790_v41, %v344_v37  ;;  %v359_v48 = vmul.f32 %v3790_v41, %v345_v38  ;;  %v360_v49 = vmul.f32 %v3790_v41, %v346_v39  ;;  %v525_v35 = vld [vmem:[#allocation2 + $0x24] sm:$0x1] }
  0x37   : > { %v361_v50 = vmul.f32 %v3790_v41, %v347_v42  ;;  %v3800_v52 = vrot.slane %v340_v43, %v352_v30 }
  0x38   : > { %3256 = vmatpush3.bf16.msra.mxu1 %v3559_v23  ;;  %v507_v23 = vld [vmem:[#allocation2 + $0xc] sm:$0x1] }
  0x39   : > { %3265 = vmatprep.subr.bf16.mxu1 %v3769_v27  ;;  %3352 = vmatpush3.bf16.msra.mxu0 %v3566_v25  ;;  %v369_v55 = vadd.f32 %v3800_v52, %v355_v44  ;;  %v370_v56 = vadd.f32 %v3800_v52, %v356_v45  ;;  %v371_v57 = vadd.f32 %v3800_v52, %v357_v46 }
  0x3a   : > { %3361 = vmatprep.subr.bf16.mxu0 %v3777_v29  ;;  %v372_v58 = vadd.f32 %v3800_v52, %v358_v47  ;;  %v373_v59 = vadd.f32 %v3800_v52, %v359_v48  ;;  %v374_v60 = vadd.f32 %v3800_v52, %v360_v49  ;;  %v375_v61 = vadd.f32 %v3800_v52, %v361_v50  ;;  %v746_v48 = vld [vmem:[#allocation2 + $0x4] sm:$0x1] }
  0x3b   : > { %v377_v63 = vmax.f32 %v369_v55, 0.0  ;;  %v378_v0 = vmax.f32 %v370_v56, 0.0  ;;  %v379_v1 = vmax.f32 %v371_v57, 0.0 }
  0x3c   : > { %v380_v2 = vmax.f32 %v372_v58, 0.0  ;;  %v381_v3 = vmax.f32 %v373_v59, 0.0  ;;  %v382_v4 = vmax.f32 %v374_v60, 0.0  ;;  %v383_v5 = vmax.f32 %v375_v61, 0.0 }
  0x3d   : > { %v3125_v7 = vpack.c.bf16 %v377_v63, %v377_v63  ;;  %v3126_v8 = vpack.c.bf16 %v378_v0, %v378_v0  ;;  %v3127_v9 = vpack.c.bf16 %v379_v1, %v379_v1  ;;  %v528_v63 = vld [vmem:[#allocation2 + $0x28] sm:$0xf]  ;;  %v534_v0 = vld [vmem:[#allocation2 + $0x30] sm:$0xf]  ;;  %v531_v1 = vld [vmem:[#allocation2 + $0x2c] sm:$0x1] }
  0x3e   : > { %v3128_v10 = vpack.c.bf16 %v380_v2, %v380_v2  ;;  %v3813_v11 = vpack.c.bf16 %v381_v3, %v381_v3  ;;  %v3815_v12 = vpack.c.bf16 %v382_v4, %v382_v4  ;;  %v3817_v13 = vpack.c.bf16 %v383_v5, %v383_v5 }
  0x3f   : > { %v418_v15 = vshrl.u32 %v3125_v7, 16  ;;  %v421_v16 = vshll.u32 %v3125_v7, 16  ;;  %v426_v17 = vshrl.u32 %v3126_v8, 16  ;;  %v429_v18 = vshll.u32 %v3126_v8, 16  ;;  %v537_v8 = vld [vmem:[#allocation2 + $0x34] sm:$0x1] }
  0x40   : > { %v434_v20 = vshrl.u32 %v3127_v9, 16  ;;  %v437_v21 = vshll.u32 %v3127_v9, 16  ;;  %v442_v25 = vshrl.u32 %v3128_v10, 16  ;;  %v445_v26 = vshll.u32 %v3128_v10, 16  ;;  %v348_v9 = vld [vmem:[%s3699_s11 + $0x38] sm:$0xff] }
  0x41   : > { %v420_v28 = vrot.slane %v418_v15, 7  ;;  %v428_v31 = vrot.slane %v426_v17, 7  ;;  %v450_v36 = vshrl.u32 %v3813_v11, 16  ;;  %v453_v37 = vshll.u32 %v3813_v11, 16 }
  0x42   : > { %v436_v38 = vrot.slane %v434_v20, 7  ;;  %v444_v40 = vrot.slane %v442_v25, 7  ;;  %v458_v42 = vshrl.u32 %v3815_v12, 16  ;;  %v461_v43 = vshll.u32 %v3815_v12, 16 }
  0x43   : > { %v423_v44 = vor.u32 %v421_v16, %v420_v28  ;;  %v424_v45 = vrot.slane %v420_v28, 4  ;;  %v431_v46 = vor.u32 %v429_v18, %v428_v31  ;;  %v432_v47 = vrot.slane %v428_v31, 4  ;;  %v540_v16 = vld [vmem:[#allocation2 + $0x38] sm:$0xf] }
  0x44   : > { %v439_v49 = vor.u32 %v437_v21, %v436_v38  ;;  %v440_v50 = vrot.slane %v436_v38, 4  ;;  %v447_v51 = vor.u32 %v445_v26, %v444_v40  ;;  %v448_v53 = vrot.slane %v444_v40, 4 }
  0x45   : > { %v502_v54 = vsel %vm3823_vm4, %v423_v44, %v501_v19  ;;  %v511_v55 = vsel %vm3823_vm4, %v431_v46, %v510_v22  ;;  %v508_v56 = vsel %vm3831_vm5, %v424_v45, %v507_v23  ;;  %v514_v57 = vsel %vm3831_vm5, %v432_v47, %v513_v24  ;;  %v543_v22 = vld [vmem:[#allocation2 + $0x3c] sm:$0x1]  ;;  %v3565_v23 = vld [vmem:[%s4287_s5 + $0x48] sm:$0xff]  }
  0x46   : > { %503 = vst [vmem:[#allocation2 + $0x8] sm:$0xf] %v502_v54  ;;  %512 = vst [vmem:[#allocation2 + $0x10] sm:$0xf] %v511_v55  ;;  %v517_v58 = vsel %vm3823_vm4, %v439_v49, %v516_v32  ;;  %v520_v59 = vsel %vm3831_vm5, %v440_v50, %v519_v33  ;;  %v523_v60 = vsel %vm3823_vm4, %v447_v51, %v522_v34  ;;  %v452_v2 = vrot.slane %v450_v36, 7  ;;  %v3567_v36 = vld [vmem:[%s4287_s5 + $0x50] sm:$0xff]  }
  0x47   : > { %509 = vst [vmem:[#allocation2 + $0xc] sm:$0x1] %v508_v56  ;;  %515 = vst [vmem:[#allocation2 + $0x14] sm:$0x1] %v514_v57  ;;  %v526_v61 = vsel %vm3831_vm5, %v448_v53, %v525_v35  ;;  %v460_v3 = vrot.slane %v458_v42, 7  ;;  %v466_v4 = vshrl.u32 %v3817_v13, 16  ;;  %v362_v25 = vmul.f32 %v3790_v41, %v348_v9 }
  0x48   : > { %518 = vst [vmem:[#allocation2 + $0x18] sm:$0xf] %v517_v58  ;;  %521 = vst [vmem:[#allocation2 + $0x1c] sm:$0x1] %v520_v59  ;;  %v782_v5 = vshll.u32 %v746_v48, 16  ;;  %v469_v7 = vshll.u32 %v3817_v13, 16  ;;  %v455_v10 = vor.u32 %v453_v37, %v452_v2 }
  0x49   : > { %524 = vst [vmem:[#allocation2 + $0x20] sm:$0xf] %v523_v60  ;;  %527 = vst [vmem:[#allocation2 + $0x24] sm:$0x1] %v526_v61  ;;  %v456_v11 = vrot.slane %v452_v2, 4  ;;  %v463_v12 = vor.u32 %v461_v43, %v460_v3  ;;  %v464_v15 = vrot.slane %v460_v3, 4  ;;  %v3884_v47 = vadd.f32 %v3800_v52, %v362_v25 }
  0x4a   : > { %v468_v17 = vrot.slane %v466_v4, 7  ;;  %v3859_v18 = vrot.slane %v779_v14, 4  ;;  %v529_v19 = vsel %vm3823_vm4, %v455_v10, %v528_v63  ;;  %v3872_v14 = vrot.slane %v782_v5, 5  ;;  %v3569_v2 = vld [vmem:[%s4287_s5 + $0x58] sm:$0xff]  }
  0x4b   : > { %v535_v13 = vsel %vm3823_vm4, %v463_v12, %v534_v0  ;;  %v532_v20 = vsel %vm3831_vm5, %v456_v11, %v531_v1  ;;  %v538_v21 = vsel %vm3831_vm5, %v464_v15, %v537_v8  ;;  %530 = vst [vmem:[#allocation2 + $0x28] sm:$0xf] %v529_v19 }
  0x4c   : > { %v471_v62 = vor.u32 %v469_v7, %v468_v17  ;;  %v472_v6 = vrot.slane %v468_v17, 4  ;;  %536 = vst [vmem:[#allocation2 + $0x30] sm:$0xf] %v535_v13  ;;  %533 = vst [vmem:[#allocation2 + $0x2c] sm:$0x1] %v532_v20 }
  0x4d   : > { %539 = vst [vmem:[#allocation2 + $0x34] sm:$0x1] %v538_v21  ;;  %v3561_v24 = vld [vmem:[#allocation2] ss:$8 sps:$4 sm:$0xff]   ;;  %v1471_v34 = vld [vmem:[#allocation2 + $0x10] sm:$0xf] }
  0x4e   : > { %v1469_v28 = vld [vmem:[#allocation2 + $0x8] sm:$0xf]  ;;  %v541_v31 = vsel %vm3823_vm4, %v471_v62, %v540_v16  ;;  %v544_v32 = vsel %vm3831_vm5, %v472_v6, %v543_v22  ;;  %3257 = vmatprep.mubr.bf16.mxu1 %v3561_v24  ;;  %v1470_v33 = vld [vmem:[#allocation2 + $0xc] sm:$0x1]  ;;  %v1472_v35 = vld [vmem:[#allocation2 + $0x14] sm:$0x1] }
  0x4f   : > { %v3563_v26 = vld [vmem:[#allocation2 + $0x10] ss:$8 sps:$4 sm:$0xff]   ;;  %542 = vst [vmem:[#allocation2 + $0x38] sm:$0xf] %v541_v31  ;;  %545 = vst [vmem:[#allocation2 + $0x3c] sm:$0x1] %v544_v32 }
  0x50   : > { %3258 = vmatmul.mubr.bf16.vlgmr.msra.gmra.mrb[0].mxu1 %v3563_v26  ;;  %v1494_v41 = vshrl.u32 %v1469_v28, 16  ;;  %v1497_v37 = vshll.u32 %v1469_v28, 16  ;;  %v1503_v38 = vshll.u32 %v1470_v33, 16  ;;  %v1508_v40 = vshrl.u32 %v1471_v34, 16  ;;  %v1473_v42 = vld [vmem:[#allocation2 + $0x18] sm:$0xf] }
  0x51   : > { %3266 = vmatpush3.bf16.msra.mxu1 %v3769_v27  ;;  %v1511_v43 = vshll.u32 %v1471_v34, 16  ;;  %v1517_v44 = vshll.u32 %v1472_v35, 16  ;;  %v1474_v45 = vld [vmem:[#allocation2 + $0x1c] sm:$0x1]  ;;  %v1475_v46 = vld [vmem:[#allocation2 + $0x20] sm:$0xf] }
  0x52   : > { %3267 = vmatprep.subr.bf16.mxu1 %v3565_v23  ;;  %v1496_v48 = vrot.slane %v1494_v41, 4  ;;  %v1499_v49 = vrot.slane %v1497_v37, 5  ;;  %v1505_v50 = vrot.slane %v1503_v38, 5  ;;  %v1510_v51 = vrot.slane %v1508_v40, 4  ;;  %v1476_v53 = vld [vmem:[#allocation2 + $0x24] sm:$0x1] }
  0x53   : > { %v1513_v54 = vrot.slane %v1511_v43, 5  ;;  %v1519_v55 = vrot.slane %v1517_v44, 5  ;;  %v1522_v56 = vshrl.u32 %v1473_v42, 16  ;;  %v1525_v57 = vshll.u32 %v1473_v42, 16  ;;  %v3575_v3 = vld [vmem:[#allocation2 + $0x20] ss:$8 sps:$4 sm:$0xff]  }
  0x54   : > { %v1500_v58 = vor.u32 %v1499_v49, %v1496_v48  ;;  %v1531_v59 = vshll.u32 %v1474_v45, 16  ;;  %v1536_v27 = vshrl.u32 %v1475_v46, 16  ;;  %v1539_v60 = vshll.u32 %v1475_v46, 16  ;;  %3261 = vmatprep.mubr.bf16.mxu1 %v3575_v3  ;;  %v747_v17 = vld [vmem:[#allocation2 + $0x8] sm:$0xf]  ;;  %v3571_v24 = vld [vmem:[%s4287_s5 + $0x60] sm:$0xff]  }
  0x55   : > { %3268 = vmatpush3.bf16.msra.mxu1 %v3565_v23  ;;  %v1514_v61 = vor.u32 %v1513_v54, %v1510_v51  ;;  %v1524_v63 = vrot.slane %v1522_v56, 4  ;;  %v1527_v0 = vrot.slane %v1525_v57, 5  ;;  %v1545_v1 = vshll.u32 %v1476_v53, 16  ;;  %v748_v19 = vld [vmem:[#allocation2 + $0xc] sm:$0x1] }
  0x56   : > { %3269 = vmatprep.subr.bf16.mxu1 %v3567_v36  ;;  %v1501_v4 = vrot.slane %v1500_v58, 4  ;;  %v1533_v5 = vrot.slane %v1531_v59, 5  ;;  %v1538_v7 = vrot.slane %v1536_v27, 4  ;;  %v1541_v8 = vrot.slane %v1539_v60, 5  ;;  %v3577_v12 = vld [vmem:[#allocation2 + $0x30] ss:$8 sps:$4 sm:$0xff]  }
  0x57   : > { %v1515_v9 = vrot.slane %v1514_v61, 4  ;;  %v1528_v10 = vor.u32 %v1527_v0, %v1524_v63  ;;  %v1547_v11 = vrot.slane %v1545_v1, 5  ;;  %v749_v13 = vld [vmem:[#allocation2 + $0x10] sm:$0xf]  ;;  %v787_v22 = vshrl.u32 %v747_v17, 16  ;;  %v3570_v41 = vld [vmem:[%s4287_s5 + $0x148] sm:$0xff]  }
  0x58   : > { %v1506_v15 = vsel %vm3888_vm8, %v1501_v4, %v1505_v50  ;;  %v1542_v16 = vor.u32 %v1541_v8, %v1538_v7  ;;  %v790_v23 = vshll.u32 %v747_v17, 16  ;;  %3262 = vmatmul.mubr.bf16.gmra.mrb[4].mxu1 %v3577_v12  ;;  %v796_v25 = vshll.u32 %v748_v19, 16  ;;  %v751_v26 = vld [vmem:[#allocation2 + $0x18] sm:$0xf]  ;;  %v750_v34 = vld [vmem:[#allocation2 + $0x14] sm:$0x1] }
  0x59   : > { %3270 = vmatpush3.bf16.msra.mxu1 %v3567_v36  ;;  %v1520_v20 = vsel %vm3888_vm8, %v1515_v9, %v1519_v55  ;;  %v1529_v21 = vrot.slane %v1528_v10, 4  ;;  %v384_v28 = vmax.f32 %v3884_v47, 0.0  ;;  %v789_v32 = vrot.slane %v787_v22, 4  ;;  %v1477_v42 = vld [vmem:[#allocation2 + $0x28] sm:$0xf]  ;;  %v3572_v63 = vld [vmem:[%s4287_s5 + $0x150] sm:$0xff]  }
  0x5a   : > { %v2981_v62 = vcombine.low %v1506_v15, %v1520_v20  ;;  %v1543_v6 = vrot.slane %v1542_v16, 4  ;;  %3271 = vmatprep.subr.bf16.mxu1 %v3569_v2  ;;  %v792_v33 = vrot.slane %v790_v23, 5  ;;  %v801_v35 = vshrl.u32 %v749_v13, 16  ;;  %v752_v45 = vld [vmem:[#allocation2 + $0x1c] sm:$0x1]  ;;  %v3573_v49 = vld [vmem:[%s4287_s5 + $0x68] sm:$0xff]  }
  0x5b   : > { %v1534_v31 = vsel %vm3888_vm8, %v1529_v21, %v1533_v5  ;;  %v785_v37 = vsel %vm3888_vm8, %v3859_v18, %v3872_v14  ;;  %v798_v38 = vrot.slane %v796_v25, 5  ;;  %v804_v40 = vshll.u32 %v749_v13, 16  ;;  %v1478_v48 = vld [vmem:[#allocation2 + $0x2c] sm:$0x1]  ;;  %v1479_v54 = vld [vmem:[#allocation2 + $0x30] sm:$0xf] }
  0x5c   : > { %3353 = vmatprep.mubr.bf16.mxu0 %v2981_v62  ;;  %v1548_v36 = vsel %vm3888_vm8, %v1543_v6, %v1547_v11  ;;  %v793_v44 = vor.u32 %v792_v33, %v789_v32  ;;  %v803_v46 = vrot.slane %v801_v35, 4  ;;  %v815_v47 = vshrl.u32 %v751_v26, 16  ;;  %v1480_v60 = vld [vmem:[#allocation2 + $0x34] sm:$0x1]  ;;  %v1481_v9 = vld [vmem:[#allocation2 + $0x38] sm:$0xf] }
  0x5d   : > { %v2982_v43 = vcombine.low %v1534_v31, %v1548_v36  ;;  %3272 = vmatpush3.bf16.msra.mxu1 %v3569_v2  ;;  %v806_v50 = vrot.slane %v804_v40, 5  ;;  %v810_v51 = vshll.u32 %v750_v34, 16  ;;  %v818_v53 = vshll.u32 %v751_v26, 16  ;;  %v3574_v10 = vld [vmem:[%s4287_s5 + $0x158] sm:$0xff]   ;;  %v1767_v32 = vld [vmem:[#allocation2 + $0x8] sm:$0xe] }
  0x5e   : > { %3273 = vmatprep.subr.bf16.mxu1 %v3571_v24  ;;  %v3917_v18 = vpack.c.bf16 %v384_v28, %v384_v28  ;;  %v794_v14 = vrot.slane %v793_v44, 4  ;;  %v817_v55 = vrot.slane %v815_v47, 4  ;;  %v1550_v56 = vshrl.u32 %v1477_v42, 16  ;;  %v3579_v17 = vld [vmem:[%s4287_s5 + $0x78] sm:$0xff]   ;;  %v1768_v33 = vld [vmem:[#allocation2 + $0xc] sm:$0x1] }
  0x5f   : > { %3354 = vmatmul.mubr.bf16.vlgmr.msra.gmra.mrb[0].mxu0 %v2982_v43  ;;  %v1553_v57 = vshll.u32 %v1477_v42, 16  ;;  %v807_v58 = vor.u32 %v806_v50, %v803_v46  ;;  %v820_v59 = vrot.slane %v818_v53, 5  ;;  %v824_v27 = vshll.u32 %v752_v45, 16  ;;  %v1482_v22 = vld [vmem:[#allocation2 + $0x3c] sm:$0x1]  ;;  %v3581_v46 = vld [vmem:[%s4287_s5 + $0x80] sm:$0xff]  }
  0x60   : > { %3362 = vmatpush3.bf16.msra.mxu0 %v3777_v29  ;;  %v1559_v61 = vshll.u32 %v1478_v48, 16  ;;  %v799_v0 = vsel %vm3888_vm8, %v794_v14, %v798_v38  ;;  %v1552_v1 = vrot.slane %v1550_v56, 4  ;;  %v1564_v3 = vshrl.u32 %v1479_v54, 16  ;;  %v3576_v29 = vld [vmem:[%s4287_s5 + $0x70] sm:$0xff]   ;;  %v549_v36 = vld [vmem:[#allocation2 + $0x44] sm:$0x1] }
  0x61   : > { %3363 = vmatprep.subr.bf16.mxu0 %v3570_v41  ;;  %3274 = vmatpush3.bf16.msra.mxu1 %v3571_v24  ;;  %v1555_v2 = vrot.slane %v1553_v57, 5  ;;  %v2889_v4 = vcombine.low %v785_v37, %v799_v0  ;;  %v3928_v5 = vrot.slane %v807_v58, 4  ;;  %v3930_v7 = vrot.slane %v810_v51, 5  ;;  %v546_v24 = vld [vmem:[#allocation2 + $0x40] sm:$0xf]  ;;  %v3580_v57 = vld [vmem:[%s4287_s5 + $0x168] sm:$0xff]  }
  0x62   : > { %3275 = vmatprep.subr.bf16.mxu1 %v3573_v49  ;;  %v821_v8 = vor.u32 %v820_v59, %v817_v55  ;;  %v1566_v12 = vrot.slane %v1564_v3, 4  ;;  %v1567_v15 = vshll.u32 %v1479_v54, 16  ;;  %v1573_v16 = vshll.u32 %v1480_v60, 16  ;;  %v3578_v38 = vld [vmem:[%s4287_s5 + $0x160] sm:$0xff]   ;;  %v3949_v45 = vld [vmem:[#allocation2 + $0x10] sm:$0xe] }
  0x63   : > { %v1556_v11 = vor.u32 %v1555_v2, %v1552_v1  ;;  %3281 = vmatprep.mubr.bf16.mxu1 %v2889_v4  ;;  %v826_v13 = vrot.slane %v824_v27, 5  ;;  %v474_v20 = vshrl.u32 %v3917_v18, 16  ;;  %v477_v21 = vshll.u32 %v3917_v18, 16  ;;  %v1770_v50 = vld [vmem:[#allocation2 + $0x14] sm:$0x1]  ;;  %v3583_v2 = vld [vmem:[%s4287_s5 + $0x88] sm:$0xff]  }
  0x64   : > { %3364 = vmatpush3.bf16.msra.mxu0 %v3570_v41  ;;  %v822_v19 = vrot.slane %v821_v8, 4  ;;  %v1561_v62 = vrot.slane %v1559_v61, 5  ;;  %v1569_v6 = vrot.slane %v1567_v15, 5  ;;  %v1578_v25 = vshrl.u32 %v1481_v9, 16  ;;  %v3966_v14 = vld [vmem:[#allocation2 + $0x18] sm:$0xe] }
  0x65   : > { %3365 = vmatprep.subr.bf16.mxu0 %v3572_v63  ;;  %3276 = vmatpush3.bf16.msra.mxu1 %v3573_v49  ;;  %v1557_v23 = vrot.slane %v1556_v11, 4  ;;  %v813_v26 = vsel %vm3888_vm8, %v3928_v5, %v3930_v7  ;;  %v476_v28 = vrot.slane %v474_v20, 7  ;;  %v1581_v31 = vshll.u32 %v1481_v9, 16  ;;  %v3968_v55 = vld [vmem:[#allocation2 + $0x1c] sm:$0x1]  ;;  %v3582_v15 = vld [vmem:[%s4287_s5 + $0x170] sm:$0xff]  }
  0x66   : > { %3277 = vmatprep.subr.bf16.mxu1 %v3576_v29  ;;  %v1570_v34 = vor.u32 %v1569_v6, %v1566_v12  ;;  %v1575_v35 = vrot.slane %v1573_v16, 5  ;;  %v1580_v41 = vrot.slane %v1578_v25, 4  ;;  %v1587_v37 = vshll.u32 %v1482_v22, 16  ;;  %v753_v56 = vld [vmem:[#allocation2 + $0x20] sm:$0xf] }
  0x67   : > { %v827_v40 = vsel %vm3888_vm8, %v822_v19, %v826_v13  ;;  %v479_v42 = vor.u32 %v477_v21, %v476_v28  ;;  %v480_v43 = vrot.slane %v476_v28, 4  ;;  %v1583_v44 = vrot.slane %v1581_v31, 5  ;;  %v3978_v27 = vld [vmem:[#allocation2 + $0x20] sm:$0xe]  ;;  %v754_v60 = vld [vmem:[#allocation2 + $0x24] sm:$0x1] }
  0x68   : > { %3366 = vmatpush3.bf16.msra.mxu0 %v3572_v63  ;;  %v1562_v47 = vsel %vm3888_vm8, %v1557_v23, %v1561_v62  ;;  %v1571_v48 = vrot.slane %v1570_v34, 4  ;;  %v2993_v51 = vrot.slane %v1767_v32, 9  ;;  %v1809_v53 = vrot.slane %v1768_v33, 5  ;;  %v755_v61 = vld [vmem:[#allocation2 + $0x28] sm:$0xf]  ;;  %v3585_v21 = vld [vmem:[%s4287_s5 + $0x90] sm:$0xff]  }
  0x69   : > { %3367 = vmatprep.subr.bf16.mxu0 %v3574_v10  ;;  %3278 = vmatpush3.bf16.msra.mxu1 %v3576_v29  ;;  %v547_v54 = vsel %vm3823_vm4, %v479_v42, %v546_v24  ;;  %v550_v18 = vsel %vm3831_vm5, %v480_v43, %v549_v36  ;;  %v1584_v59 = vor.u32 %v1583_v44, %v1580_v41  ;;  %v3975_v30 = vrot.slane %v1587_v37, 5  ;;  %v756_v1 = vld [vmem:[#allocation2 + $0x2c] sm:$0x1]  ;;  %v757_v7 = vld [vmem:[#allocation2 + $0x30] sm:$0xf]  ;;  %v3587_v44 = vld [vmem:[%s4287_s5 + $0x98] sm:$0xff]  }
  0x6a   : > { %3279 = vmatprep.subr.bf16.mxu1 %v3579_v17  ;;  %v1576_v58 = vsel %vm3888_vm8, %v1571_v48, %v1575_v35  ;;  %548 = vst [vmem:[#allocation2 + $0x40] sm:$0xf] %v547_v54  ;;  %551 = vst [vmem:[#allocation2 + $0x44] sm:$0x1] %v550_v18  ;;  %v2994_v39 = vrot.slane %v3949_v45, 9  ;;  %v2890_v63 = vcombine.low %v813_v26, %v827_v40  ;;  %v1813_v29 = vrot.slane %v1770_v50, 5 }
  0x6b   : > { %v2983_v0 = vcombine.low %v1562_v47, %v1576_v58  ;;  %v3985_v3 = vsel %vm3958_vm11, %v2993_v51, %v1809_v53  ;;  %v2995_v4 = vrot.slane %v3966_v14, 9  ;;  %v829_v5 = vshrl.u32 %v753_v56, 16  ;;  %v758_v12 = vld [vmem:[#allocation2 + $0x34] sm:$0x1]  ;;  %v759_v20 = vld [vmem:[#allocation2 + $0x38] sm:$0xf] }
  0x6c   : > { %3368 = vmatpush3.bf16.msra.mxu0 %v3574_v10  ;;  %v1817_v8 = vrot.slane %v3968_v55, 5  ;;  %v832_v9 = vshll.u32 %v753_v56, 16  ;;  %v838_v10 = vshll.u32 %v754_v60, 16  ;;  %v843_v11 = vshrl.u32 %v755_v61, 16  ;;  %v3584_v40 = vld [vmem:[%s4287_s5 + $0x178] sm:$0xff]  }
  0x6d   : > { %3369 = vmatprep.subr.bf16.mxu0 %v3578_v38  ;;  %3280 = vmatpush3.bf16.msra.mxu1 %v3579_v17  ;;  %v3992_v16 = vrot.slane %v1584_v59, 4  ;;  %v831_v17 = vrot.slane %v829_v5, 4  ;;  %v846_v19 = vshll.u32 %v755_v61, 16  ;;  %v852_v13 = vshll.u32 %v756_v1, 16  ;;  %v760_v43 = vld [vmem:[#allocation2 + $0x3c] sm:$0x1] }
  0x6e   : > { %3289 = vmatprep.subr.bf16.mxu1 %v3581_v46  ;;  %3357 = vmatprep.mubr.bf16.mxu0 %v2983_v0  ;;  %v2996_v22 = vrot.slane %v3978_v27, 9  ;;  %v834_v23 = vrot.slane %v832_v9, 5  ;;  %v840_v62 = vrot.slane %v838_v10, 5  ;;  %v845_v6 = vrot.slane %v843_v11, 4  ;;  %v1046_v50 = vld [vmem:[#allocation2] sm:$0xe] }
  0x6f   : > { %v848_v24 = vrot.slane %v846_v19, 5  ;;  %v854_v25 = vrot.slane %v852_v13, 5  ;;  %v857_v26 = vshrl.u32 %v757_v7, 16  ;;  %v860_v28 = vshll.u32 %v757_v7, 16  ;;  %v1047_v56 = vld [vmem:[#allocation2 + $0x4] sm:$0x1] }
  0x70   : > { %3370 = vmatpush3.bf16.msra.mxu0 %v3578_v38  ;;  %3282 = vmatmul.mubr.bf16.vlgmr.msra.gmra.mrb[0].mxu1 %v2890_v63  ;;  %v4000_v33 = vsel %vm3958_vm11, %v2994_v39, %v1813_v29  ;;  %v835_v34 = vor.u32 %v834_v23, %v831_v17  ;;  %v866_v35 = vshll.u32 %v758_v12, 16  ;;  %v871_v36 = vshrl.u32 %v759_v20, 16  ;;  %v1048_v60 = vld [vmem:[#allocation2 + $0x8] sm:$0xe]  ;;  %v1049_v61 = vld [vmem:[#allocation2 + $0xc] sm:$0x1] }
  0x71   : > { %3371 = vmatprep.subr.bf16.mxu0 %v3580_v57  ;;  %3290 = vmatpush3.bf16.msra.mxu1 %v3581_v46  ;;  %v1483_v31 = vld [vmem:[#allocation2 + $0x40] sm:$0xf]  ;;  %v1484_v32 = vld [vmem:[#allocation2 + $0x44] sm:$0x1]  ;;  %v849_v42 = vor.u32 %v848_v24, %v845_v6  ;;  %v859_v46 = vrot.slane %v857_v26, 4  ;;  %v862_v47 = vrot.slane %v860_v28, 5  ;;  %v1590_v13 = vsel %vm3888_vm8, %v3992_v16, %v3975_v30 }
  0x72   : > { %3291 = vmatprep.subr.bf16.mxu1 %v3583_v2  ;;  %v1592_v41 = vshrl.u32 %v1483_v31, 16  ;;  %v1595_v37 = vshll.u32 %v1483_v31, 16  ;;  %v1601_v38 = vshll.u32 %v1484_v32, 16  ;;  %v836_v45 = vrot.slane %v835_v34, 4  ;;  %v1774_v0 = vld [vmem:[#allocation2 + $0x24] sm:$0x1] }
  0x73   : > { %v4008_v48 = vrot.slane %v866_v35, 5  ;;  %v850_v18 = vrot.slane %v849_v42, 4  ;;  %v863_v58 = vor.u32 %v862_v47, %v859_v46  ;;  %v873_v59 = vrot.slane %v871_v36, 4  ;;  %v4019_v12 = vld [vmem:[#allocation2 + $0x10] sm:$0xe]  ;;  %v3591_v36 = vld [vmem:[%s4287_s5 + $0xa8] sm:$0xff]  }
  0x74   : > { %3372 = vmatpush3.bf16.msra.mxu0 %v3580_v57  ;;  %v1594_v51 = vrot.slane %v1592_v41, 4  ;;  %v1597_v53 = vrot.slane %v1595_v37, 5  ;;  %v1603_v54 = vrot.slane %v1601_v38, 5  ;;  %v841_v57 = vsel %vm3888_vm8, %v836_v45, %v840_v62  ;;  %v1775_v17 = vld [vmem:[#allocation2 + $0x28] sm:$0xe] }
  0x75   : > { %3373 = vmatprep.subr.bf16.mxu0 %v3582_v15  ;;  %3292 = vmatpush3.bf16.msra.mxu1 %v3583_v2  ;;  %v874_v39 = vshll.u32 %v759_v20, 16  ;;  %v855_v1 = vsel %vm3888_vm8, %v850_v18, %v854_v25  ;;  %v880_v29 = vshll.u32 %v760_v43, 16  ;;  %v2901_v5 = vrot.slane %v1046_v50, 9  ;;  %v4017_v2 = vld [vmem:[%s4287_s5 + $0x180] sm:$0xff]   ;;  %v1776_v19 = vld [vmem:[#allocation2 + $0x2c] sm:$0x1] }
  0x76   : > { %3293 = vmatprep.subr.bf16.mxu1 %v3585_v21  ;;  %v1598_v63 = vor.u32 %v1597_v53, %v1594_v51  ;;  %v2891_v7 = vcombine.low %v841_v57, %v855_v1  ;;  %v864_v9 = vrot.slane %v863_v58, 4  ;;  %v1091_v11 = vrot.slane %v1047_v56, 5  ;;  %v4028_v6 = vld [vmem:[#allocation2 + $0x14] sm:$0x1]  ;;  %v1777_v28 = vld [vmem:[#allocation2 + $0x30] sm:$0xe] }
  0x77   : > { %v876_v10 = vrot.slane %v874_v39, 5  ;;  %v2902_v23 = vrot.slane %v1048_v60, 9  ;;  %v1095_v62 = vrot.slane %v1049_v61, 5  ;;  %v1821_v24 = vrot.slane %v1774_v0, 5  ;;  %v4037_v31 = vld [vmem:[#allocation2 + $0x18] sm:$0xe] }
  0x78   : > { %3374 = vmatpush3.bf16.msra.mxu0 %v3582_v15  ;;  %v1599_v20 = vrot.slane %v1598_v63, 4  ;;  %v3589_v15 = vld [vmem:[%s4287_s5 + $0xa0] sm:$0xff]   ;;  %3285 = vmatprep.mubr.bf16.mxu1 %v2891_v7  ;;  %v882_v26 = vrot.slane %v880_v29, 5  ;;  %v3017_v16 = vcombine.low %v3985_v3, %v4000_v33  ;;  %v4039_v32 = vld [vmem:[#allocation2 + $0x1c] sm:$0x1]  ;;  %v1092_v37 = vsel %vm3958_vm11, %v2901_v5, %v1091_v11  ;;  %v3593_v56 = vld [vmem:[%s4287_s5 + $0xb0] sm:$0xff]  }
  0x79   : > { %3375 = vmatprep.subr.bf16.mxu0 %v3584_v40  ;;  %3294 = vmatpush3.bf16.msra.mxu1 %v3585_v21  ;;  %v877_v25 = vor.u32 %v876_v10, %v873_v59  ;;  %v869_v21 = vsel %vm3888_vm8, %v864_v9, %v4008_v48  ;;  %v1778_v34 = vld [vmem:[#allocation2 + $0x34] sm:$0x1]  ;;  %v1096_v3 = vsel %vm3958_vm11, %v2902_v23, %v1095_v62  ;;  %v1779_v33 = vld [vmem:[#allocation2 + $0x38] sm:$0xe]  ;;  %v1780_v38 = vld [vmem:[#allocation2 + $0x3c] sm:$0x1] }
  0x7a   : > { %3295 = vmatprep.subr.bf16.mxu1 %v3587_v44  ;;  %v1604_v30 = vsel %vm3888_vm8, %v1599_v20, %v1603_v54  ;;  %v2903_v42 = vrot.slane %v4019_v12, 9  ;;  %v2997_v43 = vrot.slane %v1775_v17, 9  ;;  %v2998_v45 = vrot.slane %v1777_v28, 9  ;;  %v1781_v46 = vld [vmem:[#allocation2 + $0x40] sm:$0xe]  ;;  %v3588_v58 = vld [vmem:[%s4287_s5 + $0x188] sm:$0xff]  }
  0x7b   : > { %v2984_v35 = vcombine.low %v1590_v13, %v1604_v30  ;;  %v878_v41 = vrot.slane %v877_v25, 4  ;;  %v1099_v48 = vrot.slane %v4028_v6, 5  ;;  %v1829_v50 = vrot.slane %v1778_v34, 5  ;;  %v1782_v18 = vld [vmem:[#allocation2 + $0x44] sm:$0x1]  ;;  %v3595_v61 = vld [vmem:[%s4287_s5 + $0xb8] sm:$0xff]  }
  0x7c   : > { %3376 = vmatpush3.bf16.msra.mxu0 %v3584_v40  ;;  %v1825_v40 = vrot.slane %v1776_v19, 5  ;;  %v1822_v51 = vsel %vm3958_vm11, %v2996_v22, %v1821_v24  ;;  %v2925_v54 = vcombine.low %v1092_v37, %v1096_v3  ;;  %v2904_v57 = vrot.slane %v4037_v31, 9  ;;  %v1054_v1 = vld [vmem:[#allocation2 + $0x20] sm:$0xe]  ;;  %v1055_v29 = vld [vmem:[#allocation2 + $0x24] sm:$0x1] }
  0x7d   : > { %3385 = vmatprep.subr.bf16.mxu0 %v4017_v2  ;;  %3296 = vmatpush3.bf16.msra.mxu1 %v3587_v44  ;;  %v883_v47 = vsel %vm3888_vm8, %v878_v41, %v882_v26  ;;  %v1818_v44 = vsel %vm3958_vm11, %v2995_v4, %v1817_v8  ;;  %v1103_v55 = vrot.slane %v4039_v32, 5  ;;  %v1830_v27 = vsel %vm3958_vm11, %v2998_v45, %v1829_v50  ;;  %v1056_v5 = vld [vmem:[#allocation2 + $0x28] sm:$0xe]  ;;  %v3590_v7 = vld [vmem:[%s4287_s5 + $0x190] sm:$0xff]   ;;  %v1057_v9 = vld [vmem:[#allocation2 + $0x2c] sm:$0x1] }
  0x7e   : > { %3358 = vmatmul.mubr.bf16.gmra.mrb[4].mxu0 %v2984_v35  ;;  %3297 = vmatprep.subr.bf16.mxu1 %v3589_v15  ;;  %v2892_v53 = vcombine.low %v869_v21, %v883_v47  ;;  %v1826_v14 = vsel %vm3958_vm11, %v2997_v43, %v1825_v40  ;;  %v2999_v4 = vrot.slane %v1779_v33, 9  ;;  %v1833_v8 = vrot.slane %v1780_v38, 5  ;;  %v3602_v13 = vld [vmem:[#allocation2 + $0x10] ss:$8 sps:$4 sm:$0xff]   ;;  %v1059_v23 = vld [vmem:[#allocation2 + $0x34] sm:$0x1] }
  0x7f   : > { %3377 = vmatprep.mubr.bf16.mxu0 %v3017_v16  ;;  %v3018_v22 = vcombine.low %v1818_v44, %v1822_v51  ;;  %v3000_v59 = vrot.slane %v1781_v46, 9  ;;  %v1837_v39 = vrot.slane %v1782_v18, 5  ;;  %v3019_v60 = vcombine.low %v1826_v14, %v1830_v27  ;;  %v3592_v62 = vld [vmem:[%s4287_s5 + $0x198] sm:$0xff]   ;;  %v3599_v35 = vld [vmem:[%s4287_s5 + $0xc8] sm:$0xff]   ;;  %v3601_v33 = vld [vmem:[%s4287_s5 + $0xd0] sm:$0xff]  }
  0x80   : > { %3286 = vmatmul.mubr.bf16.gmra.mrb[4].mxu1 %v2892_v53  ;;  %v1834_v63 = vsel %vm3958_vm11, %v2999_v4, %v1833_v8  ;;  %v2905_v10 = vrot.slane %v1054_v1, 9  ;;  %v1107_v11 = vrot.slane %v1055_v29, 5  ;;  %v2906_v12 = vrot.slane %v1056_v5, 9  ;;  %v1060_v25 = vld [vmem:[#allocation2 + $0x38] sm:$0xe]  ;;  %v3596_v3 = vld [vmem:[%s4287_s5 + $0x1a8] sm:$0xff]  }
  0x81   : > { %3298 = vmatpush3.bf16.msra.mxu1 %v3589_v15  ;;  %3305 = vmatprep.mubr.bf16.mxu1 %v2925_v54  ;;  %v1838_v0 = vsel %vm3958_vm11, %v3000_v59, %v1837_v39  ;;  %v1100_v17 = vsel %vm3958_vm11, %v2903_v42, %v1099_v48  ;;  %v1104_v19 = vsel %vm3958_vm11, %v2904_v57, %v1103_v55  ;;  %v1111_v20 = vrot.slane %v1057_v9, 5  ;;  %v1058_v15 = vld [vmem:[#allocation2 + $0x30] sm:$0xe]  ;;  %v1061_v26 = vld [vmem:[#allocation2 + $0x3c] sm:$0x1]  ;;  %v3607_v51 = vld [vmem:[%s4287_s5 + $0xe0] sm:$0xff]  }
  0x82   : > { %3299 = vmatprep.subr.bf16.mxu1 %v3591_v36  ;;  %v3020_v6 = vcombine.low %v1834_v63, %v1838_v0  ;;  %v1108_v24 = vsel %vm3958_vm11, %v2905_v10, %v1107_v11  ;;  %v2907_v28 = vrot.slane %v1058_v15, 9  ;;  %v1115_v30 = vrot.slane %v1059_v23, 5  ;;  %v3615_v42 = vld [vmem:[#allocation2 + $0x8] ss:$8 sps:$4 sm:$0xff]   ;;  %v3605_v43 = vld [vmem:[%s4287_s5 + $0xd8] sm:$0xff]   ;;  %v3603_v4 = vld [vmem:[%s4287_s5 + $0x1c0] sm:$0xff]  }
  0x83   : > { %v1112_v16 = vsel %vm3958_vm11, %v2906_v12, %v1111_v20  ;;  %v2908_v21 = vrot.slane %v1060_v25, 9  ;;  %v1119_v31 = vrot.slane %v1061_v26, 5  ;;  %v2926_v32 = vcombine.low %v1100_v17, %v1104_v19  ;;  %v2188_v40 = vld [vmem:[#allocation2 + $0x10] sm:$0xf]  ;;  %v2190_v45 = vld [vmem:[#allocation2 + $0x18] sm:$0xf] }
  0x84   : > { %v2927_v34 = vcombine.low %v1108_v24, %v1112_v16  ;;  %v1116_v41 = vsel %vm3958_vm11, %v2907_v28, %v1115_v30  ;;  %v3598_v46 = vld [vmem:[%s4287_s5 + $0x1b0] sm:$0xff]   ;;  %v2213_v47 = vshrl.u32 %v2188_v40, 16  ;;  %v2216_v48 = vshll.u32 %v2188_v40, 16  ;;  %v3600_v53 = vld [vmem:[%s4287_s5 + $0x1b8] sm:$0xff]   ;;  %v3609_v27 = vld [vmem:[%s4287_s5 + $0xe8] sm:$0xff]  }
  0x85   : > { %3300 = vmatpush3.bf16.msra.mxu1 %v3591_v36  ;;  %v3594_v36 = vld [vmem:[%s4287_s5 + $0x1a0] sm:$0xff]   ;;  %v1120_v37 = vsel %vm3958_vm11, %v2908_v21, %v1119_v31  ;;  %v2227_v50 = vshrl.u32 %v2190_v45, 16  ;;  %v2230_v44 = vshll.u32 %v2190_v45, 16  ;;  %v2189_v55 = vld [vmem:[#allocation2 + $0x14] sm:$0x1]  ;;  %v3606_v63 = vld [vmem:[%s4287_s5 + $0x1c8] sm:$0xff]  }
  0x86   : > { %3378 = vmatmul.mubr.bf16.vlgmr.msra.gmra.mrb[0].mxu0 %v3018_v22  ;;  %3301 = vmatprep.subr.bf16.mxu1 %v3593_v56  ;;  %v2928_v38 = vcombine.low %v1116_v41, %v1120_v37  ;;  %v2215_v54 = vrot.slane %v2213_v47, 4  ;;  %v2218_v18 = vrot.slane %v2216_v48, 5  ;;  %v2191_v14 = vld [vmem:[#allocation2 + $0x1c] sm:$0x1]  ;;  %v2222_v22 = vshll.u32 %v2189_v55, 16  ;;  %v3608_v9 = vld [vmem:[%s4287_s5 + $0x1d0] sm:$0xff]  }
  0x87   : > { %3386 = vmatpush3.bf16.msra.mxu0 %v4017_v2  ;;  %3381 = vmatprep.mubr.bf16.mxu0 %v3019_v60  ;;  %v3597_v2 = vld [vmem:[%s4287_s5 + $0xc0] sm:$0xff]   ;;  %v2232_v57 = vrot.slane %v2230_v44, 5  ;;  %v2236_v59 = vshll.u32 %v2191_v14, 16  ;;  %v3611_v60 = vld [vmem:[%s4287_s5 + $0xf0] sm:$0xff]   ;;  %v3610_v17 = vld [vmem:[%s4287_s5 + $0x1d8] sm:$0xff]  }
  0x88   : > { %3387 = vmatprep.subr.bf16.mxu0 %v3588_v58  ;;  %v2219_v8 = vor.u32 %v2218_v18, %v2215_v54  ;;  %v3604_v39 = vld [vmem:[#allocation2 + $0x20] ss:$8 sps:$4 sm:$0xff]   ;;  %v2224_v1 = vrot.slane %v2222_v22, 5  ;;  %v2494_v20 = vld [vmem:[#allocation2 + $0x30] sm:$0xe] }
  0x89   : > { %3302 = vmatpush3.bf16.msra.mxu1 %v3593_v56  ;;  %v2229_v56 = vrot.slane %v2227_v50, 4  ;;  %v2238_v5 = vrot.slane %v2236_v59, 5  ;;  %v4153_v12 = vld [vmem:[%s4287_s5 + $0x200] sm:$0xff]   ;;  %v2495_v23 = vld [vmem:[#allocation2 + $0x34] sm:$0x1] }
  0x8a   : > { %3303 = vmatprep.subr.bf16.mxu1 %v3595_v61  ;;  %v2220_v0 = vrot.slane %v2219_v8, 4  ;;  %v2192_v19 = vld [vmem:[#allocation2 + $0x20] sm:$0xf]  ;;  %v3623_v25 = vld [vmem:[#allocation2 + $0x28] ss:$8 sps:$4 sm:$0xff]  }
  0x8b   : > { %3388 = vmatpush3.bf16.msra.mxu0 %v3588_v58  ;;  %v2233_v58 = vor.u32 %v2232_v57, %v2229_v56  ;;  %v3616_v24 = vld [vmem:[#allocation2 + $0x18] ss:$8 sps:$4 sm:$0xff]   ;;  %v2196_v26 = vld [vmem:[#allocation2 + $0x30] sm:$0xf]  ;;  %v2241_v28 = vshrl.u32 %v2192_v19, 16  ;;  %v2244_v30 = vshll.u32 %v2192_v19, 16 }
  0x8c   : > { %3389 = vmatprep.subr.bf16.mxu0 %v3590_v7  ;;  %v2225_v10 = vsel %vm3888_vm8, %v2220_v0, %v2224_v1  ;;  %v2198_v31 = vld [vmem:[#allocation2 + $0x38] sm:$0xf]  ;;  %v2269_v37 = vshrl.u32 %v2196_v26, 16  ;;  %v2193_v48 = vld [vmem:[#allocation2 + $0x24] sm:$0x1] }
  0x8d   : > { %3304 = vmatpush3.bf16.msra.mxu1 %v3595_v61  ;;  %v3617_v61 = vld [vmem:[#allocation2 + $0x30] ss:$8 sps:$4 sm:$0xff]   ;;  %v2234_v29 = vrot.slane %v2233_v58, 4  ;;  %v2243_v40 = vrot.slane %v2241_v28, 4  ;;  %v2246_v45 = vrot.slane %v2244_v30, 5  ;;  %v2250_v8 = vshll.u32 %v2193_v48, 16 }
  0x8e   : > { %3313 = vmatprep.subr.bf16.mxu1 %v3597_v2  ;;  %3382 = vmatmul.mubr.bf16.gmra.mrb[4].mxu0 %v3020_v6  ;;  %v2497_v6 = vld [vmem:[#allocation2 + $0x3c] sm:$0x1]  ;;  %v3624_v47 = vld [vmem:[#allocation2 + $0x38] ss:$8 sps:$4 sm:$0xff]   ;;  %v2195_v54 = vld [vmem:[#allocation2 + $0x2c] sm:$0x1] }
  0x8f   : > { %3390 = vmatpush3.bf16.msra.mxu0 %v3590_v7  ;;  %3401 = vmatprep.mubr.bf16.mxu0 %v3602_v13  ;;  %v3613_v7 = vld [vmem:[%s4287_s5 + $0xf8] sm:$0xff]   ;;  %v2239_v11 = vsel %vm3888_vm8, %v2234_v29, %v2238_v5  ;;  %v2194_v13 = vld [vmem:[#allocation2 + $0x28] sm:$0xf]  ;;  %v2548_v41 = vrot.slane %v2497_v6, 5  ;;  %v2197_v18 = vld [vmem:[#allocation2 + $0x34] sm:$0x1]  ;;  %v2247_v59 = vor.u32 %v2246_v45, %v2243_v40 }
  0x90   : > { %3391 = vmatprep.subr.bf16.mxu0 %v3592_v62  ;;  %3306 = vmatmul.mubr.bf16.vlgmr.msra.gmra.mrb[0].mxu1 %v2926_v32  ;;  %v3073_v15 = vcombine.low %v2225_v10, %v2239_v11  ;;  %v2255_v16 = vshrl.u32 %v2194_v13, 16  ;;  %v2258_v21 = vshll.u32 %v2194_v13, 16  ;;  %v4162_v32 = vld [vmem:[%s4287_s5 + $0x208] sm:$0xff]   ;;  %v2271_v56 = vrot.slane %v2269_v37, 4  ;;  %v2199_v22 = vld [vmem:[#allocation2 + $0x3c] sm:$0x1] }
  0x91   : > { %3314 = vmatpush3.bf16.msra.mxu1 %v3597_v2  ;;  %3309 = vmatprep.mubr.bf16.mxu1 %v2927_v34  ;;  %v3619_v2 = vld [vmem:[#allocation2 + $0x40] ss:$8 sps:$4 sm:$0xff]   ;;  %v3089_v34 = vrot.slane %v2494_v20, 9  ;;  %v2292_v11 = vshll.u32 %v2199_v22, 16  ;;  %v2248_v19 = vrot.slane %v2247_v59, 4  ;;  %v4219_v40 = vld [vmem:[%s4287_s5 + $0x230] sm:$0xff]  }
  0x92   : > { %3315 = vmatprep.subr.bf16.mxu1 %v3599_v35  ;;  %v2257_v50 = vrot.slane %v2255_v16, 4  ;;  %v2260_v44 = vrot.slane %v2258_v21, 5  ;;  %v2203_v21 = vld [vmem:[#allocation2 + $0x4c] sm:$0x1]  ;;  %v2498_v45 = vld [vmem:[#allocation2 + $0x40] sm:$0xe] }
  0x93   : > { %3392 = vmatpush3.bf16.msra.mxu0 %v3592_v62  ;;  %v2496_v62 = vld [vmem:[#allocation2 + $0x38] sm:$0xe]  ;;  %v2294_v16 = vrot.slane %v2292_v11, 5  ;;  %v3091_v22 = vrot.slane %v2498_v45, 9  ;;  %v2492_v11 = vld [vmem:[#allocation2 + $0x28] sm:$0xe] }
  0x94   : > { %3393 = vmatprep.subr.bf16.mxu0 %v3594_v36  ;;  %v2488_v48 = vld [vmem:[#allocation2 + $0x18] sm:$0xe] }
  0x95   : > { %3316 = vmatpush3.bf16.msra.mxu1 %v3599_v35  ;;  %v2544_v35 = vrot.slane %v2495_v23, 5  ;;  %v4196_v23 = vld [vmem:[%s4287_s5 + $0x220] sm:$0xff]  }
  0x96   : > { %3317 = vmatprep.subr.bf16.mxu1 %v3601_v33 }
  0x97   : > { %3394 = vmatpush3.bf16.msra.mxu0 %v3594_v36  ;;  %v3090_v36 = vrot.slane %v2496_v62, 9  ;;  %v3622_v62 = vld [vmem:[%s4287_s5 + $0x1f8] sm:$0xff]  }
  0x98   : > { %3395 = vmatprep.subr.bf16.mxu0 %v3596_v3  ;;  %3310 = vmatmul.mubr.bf16.gmra.mrb[4].mxu1 %v2928_v38  ;;  %v2283_v38 = vshrl.u32 %v2198_v31, 16 }
  0x99   : > { %3318 = vmatpush3.bf16.msra.mxu1 %v3601_v33  ;;  %3329 = vmatprep.mubr.bf16.mxu1 %v3615_v42  ;;  %v3612_v33 = vld [vmem:[%s4287_s5 + $0x1e0] sm:$0xff]   ;;  %v2286_v42 = vshll.u32 %v2198_v31, 16 }
  0x9a   : > { %3319 = vmatprep.subr.bf16.mxu1 %v3605_v43  ;;  %v2285_v55 = vrot.slane %v2283_v38, 4 }
  0x9b   : > { %3396 = vmatpush3.bf16.msra.mxu0 %v3596_v3  ;;  %v2272_v3 = vshll.u32 %v2196_v26, 16  ;;  %v2288_v14 = vrot.slane %v2286_v42, 5 }
  0x9c   : > { %3397 = vmatprep.subr.bf16.mxu0 %v3598_v46 }
  0x9d   : > { %3320 = vmatpush3.bf16.msra.mxu1 %v3605_v43  ;;  %v4171_v43 = vld [vmem:[%s4287_s5 + $0x210] sm:$0xff]   ;;  %v2274_v57 = vrot.slane %v2272_v3, 5  ;;  %v2289_v10 = vor.u32 %v2288_v14, %v2285_v55  ;;  %v2320_v3 = vshll.u32 %v2203_v21, 16 }
  0x9e   : > { %3321 = vmatprep.subr.bf16.mxu1 %v3607_v51 }
  0x9f   : > { %3398 = vmatpush3.bf16.msra.mxu0 %v3598_v46  ;;  %v3614_v46 = vld [vmem:[%s4287_s5 + $0x1e8] sm:$0xff]   ;;  %v2290_v30 = vrot.slane %v2289_v10, 4  ;;  %v2322_v55 = vrot.slane %v2320_v3, 5  ;;  %v2490_v10 = vld [vmem:[#allocation2 + $0x20] sm:$0xe] }
  0xa0   : > { %3399 = vmatprep.subr.bf16.mxu0 %v3600_v53 }
  0xa1   : > { %3322 = vmatpush3.bf16.msra.mxu1 %v3607_v51  ;;  %v2545_v51 = vsel %vm3958_vm11, %v3089_v34, %v2544_v35  ;;  %v4208_v35 = vld [vmem:[%s4287_s5 + $0x228] sm:$0xff]   ;;  %v2295_v38 = vsel %vm3888_vm8, %v2290_v30, %v2294_v16 }
  0xa2   : > { %3323 = vmatprep.subr.bf16.mxu1 %v3609_v27 }
  0xa3   : > { %3400 = vmatpush3.bf16.msra.mxu0 %v3600_v53  ;;  %v2549_v53 = vsel %vm3958_vm11, %v3090_v36, %v2548_v41 }
  0xa4   : > { %3409 = vmatprep.subr.bf16.mxu0 %v3603_v4  ;;  %v3111_v58 = vcombine.low %v2545_v51, %v2549_v53  ;;  %v2499_v51 = vld [vmem:[#allocation2 + $0x44] sm:$0x1]  ;;  %v2500_v53 = vld [vmem:[#allocation2 + $0x48] sm:$0xe] }
  0xa5   : > { %3324 = vmatpush3.bf16.msra.mxu1 %v3609_v27  ;;  %v2200_v27 = vld [vmem:[#allocation2 + $0x40] sm:$0xf]  ;;  %v3092_v59 = vrot.slane %v2500_v53, 9 }
  0xa6   : > { %3402 = vmatmul.mubr.bf16.vlgmr.msra.gmra.mrb[0].mxu0 %v3604_v39  ;;  %3325 = vmatprep.subr.bf16.mxu1 %v3611_v60  ;;  %v2261_v39 = vor.u32 %v2260_v44, %v2257_v50  ;;  %v2297_v0 = vshrl.u32 %v2200_v27, 16  ;;  %v2300_v1 = vshll.u32 %v2200_v27, 16  ;;  %v2489_v50 = vld [vmem:[#allocation2 + $0x1c] sm:$0x1] }
  0xa7   : > { %3410 = vmatpush3.bf16.msra.mxu0 %v3603_v4  ;;  %3405 = vmatprep.mubr.bf16.mxu0 %v3617_v61  ;;  %v2202_v4 = vld [vmem:[#allocation2 + $0x48] sm:$0xf]  ;;  %v4186_v61 = vld [vmem:[%s4287_s5 + $0x218] sm:$0xff]  }
  0xa8   : > { %3411 = vmatprep.subr.bf16.mxu0 %v3606_v63  ;;  %v2311_v29 = vshrl.u32 %v2202_v4, 16  ;;  %v2314_v5 = vshll.u32 %v2202_v4, 16  ;;  %v2262_v13 = vrot.slane %v2261_v39, 4  ;;  %v2299_v6 = vrot.slane %v2297_v0, 4 }
  0xa9   : > { %3326 = vmatpush3.bf16.msra.mxu1 %v3611_v60  ;;  %v2264_v60 = vshll.u32 %v2195_v54, 16  ;;  %v2501_v54 = vld [vmem:[#allocation2 + $0x4c] sm:$0x1]  ;;  %v3086_v4 = vrot.slane %v2488_v48, 9 }
  0xaa   : > { %3327 = vmatprep.subr.bf16.mxu1 %v3613_v7  ;;  %v2316_v26 = vrot.slane %v2314_v5, 5  ;;  %v2556_v39 = vrot.slane %v2501_v54, 5 }
  0xab   : > { %3412 = vmatpush3.bf16.msra.mxu0 %v3606_v63  ;;  %v2278_v63 = vshll.u32 %v2197_v18, 16  ;;  %v2266_v20 = vrot.slane %v2264_v60, 5  ;;  %v3630_v60 = vld [vmem:[%s4287_s5 + $0x238] sm:$0xff]  }
  0xac   : > { %3413 = vmatprep.subr.bf16.mxu0 %v3608_v9  ;;  %v2557_v5 = vsel %vm3958_vm11, %v3092_v59, %v2556_v39 }
  0xad   : > { %3328 = vmatpush3.bf16.msra.mxu1 %v3613_v7  ;;  %v3620_v7 = vld [vmem:[%s4287_s5 + $0x1f0] sm:$0xff]   ;;  %v2267_v36 = vsel %vm3888_vm8, %v2262_v13, %v2266_v20 }
  0xae   : > { %3457 = vmatprep.subr.bf16.mxu1 %v4153_v12  ;;  %3406 = vmatmul.mubr.bf16.gmra.mrb[4].mxu0 %v3619_v2  ;;  %v2252_v2 = vrot.slane %v2250_v8, 5  ;;  %v2532_v8 = vrot.slane %v2489_v50, 5 }
  0xaf   : > { %3414 = vmatpush3.bf16.msra.mxu0 %v3608_v9  ;;  %3425 = vmatprep.mubr.bf16.mxu0 %v3073_v15  ;;  %v2275_v9 = vor.u32 %v2274_v57, %v2271_v56  ;;  %v2280_v15 = vrot.slane %v2278_v63, 5 }
  0xb0   : > { %3415 = vmatprep.subr.bf16.mxu0 %v3610_v17  ;;  %3330 = vmatmul.mubr.bf16.vlgmr.msra.gmra.mrb[0].mxu1 %v3616_v24  ;;  %v2302_v24 = vrot.slane %v2300_v1, 5  ;;  %v2253_v34 = vsel %vm3888_vm8, %v2248_v19, %v2252_v2  ;;  %v2493_v2 = vld [vmem:[#allocation2 + $0x2c] sm:$0x1]  ;;  %v3088_v19 = vrot.slane %v2492_v11, 9 }
  0xb1   : > { %3465 = vmatpush3.bf16.msra.mxu1 %v4153_v12  ;;  %3333 = vmatprep.mubr.bf16.mxu1 %v3623_v25  ;;  %v2313_v25 = vrot.slane %v2311_v29, 4  ;;  %v2276_v28 = vrot.slane %v2275_v9, 4  ;;  %v3074_v44 = vcombine.low %v2253_v34, %v2267_v36  ;;  %v2533_v29 = vsel %vm3958_vm11, %v3086_v4, %v2532_v8 }
  0xb2   : > { %3458 = vmatprep.subr.bf16.mxu1 %v4162_v32  ;;  %v2303_v41 = vor.u32 %v2302_v24, %v2299_v6  ;;  %v2540_v13 = vrot.slane %v2493_v2, 5 }
  0xb3   : > { %3416 = vmatpush3.bf16.msra.mxu0 %v3610_v17  ;;  %v2201_v17 = vld [vmem:[#allocation2 + $0x44] sm:$0x1]  ;;  %v2317_v37 = vor.u32 %v2316_v26, %v2313_v25 }
  0xb4   : > { %3417 = vmatprep.subr.bf16.mxu0 %v3612_v33  ;;  %v2306_v31 = vshll.u32 %v2201_v17, 16  ;;  %v2304_v56 = vrot.slane %v2303_v41, 4  ;;  %v3087_v17 = vrot.slane %v2490_v10, 9  ;;  %v2541_v20 = vsel %vm3958_vm11, %v3088_v19, %v2540_v13 }
  0xb5   : > { %3466 = vmatpush3.bf16.msra.mxu1 %v4162_v32  ;;  %v2318_v57 = vrot.slane %v2317_v37, 4 }
  0xb6   : > { %3459 = vmatprep.subr.bf16.mxu1 %v4171_v43  ;;  %v2308_v42 = vrot.slane %v2306_v31, 5 }
  0xb7   : > { %3418 = vmatpush3.bf16.msra.mxu0 %v3612_v33  ;;  %v2281_v33 = vsel %vm3888_vm8, %v2276_v28, %v2280_v15  ;;  %v2323_v0 = vsel %vm3888_vm8, %v2318_v57, %v2322_v55 }
  0xb8   : > { %3419 = vmatprep.subr.bf16.mxu0 %v3614_v46  ;;  %3334 = vmatmul.mubr.bf16.gmra.mrb[4].mxu1 %v3624_v47  ;;  %v2487_v47 = vld [vmem:[#allocation2 + $0x14] sm:$0x1]  ;;  %v3075_v18 = vcombine.low %v2281_v33, %v2295_v38  ;;  %v2309_v63 = vsel %vm3888_vm8, %v2304_v56, %v2308_v42 }
  0xb9   : > { %3467 = vmatpush3.bf16.msra.mxu1 %v4171_v43  ;;  %3453 = vmatprep.mubr.bf16.mxu1 %v3111_v58  ;;  %v2528_v27 = vrot.slane %v2487_v47, 5  ;;  %v2552_v58 = vrot.slane %v2499_v51, 5 }
  0xba   : > { %3460 = vmatprep.subr.bf16.mxu1 %v4186_v61 }
  0xbb   : > { %3420 = vmatpush3.bf16.msra.mxu0 %v3614_v46  ;;  %v2486_v46 = vld [vmem:[#allocation2 + $0x10] sm:$0xe] }
  0xbc   : > { %3421 = vmatprep.subr.bf16.mxu0 %v3620_v7  ;;  %v3085_v14 = vrot.slane %v2486_v46, 9 }
  0xbd   : > { %3468 = vmatpush3.bf16.msra.mxu1 %v4186_v61 }
  0xbe   : > { %3461 = vmatprep.subr.bf16.mxu1 %v4196_v23  ;;  %v2529_v1 = vsel %vm3958_vm11, %v3085_v14, %v2528_v27 }
  0xbf   : > { %3422 = vmatpush3.bf16.msra.mxu0 %v3620_v7  ;;  %v3076_v7 = vcombine.low %v2309_v63, %v2323_v0  ;;  %v3109_v52 = vcombine.low %v2529_v1, %v2533_v29 }
  0xc0   : > { %3423 = vmatprep.subr.bf16.mxu0 %v3622_v62 }
  0xc1   : > { %3469 = vmatpush3.bf16.msra.mxu1 %v4196_v23 }
  0xc2   : > { %3462 = vmatprep.subr.bf16.mxu1 %v4208_v35 }
  0xc3   : > { %3424 = vmatpush3.bf16.msra.mxu0 %v3622_v62 }
  0xc4   : > { %3433 = vmatprep.subr.bf16.mxu0 %v4153_v12 }
  0xc5   : > { %3470 = vmatpush3.bf16.msra.mxu1 %v4208_v35 }
  0xc6   : > { %3426 = vmatmul.mubr.bf16.vlgmr.msra.gmra.mrb[0].mxu0 %v3074_v44  ;;  %3463 = vmatprep.subr.bf16.mxu1 %v4219_v40 }
  0xc7   : > { %3434 = vmatpush3.bf16.msra.mxu0 %v4153_v12  ;;  %3429 = vmatprep.mubr.bf16.mxu0 %v3075_v18  ;;  %v2553_v12 = vsel %vm3958_vm11, %v3091_v22, %v2552_v58 }
  0xc8   : > { %3435 = vmatprep.subr.bf16.mxu0 %v4162_v32  ;;  %v3112_v9 = vcombine.low %v2553_v12, %v2557_v5 }
  0xc9   : > { %3471 = vmatpush3.bf16.msra.mxu1 %v4219_v40 }
  0xca   : > { %3464 = vmatprep.subr.bf16.mxu1 %v3630_v60 }
  0xcb   : > { %3436 = vmatpush3.bf16.msra.mxu0 %v4162_v32  ;;  %v2491_v32 = vld [vmem:[#allocation2 + $0x24] sm:$0x1] }
  0xcc   : > { %3437 = vmatprep.subr.bf16.mxu0 %v4171_v43 }
  0xcd   : > { %3472 = vmatpush3.bf16.msra.mxu1 %v3630_v60 }
  0xce   : > { %3430 = vmatmul.mubr.bf16.gmra.mrb[4].mxu0 %v3076_v7 }
  0xcf   : > { %3438 = vmatpush3.bf16.msra.mxu0 %v4171_v43  ;;  %3449 = vmatprep.mubr.bf16.mxu0 %v3109_v52  ;;  %v2536_v43 = vrot.slane %v2491_v32, 5 }
  0xd0   : > { %3439 = vmatprep.subr.bf16.mxu0 %v4186_v61  ;;  %3454 = vmatmul.mubr.bf16.vlgmr.msra.gmra.mrb[8].mxu1 %v3112_v9 }
  0xd3   : > { %3440 = vmatpush3.bf16.msra.mxu0 %v4186_v61  ;;  %v2537_v61 = vsel %vm3958_vm11, %v3087_v17, %v2536_v43 }
  0xd4   : > { %3441 = vmatprep.subr.bf16.mxu0 %v4196_v23  ;;  %v3110_v15 = vcombine.low %v2537_v61, %v2541_v20 }
  0xd7   : > { %3442 = vmatpush3.bf16.msra.mxu0 %v4196_v23 }
  0xd8   : > { %3443 = vmatprep.subr.bf16.mxu0 %v4208_v35 }
  0xdb   : > { %3444 = vmatpush3.bf16.msra.mxu0 %v4208_v35 }
  0xdc   : > { %3445 = vmatprep.subr.bf16.mxu0 %v4219_v40 }
  0xdf   : > { %3446 = vmatpush3.bf16.msra.mxu0 %v4219_v40 }
  0xe0   : > { %3447 = vmatprep.subr.bf16.mxu0 %v3630_v60 }
  0xe3   : > { %3448 = vmatpush3.bf16.msra.mxu0 %v3630_v60 }
  0xe6   : > { %3450 = vmatmul.mubr.bf16.vlgmr.msra.gmra.mrb[0].mxu0 %v3110_v15  ;;  %v2736_v15 = vld [vmem:[%s4289_s7] sm:$0x1] }
 0x183   : > { %v3331_v23 = vpop.f32.mrb[0].mxu1 }
 0x184   : > { %v1422_v62 = vpop.f32.mrb[1].mxu1 }
 0x185   : > { %v3332_v6 = vpop.f32.mrb[2].mxu1 }
 0x186   : > { %v1425_v24 = vpop.f32.mrb[3].mxu1 }
 0x18b   : > { %v3335_v25 = vpop.f32.mrb[4].mxu1 }
 0x18c   : > { %v1438_v26 = vpop.f32.mrb[5].mxu1 }
 0x18d   : > { %v3336_v28 = vpop.f32.mrb[6].mxu1 }
 0x18e   : > { %v1441_v30 = vpop.f32.mrb[7].mxu1 }
 0x1a1   : > { %v3431_v16 = vpop.f32.mrb[4].mxu0 }
 0x1a2   : > { %v3477_v21 = vadd.f32 %v3431_v16, %v3335_v25  ;;  %v2455_v31 = vpop.f32.mrb[5].mxu0 }
 0x1a3   : > { %v3479_v49 = vadd.f32 %v2455_v31, %v1438_v26  ;;  %v3432_v34 = vpop.f32.mrb[6].mxu0  ;;  %v3455_v35 = vpop.f32.mrb[8].mxu1 }
 0x1a4   : > { %v3481_v36 = vadd.f32 %v3432_v34, %v3336_v28  ;;  %v2458_v41 = vpop.f32.mrb[7].mxu0  ;;  %v3478_v37 = vadd.f32 %v3477_v21, %v3455_v35  ;;  %v2689_v3 = vpop.f32.mrb[9].mxu1 }
 0x1a5   : > { %v3483_v33 = vadd.f32 %v2458_v41, %v1441_v30  ;;  %v3480_v38 = vadd.f32 %v3479_v49, %v2689_v3  ;;  %v3456_v42 = vpop.f32.mrb[10].mxu1 }
 0x1a6   : > { %2734 = vst [vmem:[%s3704_s14 + $0x30] sm:$0xff] %v3478_v37  ;;  %v3482_v40 = vadd.f32 %v3481_v36, %v3456_v42  ;;  %v2692_v45 = vpop.f32.mrb[11].mxu1  ;;  %v2759_v29 = vmul.f32 %v3478_v37, %v3478_v37 }
 0x1a7   : > { %2732 = vst [vmem:[%s3704_s14 + $0x20] sm:$0xff] %v3480_v38  ;;  %v3484_v46 = vadd.f32 %v3483_v33, %v2692_v45  ;;  %v2757_v59 = vmul.f32 %v3480_v38, %v3480_v38 }
 0x1a8   : > { %2735 = vst [vmem:[%s3704_s14 + $0x38] sm:$0xff] %v3482_v40  ;;  %v2760_v7 = vmul.f32 %v3482_v40, %v3482_v40 }
 0x1a9   : > { %2733 = vst [vmem:[%s3704_s14 + $0x28] sm:$0xff] %v3484_v46  ;;  %v2758_v63 = vmul.f32 %v3484_v46, %v3484_v46 }
 0x1b9   : > { %v3451_v47 = vpop.f32.mrb[0].mxu0 }
 0x1ba   : > { %v3473_v48 = vadd.f32 %v3451_v47, %v3331_v23  ;;  %v2673_v50 = vpop.f32.mrb[1].mxu0 }
 0x1bb   : > { %v3474_v44 = vadd.f32 %v2673_v50, %v1422_v62  ;;  %v3452_v51 = vpop.f32.mrb[2].mxu0 }
 0x1bc   : > { %2730 = vst [vmem:[%s3704_s14 + $0x10] sm:$0xff] %v3473_v48  ;;  %v3475_v53 = vadd.f32 %v3452_v51, %v3332_v6  ;;  %v2676_v54 = vpop.f32.mrb[3].mxu0  ;;  %v2755_v14 = vmul.f32 %v3473_v48, %v3473_v48  ;;  %v2752_v6 = vld [vmem:[%s4290_s8] sm:$0x1] }
 0x1bd   : > { %2728 = vst [vmem:[%s3704_s14] sm:$0xff] %v3474_v44  ;;  %v3476_v18 = vadd.f32 %v2676_v54, %v1425_v24  ;;  %v2753_v56 = vmul.f32 %v3474_v44, %v3474_v44 }
 0x1be   : > { %2731 = vst [vmem:[%s3704_s14 + $0x18] sm:$0xff] %v3475_v53  ;;  %v2756_v8 = vmul.f32 %v3475_v53, %v3475_v53 }
 0x1bf   : > { %2729 = vst [vmem:[%s3704_s14 + $0x8] sm:$0xff] %v3476_v18  ;;  %v2737_v57 = vadd.f32 %v3476_v18, %v3474_v44  ;;  %v2754_v55 = vmul.f32 %v3476_v18, %v3476_v18 }
 0x1c1   : > { %v2738_v27 = vadd.f32 %v3473_v48, %v2737_v57  ;;  %v2761_v4 = vadd.f32 %v2754_v55, %v2753_v56 }
 0x1c3   : > { %v2739_v22 = vadd.f32 %v3475_v53, %v2738_v27  ;;  %v2762_v58 = vadd.f32 %v2761_v4, %v2755_v14 }
 0x1c5   : > { %v2740_v39 = vadd.f32 %v3480_v38, %v2739_v22  ;;  %v2763_v60 = vadd.f32 %v2762_v58, %v2756_v8 }
 0x1c7   : > { %v2741_v0 = vadd.f32 %v3484_v46, %v2740_v39  ;;  %v2764_v1 = vadd.f32 %v2763_v60, %v2757_v59 }
 0x1c9   : > { %v2742_v12 = vadd.f32 %v3478_v37, %v2741_v0  ;;  %v2765_v5 = vadd.f32 %v2764_v1, %v2758_v63 }
 0x1cb   : > { %v2743_v52 = vadd.f32 %v3482_v40, %v2742_v12  ;;  %v2766_v9 = vadd.f32 %v2765_v5, %v2759_v29 }
 0x1cd   : > { %v2744_v10 = vrot.slane %v2743_v52, 4  ;;  %v2767_v32 = vadd.f32 %v2766_v9, %v2760_v7 }
 0x1cf   : > { %v2745_v11 = vadd.f32 %v2744_v10, %v2743_v52  ;;  %v2768_v2 = vrot.slane %v2767_v32, 4 }
 0x1d1   : > { %v2746_v17 = vrot.slane %v2745_v11, 2  ;;  %v2769_v43 = vadd.f32 %v2768_v2, %v2767_v32 }
 0x1d3   : > { %v2747_v19 = vadd.f32 %v2746_v17, %v2745_v11  ;;  %v2770_v13 = vrot.slane %v2769_v43, 2 }
 0x1d5   : > { %v2748_v61 = vrot.slane %v2747_v19, 1  ;;  %v2771_v20 = vadd.f32 %v2770_v13, %v2769_v43 }
 0x1d7   : > { %v2749_v23 = vadd.f32 %v2748_v61, %v2747_v19  ;;  %v2772_v62 = vrot.slane %v2771_v20, 1 }
 0x1d9   : > { %v2750_v24 = vadd.f32 %v2749_v23, %v2736_v15  ;;  %v2773_v25 = vadd.f32 %v2772_v62, %v2771_v20 }
 0x1db   : > { %2751 = vst [vmem:[%s4289_s7] sm:$0x1] %v2750_v24  ;;  %v2774_v26 = vadd.f32 %v2773_v25, %v2752_v6 }
 0x1dd   : > { %2775 = vst [vmem:[%s4290_s8] sm:$0x1] %v2774_v26 }
 0x1de PF: > { %s19_s27 = sadd.s32 1, %s3639_s27  }
 0x1df   : > { %p16_p5 = scmp.ge.s32.totalorder %s19_s27, 4  }
 0x1e1   :  { %18 = sbr.rel (!%p16_p5) target bundleno = 1 (0x1), region = 104 }

// kernel: resblock_forward.5
= control target key start
LH: loop header
LB: loop body
LE: loop exit
PB: predicated region body
PF: predicated region fallthrough
CT: control target
= control target key end

     0   :  { %v60_v23 = vlaneseq  ;;  %s726_s6 = inlined_call_operand.vmem [shape: bf16[128,128], index: 6, kind: input, shape index: {}]   ;;  %s727_s5 = inlined_call_operand.vmem [shape: bf16[128,128], index: 5, kind: input, shape index: {}]   ;;  %s728_s1 = inlined_call_operand.vmem [shape: f32[1,128], index: 1, kind: input, shape index: {}]   ;;  %s729_s2 = inlined_call_operand.vmem [shape: f32[1,128], index: 2, kind: input, shape index: {}]   ;;  %s730_s3 = inlined_call_operand.vmem [shape: f32[1,128], index: 3, kind: input, shape index: {}]   ;;  %s731_s4 = inlined_call_operand.vmem [shape: f32[1,128], index: 4, kind: input, shape index: {}]   ;;  %s732_s0 = inlined_call_operand.vmem [shape: f32[128,128], index: 0, kind: input, shape index: {}]   ;;  %s733_s7 = inlined_call_operand.vmem [shape: f32[1,128], index: 7, kind: input, shape index: {}]   ;;  %s734_s8 = inlined_call_operand.vmem [shape: f32[128,128], index: 8, kind: output, shape index: {}]  }
   0x1   :  { %v468_v0 = vld [vmem:[%s726_s6] sm:$0xff]   ;;  %v469_v1 = vld [vmem:[%s726_s6 + $0x8] sm:$0xff]   ;;  %v470_v2 = vld [vmem:[%s726_s6 + $0x10] sm:$0xff]  }
   0x2   :  { %420 = vmatprep.subr.bf16.mxu0 %v468_v0  ;;  %452 = vmatprep.subr.bf16.mxu1 %v468_v0  ;;  %v471_v3 = vld [vmem:[%s726_s6 + $0x18] sm:$0xff]   ;;  %v476_v4 = vld [vmem:[%s727_s5] sm:$0xff]   ;;  %v473_v7 = vld [vmem:[%s726_s6 + $0x28] sm:$0xff]   ;;  %v61_v26 = vshrl.u32 %v60_v23, 7 }
   0x3   :  { %421 = vmatpush3.bf16.msra.mxu0 %v468_v0  ;;  %460 = vmatpush3.bf16.msra.mxu1 %v468_v0  ;;  %v477_v5 = vld [vmem:[%s727_s5 + $0x20] sm:$0xff]   ;;  %v474_v8 = vld [vmem:[%s726_s6 + $0x30] sm:$0xff]   ;;  %v475_v9 = vld [vmem:[%s726_s6 + $0x38] sm:$0xff]  }
   0x4   :  { %422 = vmatprep.subr.bf16.mxu0 %v469_v1  ;;  %453 = vmatprep.subr.bf16.mxu1 %v469_v1  ;;  %v472_v6 = vld [vmem:[%s726_s6 + $0x20] sm:$0xff]   ;;  %v478_v10 = vld [vmem:[%s727_s5 + $0x8] sm:$0xff]   ;;  %v480_v12 = vld [vmem:[%s727_s5 + $0x10] sm:$0xff]   ;;  %v62_v28 = vsub.s32 0, %v61_v26 }
   0x5   :  { %436 = vmatprep.mubr.bf16.mxu0 %v476_v4  ;;  %444 = vmatprep.mubr.bf16.mxu1 %v477_v5  ;;  %v479_v11 = vld [vmem:[%s727_s5 + $0x28] sm:$0xff]   ;;  %v481_v13 = vld [vmem:[%s727_s5 + $0x30] sm:$0xff]   ;;  %v482_v14 = vld [vmem:[%s727_s5 + $0x18] sm:$0xff]  }
   0x6   :  { %v483_v15 = vld [vmem:[%s727_s5 + $0x38] sm:$0xff]   ;;  %v30_v16 = vld [vmem:[%s728_s1] sm:$0x1]  ;;  %v45_v33 = vld [vmem:[%s732_s0 + $0x10] sm:$0xff] }
   0x7   :  { %423 = vmatpush3.bf16.msra.mxu0 %v469_v1  ;;  %461 = vmatpush3.bf16.msra.mxu1 %v469_v1  ;;  %v31_v17 = vmul.f32 0.0078125, %v30_v16  ;;  %v32_v18 = vld [vmem:[%s729_s2] sm:$0x1]  ;;  %v53_v34 = vld [vmem:[%s732_s0 + $0x50] sm:$0xff]  ;;  %v46_v37 = vld [vmem:[%s732_s0 + $0x18] sm:$0xff] }
   0x8   :  { %424 = vmatprep.subr.bf16.mxu0 %v470_v2  ;;  %454 = vmatprep.subr.bf16.mxu1 %v470_v2  ;;  %v33_v19 = vmul.f32 0.0078125, %v32_v18  ;;  %v36_v25 = vld [vmem:[%s730_s3] sm:$0x1]  ;;  %v54_v38 = vld [vmem:[%s732_s0 + $0x58] sm:$0xff]  ;;  %v44_v39 = vld [vmem:[%s732_s0 + $0x8] sm:$0xff] }
   0x9   :  { %v34_v20 = vmul.f32 %v31_v17, %v31_v17  ;;  %v40_v30 = vld [vmem:[%s731_s4] sm:$0x1]  ;;  %v52_v40 = vld [vmem:[%s732_s0 + $0x48] sm:$0xff]  ;;  %v49_v50 = vld [vmem:[%s732_s0 + $0x30] sm:$0xff] }
   0xa   :  { %v43_v35 = vld [vmem:[%s732_s0] sm:$0xff]  ;;  %v57_v51 = vld [vmem:[%s732_s0 + $0x70] sm:$0xff]  ;;  %v50_v59 = vld [vmem:[%s732_s0 + $0x38] sm:$0xff] }
   0xb   :  { %425 = vmatpush3.bf16.msra.mxu0 %v470_v2  ;;  %462 = vmatpush3.bf16.msra.mxu1 %v470_v2  ;;  %v35_v21 = vsub.f32 %v33_v19, %v34_v20  ;;  %v51_v36 = vld [vmem:[%s732_s0 + $0x40] sm:$0xff]  ;;  %v58_v60 = vld [vmem:[%s732_s0 + $0x78] sm:$0xff]  ;;  %v48_v1 = vld [vmem:[%s732_s0 + $0x28] sm:$0xff] }
   0xc   :  { %426 = vmatprep.subr.bf16.mxu0 %v471_v3  ;;  %455 = vmatprep.subr.bf16.mxu1 %v471_v3  ;;  %v47_v52 = vld [vmem:[%s732_s0 + $0x20] sm:$0xff]  ;;  %v56_v2 = vld [vmem:[%s732_s0 + $0x68] sm:$0xff] }
   0xd   :  { %v37_v22 = vadd.f32 1e-05, %v35_v21  ;;  %v55_v53 = vld [vmem:[%s732_s0 + $0x60] sm:$0xff] }
   0xe   :  { %v633_v55 = vld [vmem:[%s733_s7] ss:$0 sm:$0xff] }
   0xf   :  { %427 = vmatpush3.bf16.msra.mxu0 %v471_v3  ;;  %463 = vmatpush3.bf16.msra.mxu1 %v471_v3  ;;  %484 = vrsqrt.f32 %v37_v22 }
  0x10   :  { %428 = vmatprep.subr.bf16.mxu0 %v472_v6  ;;  %456 = vmatprep.subr.bf16.mxu1 %v472_v6 }
  0x13   :  { %429 = vmatpush3.bf16.msra.mxu0 %v472_v6  ;;  %464 = vmatpush3.bf16.msra.mxu1 %v472_v6 }
  0x14   :  { %430 = vmatprep.subr.bf16.mxu0 %v473_v7  ;;  %457 = vmatprep.subr.bf16.mxu1 %v473_v7 }
  0x17   :  { %431 = vmatpush3.bf16.msra.mxu0 %v473_v7  ;;  %465 = vmatpush3.bf16.msra.mxu1 %v473_v7 }
  0x18   :  { %432 = vmatprep.subr.bf16.mxu0 %v474_v8  ;;  %458 = vmatprep.subr.bf16.mxu1 %v474_v8 }
  0x19   :  { %v485_v24 = vpop.eup %484 }
  0x1a   :  { %v39_v27 = vmul.f32 %v485_v24, %v36_v25 }
  0x1b   :  { %433 = vmatpush3.bf16.msra.mxu0 %v474_v8  ;;  %466 = vmatpush3.bf16.msra.mxu1 %v474_v8 }
  0x1c   :  { %434 = vmatprep.subr.bf16.mxu0 %v475_v9  ;;  %459 = vmatprep.subr.bf16.mxu1 %v475_v9  ;;  %v41_v29 = vmul.f32 %v39_v27, %v31_v17  ;;  %v63_v31 = vrot.slane %v39_v27, %v62_v28 }
  0x1e   :  { %v42_v32 = vsub.f32 %v40_v30, %v41_v29  ;;  %v67_v41 = vmul.f32 %v63_v31, %v45_v33  ;;  %v75_v43 = vmul.f32 %v63_v31, %v53_v34  ;;  %v65_v44 = vmul.f32 %v63_v31, %v43_v35 }
  0x1f   :  { %435 = vmatpush3.bf16.msra.mxu0 %v475_v9  ;;  %467 = vmatpush3.bf16.msra.mxu1 %v475_v9  ;;  %v73_v45 = vmul.f32 %v63_v31, %v51_v36  ;;  %v68_v46 = vmul.f32 %v63_v31, %v46_v37  ;;  %v76_v47 = vmul.f32 %v63_v31, %v54_v38 }
  0x20   :  { %v615_v42 = vrot.slane %v42_v32, %v62_v28  ;;  %v66_v48 = vmul.f32 %v63_v31, %v44_v39  ;;  %v74_v49 = vmul.f32 %v63_v31, %v52_v40  ;;  %v71_v5 = vmul.f32 %v63_v31, %v49_v50 }
  0x21   :  { %v79_v6 = vmul.f32 %v63_v31, %v57_v51  ;;  %v69_v7 = vmul.f32 %v63_v31, %v47_v52  ;;  %v77_v8 = vmul.f32 %v63_v31, %v55_v53  ;;  %v70_v19 = vmul.f32 %v63_v31, %v48_v1 }
  0x22   :  { %437 = vmatmul.mubr.bf16.vlgmr.msra.gmra.mrb[0].mxu0 %v478_v10  ;;  %445 = vmatmul.mubr.bf16.vlgmr.msra.gmra.mrb[0].mxu1 %v479_v11  ;;  %v89_v54 = vadd.f32 %v615_v42, %v67_v41  ;;  %v97_v56 = vadd.f32 %v615_v42, %v75_v43  ;;  %v87_v57 = vadd.f32 %v615_v42, %v65_v44 }
  0x23   :  { %440 = vmatprep.mubr.bf16.mxu0 %v480_v12  ;;  %448 = vmatprep.mubr.bf16.mxu1 %v481_v13  ;;  %v95_v58 = vadd.f32 %v615_v42, %v73_v45  ;;  %v90_v61 = vadd.f32 %v615_v42, %v68_v46  ;;  %v98_v62 = vadd.f32 %v615_v42, %v76_v47 }
  0x24   :  { %v88_v63 = vadd.f32 %v615_v42, %v66_v48  ;;  %v96_v0 = vadd.f32 %v615_v42, %v74_v49  ;;  %v72_v13 = vmul.f32 %v63_v31, %v50_v59  ;;  %v78_v20 = vmul.f32 %v63_v31, %v56_v2 }
  0x25   :  { %v93_v41 = vadd.f32 %v615_v42, %v71_v5  ;;  %v101_v43 = vadd.f32 %v615_v42, %v79_v6  ;;  %v91_v48 = vadd.f32 %v615_v42, %v69_v7  ;;  %v99_v49 = vadd.f32 %v615_v42, %v77_v8 }
  0x2a   :  { %441 = vmatmul.mubr.bf16.gmra.mrb[4].mxu0 %v482_v14  ;;  %449 = vmatmul.mubr.bf16.gmra.mrb[4].mxu1 %v483_v15  ;;  %v80_v14 = vmul.f32 %v63_v31, %v58_v60 }
  0xf5   :  { %v438_v3 = vpop.f32.mrb[0].mxu0  ;;  %v446_v4 = vpop.f32.mrb[0].mxu1 }
  0xf6   :  { %v281_v9 = vadd.f32 %v438_v3, %v633_v55  ;;  %v313_v10 = vadd.f32 %v446_v4, %v633_v55  ;;  %v272_v11 = vpop.f32.mrb[1].mxu0  ;;  %v304_v12 = vpop.f32.mrb[1].mxu1 }
  0xf7   :  { %v273_v15 = vadd.f32 %v633_v55, %v272_v11  ;;  %v305_v16 = vadd.f32 %v633_v55, %v304_v12  ;;  %v439_v17 = vpop.f32.mrb[2].mxu0  ;;  %v447_v18 = vpop.f32.mrb[2].mxu1 }
  0xf8   :  { %v337_v21 = vadd.f32 %v281_v9, %v89_v54  ;;  %v345_v22 = vadd.f32 %v313_v10, %v97_v56  ;;  %v284_v23 = vadd.f32 %v439_v17, %v633_v55  ;;  %v316_v24 = vadd.f32 %v447_v18, %v633_v55  ;;  %v275_v25 = vpop.f32.mrb[3].mxu0  ;;  %v307_v26 = vpop.f32.mrb[3].mxu1 }
  0xf9   :  { %v335_v27 = vadd.f32 %v273_v15, %v87_v57  ;;  %v343_v28 = vadd.f32 %v305_v16, %v95_v58  ;;  %v276_v29 = vadd.f32 %v633_v55, %v275_v25  ;;  %v308_v30 = vadd.f32 %v633_v55, %v307_v26 }
  0xfa   :  { %v353_v32 = vmax.f32 %v337_v21, 0.0  ;;  %v361_v33 = vmax.f32 %v345_v22, 0.0  ;;  %v338_v34 = vadd.f32 %v284_v23, %v90_v61  ;;  %v346_v35 = vadd.f32 %v316_v24, %v98_v62 }
  0xfb   :  { %v351_v36 = vmax.f32 %v335_v27, 0.0  ;;  %v359_v31 = vmax.f32 %v343_v28, 0.0  ;;  %v336_v37 = vadd.f32 %v276_v29, %v88_v63  ;;  %v344_v38 = vadd.f32 %v308_v30, %v96_v0 }
  0xfc   :  { %369 = vst [vmem:[%s734_s8 + $0x10] sm:$0xff] %v353_v32  ;;  %377 = vst [vmem:[%s734_s8 + $0x50] sm:$0xff] %v361_v33  ;;  %v354_v39 = vmax.f32 %v338_v34, 0.0  ;;  %v362_v40 = vmax.f32 %v346_v35, 0.0  ;;  %v94_v54 = vadd.f32 %v615_v42, %v72_v13  ;;  %v102_v56 = vadd.f32 %v615_v42, %v80_v14 }
  0xfd   :  { %367 = vst [vmem:[%s734_s8] sm:$0xff] %v351_v36  ;;  %375 = vst [vmem:[%s734_s8 + $0x40] sm:$0xff] %v359_v31  ;;  %v352_v44 = vmax.f32 %v336_v37, 0.0  ;;  %v360_v45 = vmax.f32 %v344_v38, 0.0  ;;  %v442_v46 = vpop.f32.mrb[4].mxu0  ;;  %v450_v47 = vpop.f32.mrb[4].mxu1  ;;  %v92_v61 = vadd.f32 %v615_v42, %v70_v19  ;;  %v100_v62 = vadd.f32 %v615_v42, %v78_v20 }
  0xfe   :  { %370 = vst [vmem:[%s734_s8 + $0x18] sm:$0xff] %v354_v39  ;;  %378 = vst [vmem:[%s734_s8 + $0x58] sm:$0xff] %v362_v40  ;;  %v297_v50 = vadd.f32 %v442_v46, %v633_v55  ;;  %v329_v51 = vadd.f32 %v450_v47, %v633_v55  ;;  %v288_v52 = vpop.f32.mrb[5].mxu0  ;;  %v320_v53 = vpop.f32.mrb[5].mxu1 }
  0xff   :  { %368 = vst [vmem:[%s734_s8 + $0x8] sm:$0xff] %v352_v44  ;;  %376 = vst [vmem:[%s734_s8 + $0x48] sm:$0xff] %v360_v45  ;;  %v289_v57 = vadd.f32 %v633_v55, %v288_v52  ;;  %v321_v58 = vadd.f32 %v633_v55, %v320_v53  ;;  %v443_v59 = vpop.f32.mrb[6].mxu0  ;;  %v451_v60 = vpop.f32.mrb[6].mxu1 }
 0x100   :  { %v341_v63 = vadd.f32 %v297_v50, %v93_v41  ;;  %v349_v0 = vadd.f32 %v329_v51, %v101_v43  ;;  %v300_v1 = vadd.f32 %v443_v59, %v633_v55  ;;  %v332_v2 = vadd.f32 %v451_v60, %v633_v55  ;;  %v291_v3 = vpop.f32.mrb[7].mxu0  ;;  %v323_v4 = vpop.f32.mrb[7].mxu1 }
 0x101   :  { %v339_v5 = vadd.f32 %v289_v57, %v91_v48  ;;  %v347_v6 = vadd.f32 %v321_v58, %v99_v49  ;;  %v292_v7 = vadd.f32 %v633_v55, %v291_v3  ;;  %v324_v8 = vadd.f32 %v633_v55, %v323_v4 }
 0x102   :  { %v357_v9 = vmax.f32 %v341_v63, 0.0  ;;  %v365_v10 = vmax.f32 %v349_v0, 0.0  ;;  %v342_v11 = vadd.f32 %v300_v1, %v94_v54  ;;  %v350_v12 = vadd.f32 %v332_v2, %v102_v56 }
 0x103   :  { %v355_v13 = vmax.f32 %v339_v5, 0.0  ;;  %v363_v42 = vmax.f32 %v347_v6, 0.0  ;;  %v340_v14 = vadd.f32 %v292_v7, %v92_v61  ;;  %v348_v15 = vadd.f32 %v324_v8, %v100_v62 }
 0x104   :  { %373 = vst [vmem:[%s734_s8 + $0x30] sm:$0xff] %v357_v9  ;;  %381 = vst [vmem:[%s734_s8 + $0x70] sm:$0xff] %v365_v10  ;;  %v358_v16 = vmax.f32 %v342_v11, 0.0  ;;  %v366_v17 = vmax.f32 %v350_v12, 0.0 }
 0x105   :  { %371 = vst [vmem:[%s734_s8 + $0x20] sm:$0xff] %v355_v13  ;;  %379 = vst [vmem:[%s734_s8 + $0x60] sm:$0xff] %v363_v42  ;;  %v356_v55 = vmax.f32 %v340_v14, 0.0  ;;  %v364_v18 = vmax.f32 %v348_v15, 0.0 }
 0x106   :  { %374 = vst [vmem:[%s734_s8 + $0x38] sm:$0xff] %v358_v16  ;;  %382 = vst [vmem:[%s734_s8 + $0x78] sm:$0xff] %v366_v17 }
 0x107   :  { %372 = vst [vmem:[%s734_s8 + $0x28] sm:$0xff] %v356_v55  ;;  %380 = vst [vmem:[%s734_s8 + $0x68] sm:$0xff] %v364_v18 }

</bundles_post_ra>
